<compile_context>
chip_gen: v5e
topology: v5e:2x2
jax: 0.10.0
libtpu: 0.0.40
codegen_flags: <defaults>
</compile_context>

<pallas_src>
import math
import jax
import jax.numpy as jnp
from jax import lax
from jax.experimental import pallas as pl
from jax.experimental.pallas import tpu as pltpu

D = 32           # model size
H = 8            # attention heads
HD = D // H      # head dim
FF = 4 * D       # feed-forward size (ff_size = size * 4 default)
LN_EPS = 1e-5
NEG_INF = -1e9


def _layer_norm(h, g, b):
    mu = jnp.mean(h, axis=-1, keepdims=True)
    var = jnp.mean((h - mu) ** 2, axis=-1, keepdims=True)
    return (h - mu) * lax.rsqrt(var + LN_EPS) * g + b


def fused_decoder_kernel(x_ref, y_ref, kval_ref, yval_ref,
                         g1_ref, b1_ref, g2_ref, b2_ref, g3_ref, b3_ref,
                         wq_ref, bq_ref, wk_ref, bk_ref, wv_ref, bv_ref,
                         wo_ref, bo_ref, w1_ref, bw1_ref, w2_ref, bw2_ref,
                         gf_ref, bf_ref, out_ref):
    S = x_ref.shape[0]
    Sy = y_ref.shape[0]
    L = g1_ref.shape[0]

    x = x_ref[...]            # (S, D)  -- stays resident across all layers
    y = y_ref[...]            # (Sy, D)

    # --- masks built in-kernel from tiny validity vectors (no (S,S) HBM traffic) ---
    row = lax.broadcasted_iota(jnp.int32, (S, S), 0)
    col = lax.broadcasted_iota(jnp.int32, (S, S), 1)
    smask = jnp.logical_and(col <= row, kval_ref[...] > 0.5)   # (S, S)   True = attend
    cmask = yval_ref[...] > 0.5                                # (1, Sy)  True = attend

    # Encoder memory broadcast over heads, hoisted (reused by every layer's cross-attn).
    yb = jnp.broadcast_to(y, (H, Sy, D))

    def attend(qh, kh, vh, mask):
        # qh: (H, S, HD), kh/vh: (H, Sk, HD); mask broadcastable to (S, Sk)
        s = jnp.einsum('hqd,hkd->hqk', qh, kh, preferred_element_type=jnp.float32)
        s = jnp.where(mask, s, NEG_INF)
        s = s - jnp.max(s, axis=-1, keepdims=True)
        p = jnp.exp(s)
        p = p * pl.reciprocal(jnp.sum(p, axis=-1, keepdims=True), approx=True)
        return jnp.einsum('hqk,hkd->hqd', p, vh, preferred_element_type=jnp.float32)

    def mha(l, q_in, kv_b, mask):
        # q_in: (S, D); kv_b: (H, Sk, D) already broadcast over heads
        qb = jnp.broadcast_to(q_in, (H,) + q_in.shape)
        qh = jnp.einsum('hsd,hde->hse', qb, wq_ref[l],
                        preferred_element_type=jnp.float32) + bq_ref[l]     # scale pre-folded
        kh = jnp.einsum('hsd,hde->hse', kv_b, wk_ref[l],
                        preferred_element_type=jnp.float32) + bk_ref[l]
        vh = jnp.einsum('hsd,hde->hse', kv_b, wv_ref[l],
                        preferred_element_type=jnp.float32) + bv_ref[l]
        o = attend(qh, kh, vh, mask)                                        # (H, S, HD)
        op = jnp.einsum('hqd,hdo->hqo', o, wo_ref[l],
                        preferred_element_type=jnp.float32)                 # (H, S, D)
        return jnp.sum(op, axis=0) + bo_ref[l]                              # (S, D)

    # --- all decoder layers, unrolled (small static L); x never leaves VMEM ---
    for l in range(L):
        # self-attention sub-block (dropout == identity at inference)
        h1 = _layer_norm(x, g1_ref[l], b1_ref[l])
        x = x + mha(l, h1, jnp.broadcast_to(h1, (H, S, D)), smask)
        # "cross"-attention sub-block: reference module reuses self.attention weights here
        h2 = _layer_norm(x, g2_ref[l], b2_ref[l])
        x = x + mha(l, h2, yb, cmask)
        # feed-forward sub-block
        h3 = _layer_norm(x, g3_ref[l], b3_ref[l])
        ff = jnp.maximum(jnp.dot(h3, w1_ref[l], preferred_element_type=jnp.float32)
                         + bw1_ref[l], 0.0)
        x = x + jnp.dot(ff, w2_ref[l], preferred_element_type=jnp.float32) + bw2_ref[l]

    # final LayerNorm fused into the same kernel
    out_ref[...] = _layer_norm(x, gf_ref[...], bf_ref[...])


def transformer_decoder_pallas(tokens, y, y_valid, embed_table, layer_params, gf, bf):
    """Matches TransformerDecoder.forward (skip_connect=False, eval mode)."""
    B, S = tokens.shape
    Sy = y.shape[1]

    # glue: embedding lookup + tiny per-batch validity vectors (masks built in-kernel)
    x = embed_table[tokens].astype(jnp.float32)                 # (B, S, D)
    kvalid = (tokens != 0).astype(jnp.float32)[:, None, :]      # (B, 1, S)
    yvalid = y_valid.astype(jnp.float32)[:, None, :]            # (B, 1, Sy)

    # glue: stack per-layer weights along L; pre-reshape for head-batched einsums;
    # fold the 1/sqrt(HD) attention scale into wq/bq.
    scale = 1.0 / math.sqrt(HD)

    def stack(f):
        return jnp.stack([f(p) for p in layer_params], axis=0)

    weights = [
        stack(lambda p: p['g1']),  stack(lambda p: p['be1']),                      # (L,1,D)
        stack(lambda p: p['g2']),  stack(lambda p: p['be2']),
        stack(lambda p: p['g3']),  stack(lambda p: p['be3']),
        stack(lambda p: p['wq'].reshape(D, H, HD).transpose(1, 0, 2) * scale),     # (L,H,D,HD)
        stack(lambda p: p['bq'].reshape(H, 1, HD) * scale),                        # (L,H,1,HD)
        stack(lambda p: p['wk'].reshape(D, H, HD).transpose(1, 0, 2)),
        stack(lambda p: p['bk'].reshape(H, 1, HD)),
        stack(lambda p: p['wv'].reshape(D, H, HD).transpose(1, 0, 2)),
        stack(lambda p: p['bv'].reshape(H, 1, HD)),
        stack(lambda p: p['wo'].reshape(H, HD, D)),                                # (L,H,HD,D)
        stack(lambda p: p['bo']),                                                  # (L,1,D)
        stack(lambda p: p['w1']),  stack(lambda p: p['bf1']),                      # (L,D,FF),(L,1,FF)
        stack(lambda p: p['w2']),  stack(lambda p: p['bf2']),                      # (L,FF,D),(L,1,D)
        gf, bf,                                                                    # (1,D) each
    ]

    def batch_spec(s1, s2):
        return pl.BlockSpec((None, s1, s2), lambda b: (b, 0, 0))

    def full_spec(a):
        return pl.BlockSpec(a.shape, lambda b, n=a.ndim: (0,) * n)

    return pl.pallas_call(
        fused_decoder_kernel,
        out_shape=jax.ShapeDtypeStruct((B, S, D), jnp.float32),
        grid=(B,),
        in_specs=[batch_spec(S, D), batch_spec(Sy, D),
                  batch_spec(1, S), batch_spec(1, Sy)]
                 + [full_spec(w) for w in weights],
        out_specs=batch_spec(S, D),
        compiler_params=pltpu.CompilerParams(dimension_semantics=("parallel",)),
    )(x, y, kvalid, yvalid, *weights)


# ------------------------- pure-JAX reference ----------------------------
def ref_forward(tokens, y, y_valid, embed_table, layer_params, gf, bf):
    B, S = tokens.shape
    Sy = y.shape[1]
    length_mask = (tokens == 0).astype(jnp.float32)[:, None, :]
    tri = jnp.triu(jnp.ones((S, S), jnp.float32), k=1)[None]
    smask = ((tri + length_mask) == 0).astype(jnp.float32)
    cmask = jnp.broadcast_to(y_valid[:, None, :].astype(jnp.float32), (B, S, Sy))
    x = embed_table[tokens]

    def ln(h, g, b):
        mu = h.mean(-1, keepdims=True)
        var = ((h - mu) ** 2).mean(-1, keepdims=True)
        return (h - mu) / jnp.sqrt(var + LN_EPS) * g[0] + b[0]

    def mha(q_in, kv_in, mask, p):
        q = q_in @ p['wq'] + p['bq'][0]
        k = kv_in @ p['wk'] + p['bk'][0]
        v = kv_in @ p['wv'] + p['bv'][0]
        Bq, Sq, _ = q.shape
        Sk = k.shape[1]
        qh = q.reshape(Bq, Sq, H, HD).transpose(0, 2, 1, 3)
        kh = k.reshape(Bq, Sk, H, HD).transpose(0, 2, 1, 3)
        vh = v.reshape(Bq, Sk, H, HD).transpose(0, 2, 1, 3)
        s = jnp.einsum('bhqd,bhkd->bhqk', qh, kh) / math.sqrt(HD)
        s = jnp.where(mask[:, None] > 0.5, s, NEG_INF)
        a = jax.nn.softmax(s, axis=-1)
        o = jnp.einsum('bhqk,bhkd->bhqd', a, vh).transpose(0, 2, 1, 3).reshape(Bq, Sq, D)
        return o @ p['wo'] + p['bo'][0]

    for p in layer_params:
        h1 = ln(x, p['g1'], p['be1'])
        h1 = mha(h1, h1, smask, p) + x
        h2 = ln(h1, p['g2'], p['be2'])
        h2 = mha(h2, y, cmask, p) + h1
        h3 = ln(h2, p['g3'], p['be3'])
        ff = jnp.maximum(h3 @ p['w1'] + p['bf1'][0], 0.0) @ p['w2'] + p['bf2'][0]
        x = ff + h2
    return ln(x, gf, bf)


# ------------------------- parameter init --------------------------------
def init_layer_params(key):
    ks = jax.random.split(key, 6)

    def lin(k, fan_in, fan_out):
        bound = 1.0 / math.sqrt(fan_in)
        kw, kb = jax.random.split(k)
        w = jax.random.uniform(kw, (fan_in, fan_out), jnp.float32, -bound, bound)
        b = jax.random.uniform(kb, (1, fan_out), jnp.float32, -bound, bound)
        return w, b

    wq, bq = lin(ks[0], D, D)
    wk, bk = lin(ks[1], D, D)
    wv, bv = lin(ks[2], D, D)
    wo, bo = lin(ks[3], D, D)
    w1, bf1 = lin(ks[4], D, FF)
    w2, bf2 = lin(ks[5], FF, D)
    ones = jnp.ones((1, D), jnp.float32)
    zeros = jnp.zeros((1, D), jnp.float32)
    return dict(g1=ones, be1=zeros, g2=ones, be2=zeros, g3=ones, be3=zeros,
                wq=wq, bq=bq, wk=wk, bk=bk, wv=wv, bv=bv, wo=wo, bo=bo,
                w1=w1, bf1=bf1, w2=w2, bf2=bf2)


if __name__ == "__main__":
    key = jax.random.PRNGKey(0)
    B, S, Sy = 2, 8, 8
    VOCAB = 16
    n_layers = 2
    k_tok, k_y, k_emb, _k_unused, *k_layers = jax.random.split(key, 4 + n_layers)

    tokens = jax.random.randint(k_tok, (B, S), 1, VOCAB).astype(jnp.int32)
    tokens = tokens.at[0, -2:].set(0).at[1, -1:].set(0)     # padding -> exercises length mask
    y = jax.random.normal(k_y, (B, Sy, D), jnp.float32)     # encoder memory
    y_valid = jnp.ones((B, Sy), jnp.float32).at[0, -3:].set(0.0)
    embed_table = 0.1 * jax.random.normal(k_emb, (VOCAB, D), jnp.float32)
    gf = jnp.ones((1, D), jnp.float32)                      # final LayerNorm (PyTorch default init)
    bf = jnp.zeros((1, D), jnp.float32)
    layer_params = [init_layer_params(k) for k in k_layers]

    out = transformer_decoder_pallas(tokens, y, y_valid, embed_table, layer_params, gf, bf)
    out = jax.block_until_ready(out)

    ref = ref_forward(tokens, y, y_valid, embed_table, layer_params, gf, bf)
    assert out.shape == (B, S, D)
    assert bool(jnp.allclose(out, ref, atol=3e-2, rtol=3e-2)), \
        float(jnp.max(jnp.abs(out - ref)))
    print("KERNEL_OK")
</pallas_src>

<mosaic_0001>
module attributes {stable_mosaic.version = 11 : i64} {
  func.func @fused_decoder_kernel(%arg0: i32, %arg1: memref<1x8x32xf32, #tpu.memory_space<vmem>>, %arg2: memref<1x8x32xf32, #tpu.memory_space<vmem>>, %arg3: memref<1x1x8xf32, #tpu.memory_space<vmem>>, %arg4: memref<1x1x8xf32, #tpu.memory_space<vmem>>, %arg5: memref<2x1x32xf32, #tpu.memory_space<vmem>>, %arg6: memref<2x1x32xf32, #tpu.memory_space<vmem>>, %arg7: memref<2x1x32xf32, #tpu.memory_space<vmem>>, %arg8: memref<2x1x32xf32, #tpu.memory_space<vmem>>, %arg9: memref<2x1x32xf32, #tpu.memory_space<vmem>>, %arg10: memref<2x1x32xf32, #tpu.memory_space<vmem>>, %arg11: memref<2x8x32x4xf32, #tpu.memory_space<vmem>>, %arg12: memref<2x8x1x4xf32, #tpu.memory_space<vmem>>, %arg13: memref<2x8x32x4xf32, #tpu.memory_space<vmem>>, %arg14: memref<2x8x1x4xf32, #tpu.memory_space<vmem>>, %arg15: memref<2x8x32x4xf32, #tpu.memory_space<vmem>>, %arg16: memref<2x8x1x4xf32, #tpu.memory_space<vmem>>, %arg17: memref<2x8x4x32xf32, #tpu.memory_space<vmem>>, %arg18: memref<2x1x32xf32, #tpu.memory_space<vmem>>, %arg19: memref<2x32x128xf32, #tpu.memory_space<vmem>>, %arg20: memref<2x1x128xf32, #tpu.memory_space<vmem>>, %arg21: memref<2x128x32xf32, #tpu.memory_space<vmem>>, %arg22: memref<2x1x32xf32, #tpu.memory_space<vmem>>, %arg23: memref<1x32xf32, #tpu.memory_space<vmem>>, %arg24: memref<1x32xf32, #tpu.memory_space<vmem>>, %arg25: memref<1x8x32xf32, #tpu.memory_space<vmem>>) attributes {dimension_semantics = [#tpu.dimension_semantics<parallel>], iteration_bounds = array<i64: 2>, scalar_prefetch = 0 : i64, scratch_operands = 0 : i64, tpu.core_type = #tpu.core_type<tc>, window_params = [{transform_indices = @transform_0, window_bounds = array<i64: 1, 8, 32>}, {transform_indices = @transform_1, window_bounds = array<i64: 1, 8, 32>}, {transform_indices = @transform_2, window_bounds = array<i64: 1, 1, 8>}, {transform_indices = @transform_3, window_bounds = array<i64: 1, 1, 8>}, {pipeline_mode = #tpu.pipeline_mode<synchronous>, transform_indices = @transform_4, window_bounds = array<i64: 2, 1, 32>}, {pipeline_mode = #tpu.pipeline_mode<synchronous>, transform_indices = @transform_5, window_bounds = array<i64: 2, 1, 32>}, {pipeline_mode = #tpu.pipeline_mode<synchronous>, transform_indices = @transform_6, window_bounds = array<i64: 2, 1, 32>}, {pipeline_mode = #tpu.pipeline_mode<synchronous>, transform_indices = @transform_7, window_bounds = array<i64: 2, 1, 32>}, {pipeline_mode = #tpu.pipeline_mode<synchronous>, transform_indices = @transform_8, window_bounds = array<i64: 2, 1, 32>}, {pipeline_mode = #tpu.pipeline_mode<synchronous>, transform_indices = @transform_9, window_bounds = array<i64: 2, 1, 32>}, {pipeline_mode = #tpu.pipeline_mode<synchronous>, transform_indices = @transform_10, window_bounds = array<i64: 2, 8, 32, 4>}, {pipeline_mode = #tpu.pipeline_mode<synchronous>, transform_indices = @transform_11, window_bounds = array<i64: 2, 8, 1, 4>}, {pipeline_mode = #tpu.pipeline_mode<synchronous>, transform_indices = @transform_12, window_bounds = array<i64: 2, 8, 32, 4>}, {pipeline_mode = #tpu.pipeline_mode<synchronous>, transform_indices = @transform_13, window_bounds = array<i64: 2, 8, 1, 4>}, {pipeline_mode = #tpu.pipeline_mode<synchronous>, transform_indices = @transform_14, window_bounds = array<i64: 2, 8, 32, 4>}, {pipeline_mode = #tpu.pipeline_mode<synchronous>, transform_indices = @transform_15, window_bounds = array<i64: 2, 8, 1, 4>}, {pipeline_mode = #tpu.pipeline_mode<synchronous>, transform_indices = @transform_16, window_bounds = array<i64: 2, 8, 4, 32>}, {pipeline_mode = #tpu.pipeline_mode<synchronous>, transform_indices = @transform_17, window_bounds = array<i64: 2, 1, 32>}, {pipeline_mode = #tpu.pipeline_mode<synchronous>, transform_indices = @transform_18, window_bounds = array<i64: 2, 32, 128>}, {pipeline_mode = #tpu.pipeline_mode<synchronous>, transform_indices = @transform_19, window_bounds = array<i64: 2, 1, 128>}, {pipeline_mode = #tpu.pipeline_mode<synchronous>, transform_indices = @transform_20, window_bounds = array<i64: 2, 128, 32>}, {pipeline_mode = #tpu.pipeline_mode<synchronous>, transform_indices = @transform_21, window_bounds = array<i64: 2, 1, 32>}, {pipeline_mode = #tpu.pipeline_mode<synchronous>, transform_indices = @transform_22, window_bounds = array<i64: 1, 32>}, {pipeline_mode = #tpu.pipeline_mode<synchronous>, transform_indices = @transform_23, window_bounds = array<i64: 1, 32>}, {transform_indices = @transform_24, window_bounds = array<i64: 1, 8, 32>}]} {
    %c0 = arith.constant 0 : index
    %c0_0 = arith.constant 0 : index
    %c0_1 = arith.constant 0 : index
    %0 = vector.load %arg1[%c0, %c0_0, %c0_1] : memref<1x8x32xf32, #tpu.memory_space<vmem>>, vector<1x8x32xf32>
    %1 = vector.shape_cast %0 : vector<1x8x32xf32> to vector<8x32xf32>
    %c0_2 = arith.constant 0 : index
    %c0_3 = arith.constant 0 : index
    %c0_4 = arith.constant 0 : index
    %2 = vector.load %arg2[%c0_2, %c0_3, %c0_4] : memref<1x8x32xf32, #tpu.memory_space<vmem>>, vector<1x8x32xf32>
    %3 = vector.shape_cast %2 : vector<1x8x32xf32> to vector<8x32xf32>
    %4 = tpu.iota {dimensions = array<i32: 0>} : vector<8x8xi32>
    %5 = tpu.iota {dimensions = array<i32: 1>} : vector<8x8xi32>
    %6 = arith.cmpi sle, %5, %4 : vector<8x8xi32>
    %c0_5 = arith.constant 0 : index
    %c0_6 = arith.constant 0 : index
    %c0_7 = arith.constant 0 : index
    %7 = vector.load %arg3[%c0_5, %c0_6, %c0_7] : memref<1x1x8xf32, #tpu.memory_space<vmem>>, vector<1x1x8xf32>
    %8 = vector.shape_cast %7 : vector<1x1x8xf32> to vector<1x8xf32>
    %cst = arith.constant 5.000000e-01 : f32
    %9 = vector.broadcast %cst : f32 to vector<1x8xf32>
    %10 = arith.cmpf ogt, %8, %9 : vector<1x8xf32>
    %11 = vector.broadcast %10 : vector<1x8xi1> to vector<8x8xi1>
    %12 = arith.andi %6, %11 : vector<8x8xi1>
    %c0_8 = arith.constant 0 : index
    %c0_9 = arith.constant 0 : index
    %c0_10 = arith.constant 0 : index
    %13 = vector.load %arg4[%c0_8, %c0_9, %c0_10] : memref<1x1x8xf32, #tpu.memory_space<vmem>>, vector<1x1x8xf32>
    %14 = vector.shape_cast %13 : vector<1x1x8xf32> to vector<1x8xf32>
    %cst_11 = arith.constant 5.000000e-01 : f32
    %15 = vector.broadcast %cst_11 : f32 to vector<1x8xf32>
    %16 = arith.cmpf ogt, %14, %15 : vector<1x8xf32>
    %17 = vector.shape_cast %3 : vector<8x32xf32> to vector<1x8x32xf32>
    %18 = vector.broadcast %17 : vector<1x8x32xf32> to vector<8x8x32xf32>
    %c0_12 = arith.constant 0 : index
    %c0_13 = arith.constant 0 : index
    %c0_14 = arith.constant 0 : index
    %19 = vector.load %arg5[%c0_12, %c0_13, %c0_14] : memref<2x1x32xf32, #tpu.memory_space<vmem>>, vector<1x1x32xf32>
    %20 = vector.shape_cast %19 : vector<1x1x32xf32> to vector<1x32xf32>
    %c0_15 = arith.constant 0 : index
    %c0_16 = arith.constant 0 : index
    %c0_17 = arith.constant 0 : index
    %21 = vector.load %arg6[%c0_15, %c0_16, %c0_17] : memref<2x1x32xf32, #tpu.memory_space<vmem>>, vector<1x1x32xf32>
    %22 = vector.shape_cast %21 : vector<1x1x32xf32> to vector<1x32xf32>
    %cst_18 = arith.constant dense<0.000000e+00> : vector<8xf32>
    %23 = vector.multi_reduction <add>, %1, %cst_18 [1] : vector<8x32xf32> to vector<8xf32>
    %24 = vector.shape_cast %23 : vector<8xf32> to vector<8x1xf32>
    %cst_19 = arith.constant 3.200000e+01 : f32
    %25 = vector.broadcast %cst_19 : f32 to vector<8x1xf32>
    %26 = arith.divf %24, %25 : vector<8x1xf32>
    %27 = vector.broadcast %26 : vector<8x1xf32> to vector<8x32xf32>
    %28 = arith.subf %1, %27 : vector<8x32xf32>
    %29 = arith.mulf %28, %28 : vector<8x32xf32>
    %cst_20 = arith.constant dense<0.000000e+00> : vector<8xf32>
    %30 = vector.multi_reduction <add>, %29, %cst_20 [1] : vector<8x32xf32> to vector<8xf32>
    %31 = vector.shape_cast %30 : vector<8xf32> to vector<8x1xf32>
    %cst_21 = arith.constant 3.200000e+01 : f32
    %32 = vector.broadcast %cst_21 : f32 to vector<8x1xf32>
    %33 = arith.divf %31, %32 : vector<8x1xf32>
    %34 = vector.broadcast %26 : vector<8x1xf32> to vector<8x32xf32>
    %35 = arith.subf %1, %34 : vector<8x32xf32>
    %cst_22 = arith.constant 9.99999974E-6 : f32
    %36 = vector.broadcast %cst_22 : f32 to vector<8x1xf32>
    %37 = arith.addf %33, %36 : vector<8x1xf32>
    %38 = math.rsqrt %37 : vector<8x1xf32>
    %39 = vector.broadcast %38 : vector<8x1xf32> to vector<8x32xf32>
    %40 = arith.mulf %35, %39 : vector<8x32xf32>
    %41 = vector.broadcast %20 : vector<1x32xf32> to vector<8x32xf32>
    %42 = arith.mulf %40, %41 : vector<8x32xf32>
    %43 = vector.broadcast %22 : vector<1x32xf32> to vector<8x32xf32>
    %44 = arith.addf %42, %43 : vector<8x32xf32>
    %45 = vector.shape_cast %44 : vector<8x32xf32> to vector<1x8x32xf32>
    %46 = vector.broadcast %45 : vector<1x8x32xf32> to vector<8x8x32xf32>
    %47 = vector.shape_cast %44 : vector<8x32xf32> to vector<1x8x32xf32>
    %48 = vector.broadcast %47 : vector<1x8x32xf32> to vector<8x8x32xf32>
    %c0_23 = arith.constant 0 : index
    %c0_24 = arith.constant 0 : index
    %c0_25 = arith.constant 0 : index
    %c0_26 = arith.constant 0 : index
    %49 = vector.load %arg11[%c0_23, %c0_24, %c0_25, %c0_26] : memref<2x8x32x4xf32, #tpu.memory_space<vmem>>, vector<1x8x32x4xf32>
    %50 = vector.shape_cast %49 : vector<1x8x32x4xf32> to vector<8x32x4xf32>
    "tpu.trace_start"() <{level = 10 : i32, message = "hsd,hde->hse"}> : () -> ()
    %cst_27 = arith.constant dense<0.000000e+00> : vector<8x8x4xf32>
    %51 = tpu.matmul %48, %50, %cst_27 {dimension_numbers = #tpu.dot_dimension_numbers<[2], [1], [1], [2], [0, 0, 0, 1, 1, 2], [0], [0]>} : vector<8x8x32xf32>, vector<8x32x4xf32>, vector<8x8x4xf32> -> vector<8x8x4xf32>
    "tpu.trace_stop"() : () -> ()
    %c0_28 = arith.constant 0 : index
    %c0_29 = arith.constant 0 : index
    %c0_30 = arith.constant 0 : index
    %c0_31 = arith.constant 0 : index
    %52 = vector.load %arg12[%c0_28, %c0_29, %c0_30, %c0_31] : memref<2x8x1x4xf32, #tpu.memory_space<vmem>>, vector<1x8x1x4xf32>
    %53 = vector.shape_cast %52 : vector<1x8x1x4xf32> to vector<8x1x4xf32>
    %54 = vector.broadcast %53 : vector<8x1x4xf32> to vector<8x8x4xf32>
    %55 = arith.addf %51, %54 : vector<8x8x4xf32>
    %c0_32 = arith.constant 0 : index
    %c0_33 = arith.constant 0 : index
    %c0_34 = arith.constant 0 : index
    %c0_35 = arith.constant 0 : index
    %56 = vector.load %arg13[%c0_32, %c0_33, %c0_34, %c0_35] : memref<2x8x32x4xf32, #tpu.memory_space<vmem>>, vector<1x8x32x4xf32>
    %57 = vector.shape_cast %56 : vector<1x8x32x4xf32> to vector<8x32x4xf32>
    "tpu.trace_start"() <{level = 10 : i32, message = "hsd,hde->hse"}> : () -> ()
    %cst_36 = arith.constant dense<0.000000e+00> : vector<8x8x4xf32>
    %58 = tpu.matmul %46, %57, %cst_36 {dimension_numbers = #tpu.dot_dimension_numbers<[2], [1], [1], [2], [0, 0, 0, 1, 1, 2], [0], [0]>} : vector<8x8x32xf32>, vector<8x32x4xf32>, vector<8x8x4xf32> -> vector<8x8x4xf32>
    "tpu.trace_stop"() : () -> ()
    %c0_37 = arith.constant 0 : index
    %c0_38 = arith.constant 0 : index
    %c0_39 = arith.constant 0 : index
    %c0_40 = arith.constant 0 : index
    %59 = vector.load %arg14[%c0_37, %c0_38, %c0_39, %c0_40] : memref<2x8x1x4xf32, #tpu.memory_space<vmem>>, vector<1x8x1x4xf32>
    %60 = vector.shape_cast %59 : vector<1x8x1x4xf32> to vector<8x1x4xf32>
    %61 = vector.broadcast %60 : vector<8x1x4xf32> to vector<8x8x4xf32>
    %62 = arith.addf %58, %61 : vector<8x8x4xf32>
    %c0_41 = arith.constant 0 : index
    %c0_42 = arith.constant 0 : index
    %c0_43 = arith.constant 0 : index
    %c0_44 = arith.constant 0 : index
    %63 = vector.load %arg15[%c0_41, %c0_42, %c0_43, %c0_44] : memref<2x8x32x4xf32, #tpu.memory_space<vmem>>, vector<1x8x32x4xf32>
    %64 = vector.shape_cast %63 : vector<1x8x32x4xf32> to vector<8x32x4xf32>
    "tpu.trace_start"() <{level = 10 : i32, message = "hsd,hde->hse"}> : () -> ()
    %cst_45 = arith.constant dense<0.000000e+00> : vector<8x8x4xf32>
    %65 = tpu.matmul %46, %64, %cst_45 {dimension_numbers = #tpu.dot_dimension_numbers<[2], [1], [1], [2], [0, 0, 0, 1, 1, 2], [0], [0]>} : vector<8x8x32xf32>, vector<8x32x4xf32>, vector<8x8x4xf32> -> vector<8x8x4xf32>
    "tpu.trace_stop"() : () -> ()
    %c0_46 = arith.constant 0 : index
    %c0_47 = arith.constant 0 : index
    %c0_48 = arith.constant 0 : index
    %c0_49 = arith.constant 0 : index
    %66 = vector.load %arg16[%c0_46, %c0_47, %c0_48, %c0_49] : memref<2x8x1x4xf32, #tpu.memory_space<vmem>>, vector<1x8x1x4xf32>
    %67 = vector.shape_cast %66 : vector<1x8x1x4xf32> to vector<8x1x4xf32>
    %68 = vector.broadcast %67 : vector<8x1x4xf32> to vector<8x8x4xf32>
    %69 = arith.addf %65, %68 : vector<8x8x4xf32>
    "tpu.trace_start"() <{level = 10 : i32, message = "hqd,hkd->hqk"}> : () -> ()
    %cst_50 = arith.constant dense<0.000000e+00> : vector<8x8x8xf32>
    %70 = tpu.matmul %55, %62, %cst_50 {dimension_numbers = #tpu.dot_dimension_numbers<[2], [2], [1], [1], [0, 0, 0, 1, 1, 1], [0], [0]>} : vector<8x8x4xf32>, vector<8x8x4xf32>, vector<8x8x8xf32> -> vector<8x8x8xf32>
    %cst_51 = arith.constant -1.000000e+09 : f32
    "tpu.trace_stop"() : () -> ()
    %71 = vector.shape_cast %12 : vector<8x8xi1> to vector<1x8x8xi1>
    %72 = vector.broadcast %71 : vector<1x8x8xi1> to vector<8x8x8xi1>
    %73 = vector.broadcast %cst_51 : f32 to vector<8x8x8xf32>
    %74 = arith.select %72, %70, %73 : vector<8x8x8xi1>, vector<8x8x8xf32>
    %cst_52 = arith.constant dense<0xFF800000> : vector<8x8xf32>
    %75 = vector.multi_reduction <maximumf>, %74, %cst_52 [2] : vector<8x8x8xf32> to vector<8x8xf32>
    %76 = vector.shape_cast %75 : vector<8x8xf32> to vector<8x8x1xf32>
    %77 = vector.broadcast %76 : vector<8x8x1xf32> to vector<8x8x8xf32>
    %78 = arith.subf %74, %77 : vector<8x8x8xf32>
    %79 = math.exp %78 : vector<8x8x8xf32>
    %cst_53 = arith.constant dense<0.000000e+00> : vector<8x8xf32>
    %80 = vector.multi_reduction <add>, %79, %cst_53 [2] : vector<8x8x8xf32> to vector<8x8xf32>
    %81 = vector.shape_cast %80 : vector<8x8xf32> to vector<8x8x1xf32>
    %82 = tpu.reciprocal %81 {approx = true} : vector<8x8x1xf32> -> vector<8x8x1xf32>
    %83 = vector.broadcast %82 : vector<8x8x1xf32> to vector<8x8x8xf32>
    %84 = arith.mulf %79, %83 : vector<8x8x8xf32>
    "tpu.trace_start"() <{level = 10 : i32, message = "hqk,hkd->hqd"}> : () -> ()
    %cst_54 = arith.constant dense<0.000000e+00> : vector<8x8x4xf32>
    %85 = tpu.matmul %84, %69, %cst_54 {dimension_numbers = #tpu.dot_dimension_numbers<[2], [1], [1], [2], [0, 0, 0, 1, 1, 2], [0], [0]>} : vector<8x8x8xf32>, vector<8x8x4xf32>, vector<8x8x4xf32> -> vector<8x8x4xf32>
    "tpu.trace_stop"() : () -> ()
    %c0_55 = arith.constant 0 : index
    %c0_56 = arith.constant 0 : index
    %c0_57 = arith.constant 0 : index
    %c0_58 = arith.constant 0 : index
    %86 = vector.load %arg17[%c0_55, %c0_56, %c0_57, %c0_58] : memref<2x8x4x32xf32, #tpu.memory_space<vmem>>, vector<1x8x4x32xf32>
    %87 = vector.shape_cast %86 : vector<1x8x4x32xf32> to vector<8x4x32xf32>
    "tpu.trace_start"() <{level = 10 : i32, message = "hqd,hdo->hqo"}> : () -> ()
    %cst_59 = arith.constant dense<0.000000e+00> : vector<8x8x32xf32>
    %88 = tpu.matmul %85, %87, %cst_59 {dimension_numbers = #tpu.dot_dimension_numbers<[2], [1], [1], [2], [0, 0, 0, 1, 1, 2], [0], [0]>} : vector<8x8x4xf32>, vector<8x4x32xf32>, vector<8x8x32xf32> -> vector<8x8x32xf32>
    "tpu.trace_stop"() : () -> ()
    %cst_60 = arith.constant dense<0.000000e+00> : vector<8x32xf32>
    %89 = vector.multi_reduction <add>, %88, %cst_60 [0] : vector<8x8x32xf32> to vector<8x32xf32>
    %c0_61 = arith.constant 0 : index
    %c0_62 = arith.constant 0 : index
    %c0_63 = arith.constant 0 : index
    %90 = vector.load %arg18[%c0_61, %c0_62, %c0_63] : memref<2x1x32xf32, #tpu.memory_space<vmem>>, vector<1x1x32xf32>
    %91 = vector.shape_cast %90 : vector<1x1x32xf32> to vector<1x32xf32>
    %92 = vector.broadcast %91 : vector<1x32xf32> to vector<8x32xf32>
    %93 = arith.addf %89, %92 : vector<8x32xf32>
    %94 = arith.addf %1, %93 : vector<8x32xf32>
    %c0_64 = arith.constant 0 : index
    %c0_65 = arith.constant 0 : index
    %c0_66 = arith.constant 0 : index
    %95 = vector.load %arg7[%c0_64, %c0_65, %c0_66] : memref<2x1x32xf32, #tpu.memory_space<vmem>>, vector<1x1x32xf32>
    %96 = vector.shape_cast %95 : vector<1x1x32xf32> to vector<1x32xf32>
    %c0_67 = arith.constant 0 : index
    %c0_68 = arith.constant 0 : index
    %c0_69 = arith.constant 0 : index
    %97 = vector.load %arg8[%c0_67, %c0_68, %c0_69] : memref<2x1x32xf32, #tpu.memory_space<vmem>>, vector<1x1x32xf32>
    %98 = vector.shape_cast %97 : vector<1x1x32xf32> to vector<1x32xf32>
    %cst_70 = arith.constant dense<0.000000e+00> : vector<8xf32>
    %99 = vector.multi_reduction <add>, %94, %cst_70 [1] : vector<8x32xf32> to vector<8xf32>
    %100 = vector.shape_cast %99 : vector<8xf32> to vector<8x1xf32>
    %cst_71 = arith.constant 3.200000e+01 : f32
    %101 = vector.broadcast %cst_71 : f32 to vector<8x1xf32>
    %102 = arith.divf %100, %101 : vector<8x1xf32>
    %103 = vector.broadcast %102 : vector<8x1xf32> to vector<8x32xf32>
    %104 = arith.subf %94, %103 : vector<8x32xf32>
    %105 = arith.mulf %104, %104 : vector<8x32xf32>
    %cst_72 = arith.constant dense<0.000000e+00> : vector<8xf32>
    %106 = vector.multi_reduction <add>, %105, %cst_72 [1] : vector<8x32xf32> to vector<8xf32>
    %107 = vector.shape_cast %106 : vector<8xf32> to vector<8x1xf32>
    %cst_73 = arith.constant 3.200000e+01 : f32
    %108 = vector.broadcast %cst_73 : f32 to vector<8x1xf32>
    %109 = arith.divf %107, %108 : vector<8x1xf32>
    %110 = vector.broadcast %102 : vector<8x1xf32> to vector<8x32xf32>
    %111 = arith.subf %94, %110 : vector<8x32xf32>
    %cst_74 = arith.constant 9.99999974E-6 : f32
    %112 = vector.broadcast %cst_74 : f32 to vector<8x1xf32>
    %113 = arith.addf %109, %112 : vector<8x1xf32>
    %114 = math.rsqrt %113 : vector<8x1xf32>
    %115 = vector.broadcast %114 : vector<8x1xf32> to vector<8x32xf32>
    %116 = arith.mulf %111, %115 : vector<8x32xf32>
    %117 = vector.broadcast %96 : vector<1x32xf32> to vector<8x32xf32>
    %118 = arith.mulf %116, %117 : vector<8x32xf32>
    %119 = vector.broadcast %98 : vector<1x32xf32> to vector<8x32xf32>
    %120 = arith.addf %118, %119 : vector<8x32xf32>
    %121 = vector.shape_cast %120 : vector<8x32xf32> to vector<1x8x32xf32>
    %122 = vector.broadcast %121 : vector<1x8x32xf32> to vector<8x8x32xf32>
    %c0_75 = arith.constant 0 : index
    %c0_76 = arith.constant 0 : index
    %c0_77 = arith.constant 0 : index
    %c0_78 = arith.constant 0 : index
    %123 = vector.load %arg11[%c0_75, %c0_76, %c0_77, %c0_78] : memref<2x8x32x4xf32, #tpu.memory_space<vmem>>, vector<1x8x32x4xf32>
    %124 = vector.shape_cast %123 : vector<1x8x32x4xf32> to vector<8x32x4xf32>
    "tpu.trace_start"() <{level = 10 : i32, message = "hsd,hde->hse"}> : () -> ()
    %cst_79 = arith.constant dense<0.000000e+00> : vector<8x8x4xf32>
    %125 = tpu.matmul %122, %124, %cst_79 {dimension_numbers = #tpu.dot_dimension_numbers<[2], [1], [1], [2], [0, 0, 0, 1, 1, 2], [0], [0]>} : vector<8x8x32xf32>, vector<8x32x4xf32>, vector<8x8x4xf32> -> vector<8x8x4xf32>
    "tpu.trace_stop"() : () -> ()
    %c0_80 = arith.constant 0 : index
    %c0_81 = arith.constant 0 : index
    %c0_82 = arith.constant 0 : index
    %c0_83 = arith.constant 0 : index
    %126 = vector.load %arg12[%c0_80, %c0_81, %c0_82, %c0_83] : memref<2x8x1x4xf32, #tpu.memory_space<vmem>>, vector<1x8x1x4xf32>
    %127 = vector.shape_cast %126 : vector<1x8x1x4xf32> to vector<8x1x4xf32>
    %128 = vector.broadcast %127 : vector<8x1x4xf32> to vector<8x8x4xf32>
    %129 = arith.addf %125, %128 : vector<8x8x4xf32>
    %c0_84 = arith.constant 0 : index
    %c0_85 = arith.constant 0 : index
    %c0_86 = arith.constant 0 : index
    %c0_87 = arith.constant 0 : index
    %130 = vector.load %arg13[%c0_84, %c0_85, %c0_86, %c0_87] : memref<2x8x32x4xf32, #tpu.memory_space<vmem>>, vector<1x8x32x4xf32>
    %131 = vector.shape_cast %130 : vector<1x8x32x4xf32> to vector<8x32x4xf32>
    "tpu.trace_start"() <{level = 10 : i32, message = "hsd,hde->hse"}> : () -> ()
    %cst_88 = arith.constant dense<0.000000e+00> : vector<8x8x4xf32>
    %132 = tpu.matmul %18, %131, %cst_88 {dimension_numbers = #tpu.dot_dimension_numbers<[2], [1], [1], [2], [0, 0, 0, 1, 1, 2], [0], [0]>} : vector<8x8x32xf32>, vector<8x32x4xf32>, vector<8x8x4xf32> -> vector<8x8x4xf32>
    "tpu.trace_stop"() : () -> ()
    %c0_89 = arith.constant 0 : index
    %c0_90 = arith.constant 0 : index
    %c0_91 = arith.constant 0 : index
    %c0_92 = arith.constant 0 : index
    %133 = vector.load %arg14[%c0_89, %c0_90, %c0_91, %c0_92] : memref<2x8x1x4xf32, #tpu.memory_space<vmem>>, vector<1x8x1x4xf32>
    %134 = vector.shape_cast %133 : vector<1x8x1x4xf32> to vector<8x1x4xf32>
    %135 = vector.broadcast %134 : vector<8x1x4xf32> to vector<8x8x4xf32>
    %136 = arith.addf %132, %135 : vector<8x8x4xf32>
    %c0_93 = arith.constant 0 : index
    %c0_94 = arith.constant 0 : index
    %c0_95 = arith.constant 0 : index
    %c0_96 = arith.constant 0 : index
    %137 = vector.load %arg15[%c0_93, %c0_94, %c0_95, %c0_96] : memref<2x8x32x4xf32, #tpu.memory_space<vmem>>, vector<1x8x32x4xf32>
    %138 = vector.shape_cast %137 : vector<1x8x32x4xf32> to vector<8x32x4xf32>
    "tpu.trace_start"() <{level = 10 : i32, message = "hsd,hde->hse"}> : () -> ()
    %cst_97 = arith.constant dense<0.000000e+00> : vector<8x8x4xf32>
    %139 = tpu.matmul %18, %138, %cst_97 {dimension_numbers = #tpu.dot_dimension_numbers<[2], [1], [1], [2], [0, 0, 0, 1, 1, 2], [0], [0]>} : vector<8x8x32xf32>, vector<8x32x4xf32>, vector<8x8x4xf32> -> vector<8x8x4xf32>
    "tpu.trace_stop"() : () -> ()
    %c0_98 = arith.constant 0 : index
    %c0_99 = arith.constant 0 : index
    %c0_100 = arith.constant 0 : index
    %c0_101 = arith.constant 0 : index
    %140 = vector.load %arg16[%c0_98, %c0_99, %c0_100, %c0_101] : memref<2x8x1x4xf32, #tpu.memory_space<vmem>>, vector<1x8x1x4xf32>
    %141 = vector.shape_cast %140 : vector<1x8x1x4xf32> to vector<8x1x4xf32>
    %142 = vector.broadcast %141 : vector<8x1x4xf32> to vector<8x8x4xf32>
    %143 = arith.addf %139, %142 : vector<8x8x4xf32>
    "tpu.trace_start"() <{level = 10 : i32, message = "hqd,hkd->hqk"}> : () -> ()
    %cst_102 = arith.constant dense<0.000000e+00> : vector<8x8x8xf32>
    %144 = tpu.matmul %129, %136, %cst_102 {dimension_numbers = #tpu.dot_dimension_numbers<[2], [2], [1], [1], [0, 0, 0, 1, 1, 1], [0], [0]>} : vector<8x8x4xf32>, vector<8x8x4xf32>, vector<8x8x8xf32> -> vector<8x8x8xf32>
    %cst_103 = arith.constant -1.000000e+09 : f32
    "tpu.trace_stop"() : () -> ()
    %145 = vector.shape_cast %16 : vector<1x8xi1> to vector<1x1x8xi1>
    %146 = vector.broadcast %145 : vector<1x1x8xi1> to vector<8x8x8xi1>
    %147 = vector.broadcast %cst_103 : f32 to vector<8x8x8xf32>
    %148 = arith.select %146, %144, %147 : vector<8x8x8xi1>, vector<8x8x8xf32>
    %cst_104 = arith.constant dense<0xFF800000> : vector<8x8xf32>
    %149 = vector.multi_reduction <maximumf>, %148, %cst_104 [2] : vector<8x8x8xf32> to vector<8x8xf32>
    %150 = vector.shape_cast %149 : vector<8x8xf32> to vector<8x8x1xf32>
    %151 = vector.broadcast %150 : vector<8x8x1xf32> to vector<8x8x8xf32>
    %152 = arith.subf %148, %151 : vector<8x8x8xf32>
    %153 = math.exp %152 : vector<8x8x8xf32>
    %cst_105 = arith.constant dense<0.000000e+00> : vector<8x8xf32>
    %154 = vector.multi_reduction <add>, %153, %cst_105 [2] : vector<8x8x8xf32> to vector<8x8xf32>
    %155 = vector.shape_cast %154 : vector<8x8xf32> to vector<8x8x1xf32>
    %156 = tpu.reciprocal %155 {approx = true} : vector<8x8x1xf32> -> vector<8x8x1xf32>
    %157 = vector.broadcast %156 : vector<8x8x1xf32> to vector<8x8x8xf32>
    %158 = arith.mulf %153, %157 : vector<8x8x8xf32>
    "tpu.trace_start"() <{level = 10 : i32, message = "hqk,hkd->hqd"}> : () -> ()
    %cst_106 = arith.constant dense<0.000000e+00> : vector<8x8x4xf32>
    %159 = tpu.matmul %158, %143, %cst_106 {dimension_numbers = #tpu.dot_dimension_numbers<[2], [1], [1], [2], [0, 0, 0, 1, 1, 2], [0], [0]>} : vector<8x8x8xf32>, vector<8x8x4xf32>, vector<8x8x4xf32> -> vector<8x8x4xf32>
    "tpu.trace_stop"() : () -> ()
    %c0_107 = arith.constant 0 : index
    %c0_108 = arith.constant 0 : index
    %c0_109 = arith.constant 0 : index
    %c0_110 = arith.constant 0 : index
    %160 = vector.load %arg17[%c0_107, %c0_108, %c0_109, %c0_110] : memref<2x8x4x32xf32, #tpu.memory_space<vmem>>, vector<1x8x4x32xf32>
    %161 = vector.shape_cast %160 : vector<1x8x4x32xf32> to vector<8x4x32xf32>
    "tpu.trace_start"() <{level = 10 : i32, message = "hqd,hdo->hqo"}> : () -> ()
    %cst_111 = arith.constant dense<0.000000e+00> : vector<8x8x32xf32>
    %162 = tpu.matmul %159, %161, %cst_111 {dimension_numbers = #tpu.dot_dimension_numbers<[2], [1], [1], [2], [0, 0, 0, 1, 1, 2], [0], [0]>} : vector<8x8x4xf32>, vector<8x4x32xf32>, vector<8x8x32xf32> -> vector<8x8x32xf32>
    "tpu.trace_stop"() : () -> ()
    %cst_112 = arith.constant dense<0.000000e+00> : vector<8x32xf32>
    %163 = vector.multi_reduction <add>, %162, %cst_112 [0] : vector<8x8x32xf32> to vector<8x32xf32>
    %c0_113 = arith.constant 0 : index
    %c0_114 = arith.constant 0 : index
    %c0_115 = arith.constant 0 : index
    %164 = vector.load %arg18[%c0_113, %c0_114, %c0_115] : memref<2x1x32xf32, #tpu.memory_space<vmem>>, vector<1x1x32xf32>
    %165 = vector.shape_cast %164 : vector<1x1x32xf32> to vector<1x32xf32>
    %166 = vector.broadcast %165 : vector<1x32xf32> to vector<8x32xf32>
    %167 = arith.addf %163, %166 : vector<8x32xf32>
    %168 = arith.addf %94, %167 : vector<8x32xf32>
    %c0_116 = arith.constant 0 : index
    %c0_117 = arith.constant 0 : index
    %c0_118 = arith.constant 0 : index
    %169 = vector.load %arg9[%c0_116, %c0_117, %c0_118] : memref<2x1x32xf32, #tpu.memory_space<vmem>>, vector<1x1x32xf32>
    %170 = vector.shape_cast %169 : vector<1x1x32xf32> to vector<1x32xf32>
    %c0_119 = arith.constant 0 : index
    %c0_120 = arith.constant 0 : index
    %c0_121 = arith.constant 0 : index
    %171 = vector.load %arg10[%c0_119, %c0_120, %c0_121] : memref<2x1x32xf32, #tpu.memory_space<vmem>>, vector<1x1x32xf32>
    %172 = vector.shape_cast %171 : vector<1x1x32xf32> to vector<1x32xf32>
    %cst_122 = arith.constant dense<0.000000e+00> : vector<8xf32>
    %173 = vector.multi_reduction <add>, %168, %cst_122 [1] : vector<8x32xf32> to vector<8xf32>
    %174 = vector.shape_cast %173 : vector<8xf32> to vector<8x1xf32>
    %cst_123 = arith.constant 3.200000e+01 : f32
    %175 = vector.broadcast %cst_123 : f32 to vector<8x1xf32>
    %176 = arith.divf %174, %175 : vector<8x1xf32>
    %177 = vector.broadcast %176 : vector<8x1xf32> to vector<8x32xf32>
    %178 = arith.subf %168, %177 : vector<8x32xf32>
    %179 = arith.mulf %178, %178 : vector<8x32xf32>
    %cst_124 = arith.constant dense<0.000000e+00> : vector<8xf32>
    %180 = vector.multi_reduction <add>, %179, %cst_124 [1] : vector<8x32xf32> to vector<8xf32>
    %181 = vector.shape_cast %180 : vector<8xf32> to vector<8x1xf32>
    %cst_125 = arith.constant 3.200000e+01 : f32
    %182 = vector.broadcast %cst_125 : f32 to vector<8x1xf32>
    %183 = arith.divf %181, %182 : vector<8x1xf32>
    %184 = vector.broadcast %176 : vector<8x1xf32> to vector<8x32xf32>
    %185 = arith.subf %168, %184 : vector<8x32xf32>
    %cst_126 = arith.constant 9.99999974E-6 : f32
    %186 = vector.broadcast %cst_126 : f32 to vector<8x1xf32>
    %187 = arith.addf %183, %186 : vector<8x1xf32>
    %188 = math.rsqrt %187 : vector<8x1xf32>
    %189 = vector.broadcast %188 : vector<8x1xf32> to vector<8x32xf32>
    %190 = arith.mulf %185, %189 : vector<8x32xf32>
    %191 = vector.broadcast %170 : vector<1x32xf32> to vector<8x32xf32>
    %192 = arith.mulf %190, %191 : vector<8x32xf32>
    %193 = vector.broadcast %172 : vector<1x32xf32> to vector<8x32xf32>
    %194 = arith.addf %192, %193 : vector<8x32xf32>
    %c0_127 = arith.constant 0 : index
    %c0_128 = arith.constant 0 : index
    %c0_129 = arith.constant 0 : index
    %195 = vector.load %arg19[%c0_127, %c0_128, %c0_129] : memref<2x32x128xf32, #tpu.memory_space<vmem>>, vector<1x32x128xf32>
    %196 = vector.shape_cast %195 : vector<1x32x128xf32> to vector<32x128xf32>
    %cst_130 = arith.constant dense<0.000000e+00> : vector<8x128xf32>
    %197 = tpu.matmul %194, %196, %cst_130 {dimension_numbers = #tpu.dot_dimension_numbers<[1], [0], [0], [1], [0, 0, 1, 1], [], []>} : vector<8x32xf32>, vector<32x128xf32>, vector<8x128xf32> -> vector<8x128xf32>
    %c0_131 = arith.constant 0 : index
    %c0_132 = arith.constant 0 : index
    %c0_133 = arith.constant 0 : index
    %198 = vector.load %arg20[%c0_131, %c0_132, %c0_133] : memref<2x1x128xf32, #tpu.memory_space<vmem>>, vector<1x1x128xf32>
    %199 = vector.shape_cast %198 : vector<1x1x128xf32> to vector<1x128xf32>
    %200 = vector.broadcast %199 : vector<1x128xf32> to vector<8x128xf32>
    %201 = arith.addf %197, %200 : vector<8x128xf32>
    %cst_134 = arith.constant 0.000000e+00 : f32
    %202 = vector.broadcast %cst_134 : f32 to vector<8x128xf32>
    %203 = arith.maximumf %201, %202 : vector<8x128xf32>
    %c0_135 = arith.constant 0 : index
    %c0_136 = arith.constant 0 : index
    %c0_137 = arith.constant 0 : index
    %204 = vector.load %arg21[%c0_135, %c0_136, %c0_137] : memref<2x128x32xf32, #tpu.memory_space<vmem>>, vector<1x128x32xf32>
    %205 = vector.shape_cast %204 : vector<1x128x32xf32> to vector<128x32xf32>
    %cst_138 = arith.constant dense<0.000000e+00> : vector<8x32xf32>
    %206 = tpu.matmul %203, %205, %cst_138 {dimension_numbers = #tpu.dot_dimension_numbers<[1], [0], [0], [1], [0, 0, 1, 1], [], []>} : vector<8x128xf32>, vector<128x32xf32>, vector<8x32xf32> -> vector<8x32xf32>
    %207 = arith.addf %168, %206 : vector<8x32xf32>
    %c0_139 = arith.constant 0 : index
    %c0_140 = arith.constant 0 : index
    %c0_141 = arith.constant 0 : index
    %208 = vector.load %arg22[%c0_139, %c0_140, %c0_141] : memref<2x1x32xf32, #tpu.memory_space<vmem>>, vector<1x1x32xf32>
    %209 = vector.shape_cast %208 : vector<1x1x32xf32> to vector<1x32xf32>
    %210 = vector.broadcast %209 : vector<1x32xf32> to vector<8x32xf32>
    %211 = arith.addf %207, %210 : vector<8x32xf32>
    %c1 = arith.constant 1 : index
    %c0_142 = arith.constant 0 : index
    %c0_143 = arith.constant 0 : index
    %212 = vector.load %arg5[%c1, %c0_142, %c0_143] : memref<2x1x32xf32, #tpu.memory_space<vmem>>, vector<1x1x32xf32>
    %213 = vector.shape_cast %212 : vector<1x1x32xf32> to vector<1x32xf32>
    %c1_144 = arith.constant 1 : index
    %c0_145 = arith.constant 0 : index
    %c0_146 = arith.constant 0 : index
    %214 = vector.load %arg6[%c1_144, %c0_145, %c0_146] : memref<2x1x32xf32, #tpu.memory_space<vmem>>, vector<1x1x32xf32>
    %215 = vector.shape_cast %214 : vector<1x1x32xf32> to vector<1x32xf32>
    %cst_147 = arith.constant dense<0.000000e+00> : vector<8xf32>
    %216 = vector.multi_reduction <add>, %211, %cst_147 [1] : vector<8x32xf32> to vector<8xf32>
    %217 = vector.shape_cast %216 : vector<8xf32> to vector<8x1xf32>
    %cst_148 = arith.constant 3.200000e+01 : f32
    %218 = vector.broadcast %cst_148 : f32 to vector<8x1xf32>
    %219 = arith.divf %217, %218 : vector<8x1xf32>
    %220 = vector.broadcast %219 : vector<8x1xf32> to vector<8x32xf32>
    %221 = arith.subf %211, %220 : vector<8x32xf32>
    %222 = arith.mulf %221, %221 : vector<8x32xf32>
    %cst_149 = arith.constant dense<0.000000e+00> : vector<8xf32>
    %223 = vector.multi_reduction <add>, %222, %cst_149 [1] : vector<8x32xf32> to vector<8xf32>
    %224 = vector.shape_cast %223 : vector<8xf32> to vector<8x1xf32>
    %cst_150 = arith.constant 3.200000e+01 : f32
    %225 = vector.broadcast %cst_150 : f32 to vector<8x1xf32>
    %226 = arith.divf %224, %225 : vector<8x1xf32>
    %227 = vector.broadcast %219 : vector<8x1xf32> to vector<8x32xf32>
    %228 = arith.subf %211, %227 : vector<8x32xf32>
    %cst_151 = arith.constant 9.99999974E-6 : f32
    %229 = vector.broadcast %cst_151 : f32 to vector<8x1xf32>
    %230 = arith.addf %226, %229 : vector<8x1xf32>
    %231 = math.rsqrt %230 : vector<8x1xf32>
    %232 = vector.broadcast %231 : vector<8x1xf32> to vector<8x32xf32>
    %233 = arith.mulf %228, %232 : vector<8x32xf32>
    %234 = vector.broadcast %213 : vector<1x32xf32> to vector<8x32xf32>
    %235 = arith.mulf %233, %234 : vector<8x32xf32>
    %236 = vector.broadcast %215 : vector<1x32xf32> to vector<8x32xf32>
    %237 = arith.addf %235, %236 : vector<8x32xf32>
    %238 = vector.shape_cast %237 : vector<8x32xf32> to vector<1x8x32xf32>
    %239 = vector.broadcast %238 : vector<1x8x32xf32> to vector<8x8x32xf32>
    %240 = vector.shape_cast %237 : vector<8x32xf32> to vector<1x8x32xf32>
    %241 = vector.broadcast %240 : vector<1x8x32xf32> to vector<8x8x32xf32>
    %c1_152 = arith.constant 1 : index
    %c0_153 = arith.constant 0 : index
    %c0_154 = arith.constant 0 : index
    %c0_155 = arith.constant 0 : index
    %242 = vector.load %arg11[%c1_152, %c0_153, %c0_154, %c0_155] : memref<2x8x32x4xf32, #tpu.memory_space<vmem>>, vector<1x8x32x4xf32>
    %243 = vector.shape_cast %242 : vector<1x8x32x4xf32> to vector<8x32x4xf32>
    "tpu.trace_start"() <{level = 10 : i32, message = "hsd,hde->hse"}> : () -> ()
    %cst_156 = arith.constant dense<0.000000e+00> : vector<8x8x4xf32>
    %244 = tpu.matmul %241, %243, %cst_156 {dimension_numbers = #tpu.dot_dimension_numbers<[2], [1], [1], [2], [0, 0, 0, 1, 1, 2], [0], [0]>} : vector<8x8x32xf32>, vector<8x32x4xf32>, vector<8x8x4xf32> -> vector<8x8x4xf32>
    "tpu.trace_stop"() : () -> ()
    %c1_157 = arith.constant 1 : index
    %c0_158 = arith.constant 0 : index
    %c0_159 = arith.constant 0 : index
    %c0_160 = arith.constant 0 : index
    %245 = vector.load %arg12[%c1_157, %c0_158, %c0_159, %c0_160] : memref<2x8x1x4xf32, #tpu.memory_space<vmem>>, vector<1x8x1x4xf32>
    %246 = vector.shape_cast %245 : vector<1x8x1x4xf32> to vector<8x1x4xf32>
    %247 = vector.broadcast %246 : vector<8x1x4xf32> to vector<8x8x4xf32>
    %248 = arith.addf %244, %247 : vector<8x8x4xf32>
    %c1_161 = arith.constant 1 : index
    %c0_162 = arith.constant 0 : index
    %c0_163 = arith.constant 0 : index
    %c0_164 = arith.constant 0 : index
    %249 = vector.load %arg13[%c1_161, %c0_162, %c0_163, %c0_164] : memref<2x8x32x4xf32, #tpu.memory_space<vmem>>, vector<1x8x32x4xf32>
    %250 = vector.shape_cast %249 : vector<1x8x32x4xf32> to vector<8x32x4xf32>
    "tpu.trace_start"() <{level = 10 : i32, message = "hsd,hde->hse"}> : () -> ()
    %cst_165 = arith.constant dense<0.000000e+00> : vector<8x8x4xf32>
    %251 = tpu.matmul %239, %250, %cst_165 {dimension_numbers = #tpu.dot_dimension_numbers<[2], [1], [1], [2], [0, 0, 0, 1, 1, 2], [0], [0]>} : vector<8x8x32xf32>, vector<8x32x4xf32>, vector<8x8x4xf32> -> vector<8x8x4xf32>
    "tpu.trace_stop"() : () -> ()
    %c1_166 = arith.constant 1 : index
    %c0_167 = arith.constant 0 : index
    %c0_168 = arith.constant 0 : index
    %c0_169 = arith.constant 0 : index
    %252 = vector.load %arg14[%c1_166, %c0_167, %c0_168, %c0_169] : memref<2x8x1x4xf32, #tpu.memory_space<vmem>>, vector<1x8x1x4xf32>
    %253 = vector.shape_cast %252 : vector<1x8x1x4xf32> to vector<8x1x4xf32>
    %254 = vector.broadcast %253 : vector<8x1x4xf32> to vector<8x8x4xf32>
    %255 = arith.addf %251, %254 : vector<8x8x4xf32>
    %c1_170 = arith.constant 1 : index
    %c0_171 = arith.constant 0 : index
    %c0_172 = arith.constant 0 : index
    %c0_173 = arith.constant 0 : index
    %256 = vector.load %arg15[%c1_170, %c0_171, %c0_172, %c0_173] : memref<2x8x32x4xf32, #tpu.memory_space<vmem>>, vector<1x8x32x4xf32>
    %257 = vector.shape_cast %256 : vector<1x8x32x4xf32> to vector<8x32x4xf32>
    "tpu.trace_start"() <{level = 10 : i32, message = "hsd,hde->hse"}> : () -> ()
    %cst_174 = arith.constant dense<0.000000e+00> : vector<8x8x4xf32>
    %258 = tpu.matmul %239, %257, %cst_174 {dimension_numbers = #tpu.dot_dimension_numbers<[2], [1], [1], [2], [0, 0, 0, 1, 1, 2], [0], [0]>} : vector<8x8x32xf32>, vector<8x32x4xf32>, vector<8x8x4xf32> -> vector<8x8x4xf32>
    "tpu.trace_stop"() : () -> ()
    %c1_175 = arith.constant 1 : index
    %c0_176 = arith.constant 0 : index
    %c0_177 = arith.constant 0 : index
    %c0_178 = arith.constant 0 : index
    %259 = vector.load %arg16[%c1_175, %c0_176, %c0_177, %c0_178] : memref<2x8x1x4xf32, #tpu.memory_space<vmem>>, vector<1x8x1x4xf32>
    %260 = vector.shape_cast %259 : vector<1x8x1x4xf32> to vector<8x1x4xf32>
    %261 = vector.broadcast %260 : vector<8x1x4xf32> to vector<8x8x4xf32>
    %262 = arith.addf %258, %261 : vector<8x8x4xf32>
    "tpu.trace_start"() <{level = 10 : i32, message = "hqd,hkd->hqk"}> : () -> ()
    %cst_179 = arith.constant dense<0.000000e+00> : vector<8x8x8xf32>
    %263 = tpu.matmul %248, %255, %cst_179 {dimension_numbers = #tpu.dot_dimension_numbers<[2], [2], [1], [1], [0, 0, 0, 1, 1, 1], [0], [0]>} : vector<8x8x4xf32>, vector<8x8x4xf32>, vector<8x8x8xf32> -> vector<8x8x8xf32>
    %cst_180 = arith.constant -1.000000e+09 : f32
    "tpu.trace_stop"() : () -> ()
    %264 = vector.shape_cast %12 : vector<8x8xi1> to vector<1x8x8xi1>
    %265 = vector.broadcast %264 : vector<1x8x8xi1> to vector<8x8x8xi1>
    %266 = vector.broadcast %cst_180 : f32 to vector<8x8x8xf32>
    %267 = arith.select %265, %263, %266 : vector<8x8x8xi1>, vector<8x8x8xf32>
    %cst_181 = arith.constant dense<0xFF800000> : vector<8x8xf32>
    %268 = vector.multi_reduction <maximumf>, %267, %cst_181 [2] : vector<8x8x8xf32> to vector<8x8xf32>
    %269 = vector.shape_cast %268 : vector<8x8xf32> to vector<8x8x1xf32>
    %270 = vector.broadcast %269 : vector<8x8x1xf32> to vector<8x8x8xf32>
    %271 = arith.subf %267, %270 : vector<8x8x8xf32>
    %272 = math.exp %271 : vector<8x8x8xf32>
    %cst_182 = arith.constant dense<0.000000e+00> : vector<8x8xf32>
    %273 = vector.multi_reduction <add>, %272, %cst_182 [2] : vector<8x8x8xf32> to vector<8x8xf32>
    %274 = vector.shape_cast %273 : vector<8x8xf32> to vector<8x8x1xf32>
    %275 = tpu.reciprocal %274 {approx = true} : vector<8x8x1xf32> -> vector<8x8x1xf32>
    %276 = vector.broadcast %275 : vector<8x8x1xf32> to vector<8x8x8xf32>
    %277 = arith.mulf %272, %276 : vector<8x8x8xf32>
    "tpu.trace_start"() <{level = 10 : i32, message = "hqk,hkd->hqd"}> : () -> ()
    %cst_183 = arith.constant dense<0.000000e+00> : vector<8x8x4xf32>
    %278 = tpu.matmul %277, %262, %cst_183 {dimension_numbers = #tpu.dot_dimension_numbers<[2], [1], [1], [2], [0, 0, 0, 1, 1, 2], [0], [0]>} : vector<8x8x8xf32>, vector<8x8x4xf32>, vector<8x8x4xf32> -> vector<8x8x4xf32>
    "tpu.trace_stop"() : () -> ()
    %c1_184 = arith.constant 1 : index
    %c0_185 = arith.constant 0 : index
    %c0_186 = arith.constant 0 : index
    %c0_187 = arith.constant 0 : index
    %279 = vector.load %arg17[%c1_184, %c0_185, %c0_186, %c0_187] : memref<2x8x4x32xf32, #tpu.memory_space<vmem>>, vector<1x8x4x32xf32>
    %280 = vector.shape_cast %279 : vector<1x8x4x32xf32> to vector<8x4x32xf32>
    "tpu.trace_start"() <{level = 10 : i32, message = "hqd,hdo->hqo"}> : () -> ()
    %cst_188 = arith.constant dense<0.000000e+00> : vector<8x8x32xf32>
    %281 = tpu.matmul %278, %280, %cst_188 {dimension_numbers = #tpu.dot_dimension_numbers<[2], [1], [1], [2], [0, 0, 0, 1, 1, 2], [0], [0]>} : vector<8x8x4xf32>, vector<8x4x32xf32>, vector<8x8x32xf32> -> vector<8x8x32xf32>
    "tpu.trace_stop"() : () -> ()
    %cst_189 = arith.constant dense<0.000000e+00> : vector<8x32xf32>
    %282 = vector.multi_reduction <add>, %281, %cst_189 [0] : vector<8x8x32xf32> to vector<8x32xf32>
    %c1_190 = arith.constant 1 : index
    %c0_191 = arith.constant 0 : index
    %c0_192 = arith.constant 0 : index
    %283 = vector.load %arg18[%c1_190, %c0_191, %c0_192] : memref<2x1x32xf32, #tpu.memory_space<vmem>>, vector<1x1x32xf32>
    %284 = vector.shape_cast %283 : vector<1x1x32xf32> to vector<1x32xf32>
    %285 = vector.broadcast %284 : vector<1x32xf32> to vector<8x32xf32>
    %286 = arith.addf %282, %285 : vector<8x32xf32>
    %287 = arith.addf %211, %286 : vector<8x32xf32>
    %c1_193 = arith.constant 1 : index
    %c0_194 = arith.constant 0 : index
    %c0_195 = arith.constant 0 : index
    %288 = vector.load %arg7[%c1_193, %c0_194, %c0_195] : memref<2x1x32xf32, #tpu.memory_space<vmem>>, vector<1x1x32xf32>
    %289 = vector.shape_cast %288 : vector<1x1x32xf32> to vector<1x32xf32>
    %c1_196 = arith.constant 1 : index
    %c0_197 = arith.constant 0 : index
    %c0_198 = arith.constant 0 : index
    %290 = vector.load %arg8[%c1_196, %c0_197, %c0_198] : memref<2x1x32xf32, #tpu.memory_space<vmem>>, vector<1x1x32xf32>
    %291 = vector.shape_cast %290 : vector<1x1x32xf32> to vector<1x32xf32>
    %cst_199 = arith.constant dense<0.000000e+00> : vector<8xf32>
    %292 = vector.multi_reduction <add>, %287, %cst_199 [1] : vector<8x32xf32> to vector<8xf32>
    %293 = vector.shape_cast %292 : vector<8xf32> to vector<8x1xf32>
    %cst_200 = arith.constant 3.200000e+01 : f32
    %294 = vector.broadcast %cst_200 : f32 to vector<8x1xf32>
    %295 = arith.divf %293, %294 : vector<8x1xf32>
    %296 = vector.broadcast %295 : vector<8x1xf32> to vector<8x32xf32>
    %297 = arith.subf %287, %296 : vector<8x32xf32>
    %298 = arith.mulf %297, %297 : vector<8x32xf32>
    %cst_201 = arith.constant dense<0.000000e+00> : vector<8xf32>
    %299 = vector.multi_reduction <add>, %298, %cst_201 [1] : vector<8x32xf32> to vector<8xf32>
    %300 = vector.shape_cast %299 : vector<8xf32> to vector<8x1xf32>
    %cst_202 = arith.constant 3.200000e+01 : f32
    %301 = vector.broadcast %cst_202 : f32 to vector<8x1xf32>
    %302 = arith.divf %300, %301 : vector<8x1xf32>
    %303 = vector.broadcast %295 : vector<8x1xf32> to vector<8x32xf32>
    %304 = arith.subf %287, %303 : vector<8x32xf32>
    %cst_203 = arith.constant 9.99999974E-6 : f32
    %305 = vector.broadcast %cst_203 : f32 to vector<8x1xf32>
    %306 = arith.addf %302, %305 : vector<8x1xf32>
    %307 = math.rsqrt %306 : vector<8x1xf32>
    %308 = vector.broadcast %307 : vector<8x1xf32> to vector<8x32xf32>
    %309 = arith.mulf %304, %308 : vector<8x32xf32>
    %310 = vector.broadcast %289 : vector<1x32xf32> to vector<8x32xf32>
    %311 = arith.mulf %309, %310 : vector<8x32xf32>
    %312 = vector.broadcast %291 : vector<1x32xf32> to vector<8x32xf32>
    %313 = arith.addf %311, %312 : vector<8x32xf32>
    %314 = vector.shape_cast %313 : vector<8x32xf32> to vector<1x8x32xf32>
    %315 = vector.broadcast %314 : vector<1x8x32xf32> to vector<8x8x32xf32>
    %c1_204 = arith.constant 1 : index
    %c0_205 = arith.constant 0 : index
    %c0_206 = arith.constant 0 : index
    %c0_207 = arith.constant 0 : index
    %316 = vector.load %arg11[%c1_204, %c0_205, %c0_206, %c0_207] : memref<2x8x32x4xf32, #tpu.memory_space<vmem>>, vector<1x8x32x4xf32>
    %317 = vector.shape_cast %316 : vector<1x8x32x4xf32> to vector<8x32x4xf32>
    "tpu.trace_start"() <{level = 10 : i32, message = "hsd,hde->hse"}> : () -> ()
    %cst_208 = arith.constant dense<0.000000e+00> : vector<8x8x4xf32>
    %318 = tpu.matmul %315, %317, %cst_208 {dimension_numbers = #tpu.dot_dimension_numbers<[2], [1], [1], [2], [0, 0, 0, 1, 1, 2], [0], [0]>} : vector<8x8x32xf32>, vector<8x32x4xf32>, vector<8x8x4xf32> -> vector<8x8x4xf32>
    "tpu.trace_stop"() : () -> ()
    %c1_209 = arith.constant 1 : index
    %c0_210 = arith.constant 0 : index
    %c0_211 = arith.constant 0 : index
    %c0_212 = arith.constant 0 : index
    %319 = vector.load %arg12[%c1_209, %c0_210, %c0_211, %c0_212] : memref<2x8x1x4xf32, #tpu.memory_space<vmem>>, vector<1x8x1x4xf32>
    %320 = vector.shape_cast %319 : vector<1x8x1x4xf32> to vector<8x1x4xf32>
    %321 = vector.broadcast %320 : vector<8x1x4xf32> to vector<8x8x4xf32>
    %322 = arith.addf %318, %321 : vector<8x8x4xf32>
    %c1_213 = arith.constant 1 : index
    %c0_214 = arith.constant 0 : index
    %c0_215 = arith.constant 0 : index
    %c0_216 = arith.constant 0 : index
    %323 = vector.load %arg13[%c1_213, %c0_214, %c0_215, %c0_216] : memref<2x8x32x4xf32, #tpu.memory_space<vmem>>, vector<1x8x32x4xf32>
    %324 = vector.shape_cast %323 : vector<1x8x32x4xf32> to vector<8x32x4xf32>
    "tpu.trace_start"() <{level = 10 : i32, message = "hsd,hde->hse"}> : () -> ()
    %cst_217 = arith.constant dense<0.000000e+00> : vector<8x8x4xf32>
    %325 = tpu.matmul %18, %324, %cst_217 {dimension_numbers = #tpu.dot_dimension_numbers<[2], [1], [1], [2], [0, 0, 0, 1, 1, 2], [0], [0]>} : vector<8x8x32xf32>, vector<8x32x4xf32>, vector<8x8x4xf32> -> vector<8x8x4xf32>
    "tpu.trace_stop"() : () -> ()
    %c1_218 = arith.constant 1 : index
    %c0_219 = arith.constant 0 : index
    %c0_220 = arith.constant 0 : index
    %c0_221 = arith.constant 0 : index
    %326 = vector.load %arg14[%c1_218, %c0_219, %c0_220, %c0_221] : memref<2x8x1x4xf32, #tpu.memory_space<vmem>>, vector<1x8x1x4xf32>
    %327 = vector.shape_cast %326 : vector<1x8x1x4xf32> to vector<8x1x4xf32>
    %328 = vector.broadcast %327 : vector<8x1x4xf32> to vector<8x8x4xf32>
    %329 = arith.addf %325, %328 : vector<8x8x4xf32>
    %c1_222 = arith.constant 1 : index
    %c0_223 = arith.constant 0 : index
    %c0_224 = arith.constant 0 : index
    %c0_225 = arith.constant 0 : index
    %330 = vector.load %arg15[%c1_222, %c0_223, %c0_224, %c0_225] : memref<2x8x32x4xf32, #tpu.memory_space<vmem>>, vector<1x8x32x4xf32>
    %331 = vector.shape_cast %330 : vector<1x8x32x4xf32> to vector<8x32x4xf32>
    "tpu.trace_start"() <{level = 10 : i32, message = "hsd,hde->hse"}> : () -> ()
    %cst_226 = arith.constant dense<0.000000e+00> : vector<8x8x4xf32>
    %332 = tpu.matmul %18, %331, %cst_226 {dimension_numbers = #tpu.dot_dimension_numbers<[2], [1], [1], [2], [0, 0, 0, 1, 1, 2], [0], [0]>} : vector<8x8x32xf32>, vector<8x32x4xf32>, vector<8x8x4xf32> -> vector<8x8x4xf32>
    "tpu.trace_stop"() : () -> ()
    %c1_227 = arith.constant 1 : index
    %c0_228 = arith.constant 0 : index
    %c0_229 = arith.constant 0 : index
    %c0_230 = arith.constant 0 : index
    %333 = vector.load %arg16[%c1_227, %c0_228, %c0_229, %c0_230] : memref<2x8x1x4xf32, #tpu.memory_space<vmem>>, vector<1x8x1x4xf32>
    %334 = vector.shape_cast %333 : vector<1x8x1x4xf32> to vector<8x1x4xf32>
    %335 = vector.broadcast %334 : vector<8x1x4xf32> to vector<8x8x4xf32>
    %336 = arith.addf %332, %335 : vector<8x8x4xf32>
    "tpu.trace_start"() <{level = 10 : i32, message = "hqd,hkd->hqk"}> : () -> ()
    %cst_231 = arith.constant dense<0.000000e+00> : vector<8x8x8xf32>
    %337 = tpu.matmul %322, %329, %cst_231 {dimension_numbers = #tpu.dot_dimension_numbers<[2], [2], [1], [1], [0, 0, 0, 1, 1, 1], [0], [0]>} : vector<8x8x4xf32>, vector<8x8x4xf32>, vector<8x8x8xf32> -> vector<8x8x8xf32>
    %cst_232 = arith.constant -1.000000e+09 : f32
    "tpu.trace_stop"() : () -> ()
    %338 = vector.shape_cast %16 : vector<1x8xi1> to vector<1x1x8xi1>
    %339 = vector.broadcast %338 : vector<1x1x8xi1> to vector<8x8x8xi1>
    %340 = vector.broadcast %cst_232 : f32 to vector<8x8x8xf32>
    %341 = arith.select %339, %337, %340 : vector<8x8x8xi1>, vector<8x8x8xf32>
    %cst_233 = arith.constant dense<0xFF800000> : vector<8x8xf32>
    %342 = vector.multi_reduction <maximumf>, %341, %cst_233 [2] : vector<8x8x8xf32> to vector<8x8xf32>
    %343 = vector.shape_cast %342 : vector<8x8xf32> to vector<8x8x1xf32>
    %344 = vector.broadcast %343 : vector<8x8x1xf32> to vector<8x8x8xf32>
    %345 = arith.subf %341, %344 : vector<8x8x8xf32>
    %346 = math.exp %345 : vector<8x8x8xf32>
    %cst_234 = arith.constant dense<0.000000e+00> : vector<8x8xf32>
    %347 = vector.multi_reduction <add>, %346, %cst_234 [2] : vector<8x8x8xf32> to vector<8x8xf32>
    %348 = vector.shape_cast %347 : vector<8x8xf32> to vector<8x8x1xf32>
    %349 = tpu.reciprocal %348 {approx = true} : vector<8x8x1xf32> -> vector<8x8x1xf32>
    %350 = vector.broadcast %349 : vector<8x8x1xf32> to vector<8x8x8xf32>
    %351 = arith.mulf %346, %350 : vector<8x8x8xf32>
    "tpu.trace_start"() <{level = 10 : i32, message = "hqk,hkd->hqd"}> : () -> ()
    %cst_235 = arith.constant dense<0.000000e+00> : vector<8x8x4xf32>
    %352 = tpu.matmul %351, %336, %cst_235 {dimension_numbers = #tpu.dot_dimension_numbers<[2], [1], [1], [2], [0, 0, 0, 1, 1, 2], [0], [0]>} : vector<8x8x8xf32>, vector<8x8x4xf32>, vector<8x8x4xf32> -> vector<8x8x4xf32>
    "tpu.trace_stop"() : () -> ()
    %c1_236 = arith.constant 1 : index
    %c0_237 = arith.constant 0 : index
    %c0_238 = arith.constant 0 : index
    %c0_239 = arith.constant 0 : index
    %353 = vector.load %arg17[%c1_236, %c0_237, %c0_238, %c0_239] : memref<2x8x4x32xf32, #tpu.memory_space<vmem>>, vector<1x8x4x32xf32>
    %354 = vector.shape_cast %353 : vector<1x8x4x32xf32> to vector<8x4x32xf32>
    "tpu.trace_start"() <{level = 10 : i32, message = "hqd,hdo->hqo"}> : () -> ()
    %cst_240 = arith.constant dense<0.000000e+00> : vector<8x8x32xf32>
    %355 = tpu.matmul %352, %354, %cst_240 {dimension_numbers = #tpu.dot_dimension_numbers<[2], [1], [1], [2], [0, 0, 0, 1, 1, 2], [0], [0]>} : vector<8x8x4xf32>, vector<8x4x32xf32>, vector<8x8x32xf32> -> vector<8x8x32xf32>
    "tpu.trace_stop"() : () -> ()
    %cst_241 = arith.constant dense<0.000000e+00> : vector<8x32xf32>
    %356 = vector.multi_reduction <add>, %355, %cst_241 [0] : vector<8x8x32xf32> to vector<8x32xf32>
    %c1_242 = arith.constant 1 : index
    %c0_243 = arith.constant 0 : index
    %c0_244 = arith.constant 0 : index
    %357 = vector.load %arg18[%c1_242, %c0_243, %c0_244] : memref<2x1x32xf32, #tpu.memory_space<vmem>>, vector<1x1x32xf32>
    %358 = vector.shape_cast %357 : vector<1x1x32xf32> to vector<1x32xf32>
    %359 = vector.broadcast %358 : vector<1x32xf32> to vector<8x32xf32>
    %360 = arith.addf %356, %359 : vector<8x32xf32>
    %361 = arith.addf %287, %360 : vector<8x32xf32>
    %c1_245 = arith.constant 1 : index
    %c0_246 = arith.constant 0 : index
    %c0_247 = arith.constant 0 : index
    %362 = vector.load %arg9[%c1_245, %c0_246, %c0_247] : memref<2x1x32xf32, #tpu.memory_space<vmem>>, vector<1x1x32xf32>
    %363 = vector.shape_cast %362 : vector<1x1x32xf32> to vector<1x32xf32>
    %c1_248 = arith.constant 1 : index
    %c0_249 = arith.constant 0 : index
    %c0_250 = arith.constant 0 : index
    %364 = vector.load %arg10[%c1_248, %c0_249, %c0_250] : memref<2x1x32xf32, #tpu.memory_space<vmem>>, vector<1x1x32xf32>
    %365 = vector.shape_cast %364 : vector<1x1x32xf32> to vector<1x32xf32>
    %cst_251 = arith.constant dense<0.000000e+00> : vector<8xf32>
    %366 = vector.multi_reduction <add>, %361, %cst_251 [1] : vector<8x32xf32> to vector<8xf32>
    %367 = vector.shape_cast %366 : vector<8xf32> to vector<8x1xf32>
    %cst_252 = arith.constant 3.200000e+01 : f32
    %368 = vector.broadcast %cst_252 : f32 to vector<8x1xf32>
    %369 = arith.divf %367, %368 : vector<8x1xf32>
    %370 = vector.broadcast %369 : vector<8x1xf32> to vector<8x32xf32>
    %371 = arith.subf %361, %370 : vector<8x32xf32>
    %372 = arith.mulf %371, %371 : vector<8x32xf32>
    %cst_253 = arith.constant dense<0.000000e+00> : vector<8xf32>
    %373 = vector.multi_reduction <add>, %372, %cst_253 [1] : vector<8x32xf32> to vector<8xf32>
    %374 = vector.shape_cast %373 : vector<8xf32> to vector<8x1xf32>
    %cst_254 = arith.constant 3.200000e+01 : f32
    %375 = vector.broadcast %cst_254 : f32 to vector<8x1xf32>
    %376 = arith.divf %374, %375 : vector<8x1xf32>
    %377 = vector.broadcast %369 : vector<8x1xf32> to vector<8x32xf32>
    %378 = arith.subf %361, %377 : vector<8x32xf32>
    %cst_255 = arith.constant 9.99999974E-6 : f32
    %379 = vector.broadcast %cst_255 : f32 to vector<8x1xf32>
    %380 = arith.addf %376, %379 : vector<8x1xf32>
    %381 = math.rsqrt %380 : vector<8x1xf32>
    %382 = vector.broadcast %381 : vector<8x1xf32> to vector<8x32xf32>
    %383 = arith.mulf %378, %382 : vector<8x32xf32>
    %384 = vector.broadcast %363 : vector<1x32xf32> to vector<8x32xf32>
    %385 = arith.mulf %383, %384 : vector<8x32xf32>
    %386 = vector.broadcast %365 : vector<1x32xf32> to vector<8x32xf32>
    %387 = arith.addf %385, %386 : vector<8x32xf32>
    %c1_256 = arith.constant 1 : index
    %c0_257 = arith.constant 0 : index
    %c0_258 = arith.constant 0 : index
    %388 = vector.load %arg19[%c1_256, %c0_257, %c0_258] : memref<2x32x128xf32, #tpu.memory_space<vmem>>, vector<1x32x128xf32>
    %389 = vector.shape_cast %388 : vector<1x32x128xf32> to vector<32x128xf32>
    %cst_259 = arith.constant dense<0.000000e+00> : vector<8x128xf32>
    %390 = tpu.matmul %387, %389, %cst_259 {dimension_numbers = #tpu.dot_dimension_numbers<[1], [0], [0], [1], [0, 0, 1, 1], [], []>} : vector<8x32xf32>, vector<32x128xf32>, vector<8x128xf32> -> vector<8x128xf32>
    %c1_260 = arith.constant 1 : index
    %c0_261 = arith.constant 0 : index
    %c0_262 = arith.constant 0 : index
    %391 = vector.load %arg20[%c1_260, %c0_261, %c0_262] : memref<2x1x128xf32, #tpu.memory_space<vmem>>, vector<1x1x128xf32>
    %392 = vector.shape_cast %391 : vector<1x1x128xf32> to vector<1x128xf32>
    %393 = vector.broadcast %392 : vector<1x128xf32> to vector<8x128xf32>
    %394 = arith.addf %390, %393 : vector<8x128xf32>
    %cst_263 = arith.constant 0.000000e+00 : f32
    %395 = vector.broadcast %cst_263 : f32 to vector<8x128xf32>
    %396 = arith.maximumf %394, %395 : vector<8x128xf32>
    %c1_264 = arith.constant 1 : index
    %c0_265 = arith.constant 0 : index
    %c0_266 = arith.constant 0 : index
    %397 = vector.load %arg21[%c1_264, %c0_265, %c0_266] : memref<2x128x32xf32, #tpu.memory_space<vmem>>, vector<1x128x32xf32>
    %398 = vector.shape_cast %397 : vector<1x128x32xf32> to vector<128x32xf32>
    %cst_267 = arith.constant dense<0.000000e+00> : vector<8x32xf32>
    %399 = tpu.matmul %396, %398, %cst_267 {dimension_numbers = #tpu.dot_dimension_numbers<[1], [0], [0], [1], [0, 0, 1, 1], [], []>} : vector<8x128xf32>, vector<128x32xf32>, vector<8x32xf32> -> vector<8x32xf32>
    %400 = arith.addf %361, %399 : vector<8x32xf32>
    %c1_268 = arith.constant 1 : index
    %c0_269 = arith.constant 0 : index
    %c0_270 = arith.constant 0 : index
    %401 = vector.load %arg22[%c1_268, %c0_269, %c0_270] : memref<2x1x32xf32, #tpu.memory_space<vmem>>, vector<1x1x32xf32>
    %402 = vector.shape_cast %401 : vector<1x1x32xf32> to vector<1x32xf32>
    %403 = vector.broadcast %402 : vector<1x32xf32> to vector<8x32xf32>
    %404 = arith.addf %400, %403 : vector<8x32xf32>
    %c0_271 = arith.constant 0 : index
    %c0_272 = arith.constant 0 : index
    %405 = vector.load %arg23[%c0_271, %c0_272] : memref<1x32xf32, #tpu.memory_space<vmem>>, vector<1x32xf32>
    %c0_273 = arith.constant 0 : index
    %c0_274 = arith.constant 0 : index
    %406 = vector.load %arg24[%c0_273, %c0_274] : memref<1x32xf32, #tpu.memory_space<vmem>>, vector<1x32xf32>
    %cst_275 = arith.constant dense<0.000000e+00> : vector<8xf32>
    %407 = vector.multi_reduction <add>, %404, %cst_275 [1] : vector<8x32xf32> to vector<8xf32>
    %408 = vector.shape_cast %407 : vector<8xf32> to vector<8x1xf32>
    %cst_276 = arith.constant 3.200000e+01 : f32
    %409 = vector.broadcast %cst_276 : f32 to vector<8x1xf32>
    %410 = arith.divf %408, %409 : vector<8x1xf32>
    %411 = vector.broadcast %410 : vector<8x1xf32> to vector<8x32xf32>
    %412 = arith.subf %404, %411 : vector<8x32xf32>
    %413 = arith.mulf %412, %412 : vector<8x32xf32>
    %cst_277 = arith.constant dense<0.000000e+00> : vector<8xf32>
    %414 = vector.multi_reduction <add>, %413, %cst_277 [1] : vector<8x32xf32> to vector<8xf32>
    %415 = vector.shape_cast %414 : vector<8xf32> to vector<8x1xf32>
    %cst_278 = arith.constant 3.200000e+01 : f32
    %416 = vector.broadcast %cst_278 : f32 to vector<8x1xf32>
    %417 = arith.divf %415, %416 : vector<8x1xf32>
    %418 = vector.broadcast %410 : vector<8x1xf32> to vector<8x32xf32>
    %419 = arith.subf %404, %418 : vector<8x32xf32>
    %cst_279 = arith.constant 9.99999974E-6 : f32
    %420 = vector.broadcast %cst_279 : f32 to vector<8x1xf32>
    %421 = arith.addf %417, %420 : vector<8x1xf32>
    %422 = math.rsqrt %421 : vector<8x1xf32>
    %423 = vector.broadcast %422 : vector<8x1xf32> to vector<8x32xf32>
    %424 = arith.mulf %419, %423 : vector<8x32xf32>
    %425 = vector.broadcast %405 : vector<1x32xf32> to vector<8x32xf32>
    %426 = arith.mulf %424, %425 : vector<8x32xf32>
    %427 = vector.broadcast %406 : vector<1x32xf32> to vector<8x32xf32>
    %428 = arith.addf %426, %427 : vector<8x32xf32>
    %c0_280 = arith.constant 0 : index
    %c0_281 = arith.constant 0 : index
    %c0_282 = arith.constant 0 : index
    %429 = vector.load %arg25[%c0_280, %c0_281, %c0_282] : memref<1x8x32xf32, #tpu.memory_space<vmem>>, vector<1x8x32xf32>
    %430 = vector.shape_cast %429 : vector<1x8x32xf32> to vector<8x32xf32>
    %431 = vector.shape_cast %428 : vector<8x32xf32> to vector<1x8x32xf32>
    tpu.vector_store %arg25[%c0_280, %c0_281, %c0_282], %431 {strides = array<i32>} : memref<1x8x32xf32, #tpu.memory_space<vmem>>, vector<1x8x32xf32>,
    return
  }
  func.func @transform_0(%arg0: i32) -> (i32, i32, i32) {
    %c0_i32 = arith.constant 0 : i32
    %c0_i32_0 = arith.constant 0 : i32
    %c0_i32_1 = arith.constant 0 : i32
    return %arg0, %c0_i32, %c0_i32_0 : i32, i32, i32
  }
  func.func @transform_1(%arg0: i32) -> (i32, i32, i32) {
    %c0_i32 = arith.constant 0 : i32
    %c0_i32_0 = arith.constant 0 : i32
    %c0_i32_1 = arith.constant 0 : i32
    return %arg0, %c0_i32, %c0_i32_0 : i32, i32, i32
  }
  func.func @transform_2(%arg0: i32) -> (i32, i32, i32) {
    %c0_i32 = arith.constant 0 : i32
    %c0_i32_0 = arith.constant 0 : i32
    %c0_i32_1 = arith.constant 0 : i32
    return %arg0, %c0_i32, %c0_i32_0 : i32, i32, i32
  }
  func.func @transform_3(%arg0: i32) -> (i32, i32, i32) {
    %c0_i32 = arith.constant 0 : i32
    %c0_i32_0 = arith.constant 0 : i32
    %c0_i32_1 = arith.constant 0 : i32
    return %arg0, %c0_i32, %c0_i32_0 : i32, i32, i32
  }
  func.func @transform_4(%arg0: i32) -> (i32, i32, i32) {
    %c0_i32 = arith.constant 0 : i32
    %c0_i32_0 = arith.constant 0 : i32
    %c0_i32_1 = arith.constant 0 : i32
    %c0_i32_2 = arith.constant 0 : i32
    return %c0_i32, %c0_i32_0, %c0_i32_1 : i32, i32, i32
  }
  func.func @transform_5(%arg0: i32) -> (i32, i32, i32) {
    %c0_i32 = arith.constant 0 : i32
    %c0_i32_0 = arith.constant 0 : i32
    %c0_i32_1 = arith.constant 0 : i32
    %c0_i32_2 = arith.constant 0 : i32
    return %c0_i32, %c0_i32_0, %c0_i32_1 : i32, i32, i32
  }
  func.func @transform_6(%arg0: i32) -> (i32, i32, i32) {
    %c0_i32 = arith.constant 0 : i32
    %c0_i32_0 = arith.constant 0 : i32
    %c0_i32_1 = arith.constant 0 : i32
    %c0_i32_2 = arith.constant 0 : i32
    return %c0_i32, %c0_i32_0, %c0_i32_1 : i32, i32, i32
  }
  func.func @transform_7(%arg0: i32) -> (i32, i32, i32) {
    %c0_i32 = arith.constant 0 : i32
    %c0_i32_0 = arith.constant 0 : i32
    %c0_i32_1 = arith.constant 0 : i32
    %c0_i32_2 = arith.constant 0 : i32
    return %c0_i32, %c0_i32_0, %c0_i32_1 : i32, i32, i32
  }
  func.func @transform_8(%arg0: i32) -> (i32, i32, i32) {
    %c0_i32 = arith.constant 0 : i32
    %c0_i32_0 = arith.constant 0 : i32
    %c0_i32_1 = arith.constant 0 : i32
    %c0_i32_2 = arith.constant 0 : i32
    return %c0_i32, %c0_i32_0, %c0_i32_1 : i32, i32, i32
  }
  func.func @transform_9(%arg0: i32) -> (i32, i32, i32) {
    %c0_i32 = arith.constant 0 : i32
    %c0_i32_0 = arith.constant 0 : i32
    %c0_i32_1 = arith.constant 0 : i32
    %c0_i32_2 = arith.constant 0 : i32
    return %c0_i32, %c0_i32_0, %c0_i32_1 : i32, i32, i32
  }
  func.func @transform_10(%arg0: i32) -> (i32, i32, i32, i32) {
    %c0_i32 = arith.constant 0 : i32
    %c0_i32_0 = arith.constant 0 : i32
    %c0_i32_1 = arith.constant 0 : i32
    %c0_i32_2 = arith.constant 0 : i32
    %c0_i32_3 = arith.constant 0 : i32
    return %c0_i32, %c0_i32_0, %c0_i32_1, %c0_i32_2 : i32, i32, i32, i32
  }
  func.func @transform_11(%arg0: i32) -> (i32, i32, i32, i32) {
    %c0_i32 = arith.constant 0 : i32
    %c0_i32_0 = arith.constant 0 : i32
    %c0_i32_1 = arith.constant 0 : i32
    %c0_i32_2 = arith.constant 0 : i32
    %c0_i32_3 = arith.constant 0 : i32
    return %c0_i32, %c0_i32_0, %c0_i32_1, %c0_i32_2 : i32, i32, i32, i32
  }
  func.func @transform_12(%arg0: i32) -> (i32, i32, i32, i32) {
    %c0_i32 = arith.constant 0 : i32
    %c0_i32_0 = arith.constant 0 : i32
    %c0_i32_1 = arith.constant 0 : i32
    %c0_i32_2 = arith.constant 0 : i32
    %c0_i32_3 = arith.constant 0 : i32
    return %c0_i32, %c0_i32_0, %c0_i32_1, %c0_i32_2 : i32, i32, i32, i32
  }
  func.func @transform_13(%arg0: i32) -> (i32, i32, i32, i32) {
    %c0_i32 = arith.constant 0 : i32
    %c0_i32_0 = arith.constant 0 : i32
    %c0_i32_1 = arith.constant 0 : i32
    %c0_i32_2 = arith.constant 0 : i32
    %c0_i32_3 = arith.constant 0 : i32
    return %c0_i32, %c0_i32_0, %c0_i32_1, %c0_i32_2 : i32, i32, i32, i32
  }
  func.func @transform_14(%arg0: i32) -> (i32, i32, i32, i32) {
    %c0_i32 = arith.constant 0 : i32
    %c0_i32_0 = arith.constant 0 : i32
    %c0_i32_1 = arith.constant 0 : i32
    %c0_i32_2 = arith.constant 0 : i32
    %c0_i32_3 = arith.constant 0 : i32
    return %c0_i32, %c0_i32_0, %c0_i32_1, %c0_i32_2 : i32, i32, i32, i32
  }
  func.func @transform_15(%arg0: i32) -> (i32, i32, i32, i32) {
    %c0_i32 = arith.constant 0 : i32
    %c0_i32_0 = arith.constant 0 : i32
    %c0_i32_1 = arith.constant 0 : i32
    %c0_i32_2 = arith.constant 0 : i32
    %c0_i32_3 = arith.constant 0 : i32
    return %c0_i32, %c0_i32_0, %c0_i32_1, %c0_i32_2 : i32, i32, i32, i32
  }
  func.func @transform_16(%arg0: i32) -> (i32, i32, i32, i32) {
    %c0_i32 = arith.constant 0 : i32
    %c0_i32_0 = arith.constant 0 : i32
    %c0_i32_1 = arith.constant 0 : i32
    %c0_i32_2 = arith.constant 0 : i32
    %c0_i32_3 = arith.constant 0 : i32
    return %c0_i32, %c0_i32_0, %c0_i32_1, %c0_i32_2 : i32, i32, i32, i32
  }
  func.func @transform_17(%arg0: i32) -> (i32, i32, i32) {
    %c0_i32 = arith.constant 0 : i32
    %c0_i32_0 = arith.constant 0 : i32
    %c0_i32_1 = arith.constant 0 : i32
    %c0_i32_2 = arith.constant 0 : i32
    return %c0_i32, %c0_i32_0, %c0_i32_1 : i32, i32, i32
  }
  func.func @transform_18(%arg0: i32) -> (i32, i32, i32) {
    %c0_i32 = arith.constant 0 : i32
    %c0_i32_0 = arith.constant 0 : i32
    %c0_i32_1 = arith.constant 0 : i32
    %c0_i32_2 = arith.constant 0 : i32
    return %c0_i32, %c0_i32_0, %c0_i32_1 : i32, i32, i32
  }
  func.func @transform_19(%arg0: i32) -> (i32, i32, i32) {
    %c0_i32 = arith.constant 0 : i32
    %c0_i32_0 = arith.constant 0 : i32
    %c0_i32_1 = arith.constant 0 : i32
    %c0_i32_2 = arith.constant 0 : i32
    return %c0_i32, %c0_i32_0, %c0_i32_1 : i32, i32, i32
  }
  func.func @transform_20(%arg0: i32) -> (i32, i32, i32) {
    %c0_i32 = arith.constant 0 : i32
    %c0_i32_0 = arith.constant 0 : i32
    %c0_i32_1 = arith.constant 0 : i32
    %c0_i32_2 = arith.constant 0 : i32
    return %c0_i32, %c0_i32_0, %c0_i32_1 : i32, i32, i32
  }
  func.func @transform_21(%arg0: i32) -> (i32, i32, i32) {
    %c0_i32 = arith.constant 0 : i32
    %c0_i32_0 = arith.constant 0 : i32
    %c0_i32_1 = arith.constant 0 : i32
    %c0_i32_2 = arith.constant 0 : i32
    return %c0_i32, %c0_i32_0, %c0_i32_1 : i32, i32, i32
  }
  func.func @transform_22(%arg0: i32) -> (i32, i32) {
    %c0_i32 = arith.constant 0 : i32
    %c0_i32_0 = arith.constant 0 : i32
    %c0_i32_1 = arith.constant 0 : i32
    return %c0_i32, %c0_i32_0 : i32, i32
  }
  func.func @transform_23(%arg0: i32) -> (i32, i32) {
    %c0_i32 = arith.constant 0 : i32
    %c0_i32_0 = arith.constant 0 : i32
    %c0_i32_1 = arith.constant 0 : i32
    return %c0_i32, %c0_i32_0 : i32, i32
  }
  func.func @transform_24(%arg0: i32) -> (i32, i32, i32) {
    %c0_i32 = arith.constant 0 : i32
    %c0_i32_0 = arith.constant 0 : i32
    %c0_i32_1 = arith.constant 0 : i32
    return %arg0, %c0_i32, %c0_i32_0 : i32, i32, i32
  }
}

</mosaic_0001>

<bundles_post_ra>
// kernel: tpu_custom_call.1
= control target key start
LH: loop header
LB: loop body
LE: loop exit
PB: predicated region body
PF: predicated region fallthrough
CT: control target
= control target key end

     0   :  { %s10453_s0 = inlined_call_operand.vmem [shape: f32[2,8,32], index: 0, kind: input, shape index: {}]   ;;  %s10454_s1 = inlined_call_operand.vmem [shape: f32[2,8,32], index: 1, kind: input, shape index: {}]   ;;  %s10455_s2 = inlined_call_operand.vmem [shape: f32[2,1,8], index: 2, kind: input, shape index: {}]   ;;  %s10456_s3 = inlined_call_operand.vmem [shape: f32[2,1,8], index: 3, kind: input, shape index: {}]   ;;  %s10457_s4 = inlined_call_operand.vmem [shape: f32[2,1,32], index: 4, kind: input, shape index: {}]   ;;  %s10458_s5 = inlined_call_operand.vmem [shape: f32[2,1,32], index: 5, kind: input, shape index: {}]   ;;  %s10459_s6 = inlined_call_operand.vmem [shape: f32[2,1,32], index: 6, kind: input, shape index: {}]   ;;  %s10460_s7 = inlined_call_operand.vmem [shape: f32[2,1,32], index: 7, kind: input, shape index: {}]   ;;  %s10461_s8 = inlined_call_operand.vmem [shape: f32[2,1,32], index: 8, kind: input, shape index: {}]   ;;  %s10462_s9 = inlined_call_operand.vmem [shape: f32[2,1,32], index: 9, kind: input, shape index: {}]   ;;  %s10463_s10 = inlined_call_operand.vmem [shape: f32[2,8,32,4], index: 10, kind: input, shape index: {}]   ;;  %s10464_s11 = inlined_call_operand.vmem [shape: f32[2,8,1,4], index: 11, kind: input, shape index: {}]   ;;  %s10465_s12 = inlined_call_operand.vmem [shape: f32[2,8,32,4], index: 12, kind: input, shape index: {}]   ;;  %s10466_s13 = inlined_call_operand.vmem [shape: f32[2,8,1,4], index: 13, kind: input, shape index: {}]   ;;  %s10467_s14 = inlined_call_operand.vmem [shape: f32[2,8,32,4], index: 14, kind: input, shape index: {}]   ;;  %s10468_s15 = inlined_call_operand.vmem [shape: f32[2,8,1,4], index: 15, kind: input, shape index: {}]   ;;  %s10469_s16 = inlined_call_operand.vmem [shape: f32[2,8,4,32], index: 16, kind: input, shape index: {}]   ;;  %s10470_s17 = inlined_call_operand.vmem [shape: f32[2,1,32], index: 17, kind: input, shape index: {}]   ;;  %s10471_s18 = inlined_call_operand.vmem [shape: f32[2,32,128], index: 18, kind: input, shape index: {}]   ;;  %s10472_s19 = inlined_call_operand.vmem [shape: f32[2,1,128], index: 19, kind: input, shape index: {}]   ;;  %s10473_s20 = inlined_call_operand.vmem [shape: f32[2,128,32], index: 20, kind: input, shape index: {}]   ;;  %s10474_s21 = inlined_call_operand.vmem [shape: f32[2,1,32], index: 21, kind: input, shape index: {}]   ;;  %s10475_s22 = inlined_call_operand.vmem [shape: f32[1,32], index: 22, kind: input, shape index: {}]   ;;  %s10476_s23 = inlined_call_operand.vmem [shape: f32[1,32], index: 23, kind: input, shape index: {}]   ;;  %s10477_s24 = inlined_call_operand.hbm [shape: f32[2,8,32], index: 24, kind: output, shape index: {}]  }
   0x1   :  { %10496 = sst [smem:[#allocation12_spill]] %s10453_s0 }
   0x2   :  { %10497 = sst [smem:[#allocation13_spill]] %s10454_s1 }
   0x3   :  { %10498 = sst [smem:[#allocation14_spill]] %s10455_s2 }
   0x4   :  { %10499 = sst [smem:[#allocation15_spill]] %s10456_s3 }
   0x5   :  { %10500 = sst [smem:[#allocation16_spill]] %s10457_s4 }
   0x6   :  { %10501 = sst [smem:[#allocation17_spill]] %s10458_s5 }
   0x7   :  { %10502 = sst [smem:[#allocation18_spill]] %s10459_s6 }
   0x8   :  { %10503 = sst [smem:[#allocation19_spill]] %s10460_s7 }
   0x9   :  { %10504 = sst [smem:[#allocation20_spill]] %s10461_s8 }
   0xa   :  { %10505 = sst [smem:[#allocation21_spill]] %s10462_s9 }
   0xb   :  { %10506 = sst [smem:[#allocation22_spill]] %s10463_s10 }
   0xc   :  { %10507 = sst [smem:[#allocation23_spill]] %s10475_s22 }
   0xd   :  { %10508 = sst [smem:[#allocation24_spill]] %s10476_s23 }
   0xe   :  { %10509 = sst [smem:[#allocation25_spill]] %s10477_s24 }
   0xf   :  { %29 = vsyncpa [#allocation3], 0 }
  0x10   :  { %31 = vsyncpa [#allocation3 + $0x1], 0  ;;  %s7959_s5 = smov 0   ;;  %s7961_s26 = smov 0  }
  0x11   :  { %s7963_s27 = smov 0   ;;  %s7965_s28 = smov 0  }
  0x12 LB: > { %10510 = sst [smem:[#allocation5_spill]] %s7818_s5  ;;  %s7980_s6 = sadd.s32 4294967295, %s7830_s28   ;;  %s7830_s28 = sphi %s7965_s28, %s10544_s28   ;;  %s7826_s27 = sphi %s7963_s27, %s10546_s27   ;;  %s7822_s26 = sphi %s7961_s26, %s10548_s26   ;;  %s7818_s5 = sphi %s7959_s5, %s10547_s5  }
  0x13   : > { %10511 = sst [smem:[#allocation6_spill]] %s7826_s27  ;;  %s6908_s2 = sadd.s32 4294967294, %s7830_s28  }
  0x14   : > { %10512 = sst [smem:[#allocation7_spill]] %s7830_s28  ;;  %s7984_s29 = sadd.s32 1, %s7830_s28  }
  0x15   : > { %10513 = sst [smem:[#allocation8_spill]] %s7984_s29  ;;  %s568_s0 = sadd.s32 1, %s7826_s27 }
  0x16   : > { %s565_s7 = ssub.s32 %s7830_s28, %s7984_s29  ;;  %p578_p0 = scmp.ne.s32.totalorder %s7826_s27, %s7822_s26 }
  0x17   : > { %p566_p1 = scmp.eq.s32.totalorder %s565_s7, 0  ;;  %p579_p2 = scmp.eq.s32.totalorder %s7980_s6, 1 }
  0x18   : > { %p584_p3 = scmp.ne.s32.totalorder %s7822_s26, %s7818_s5  ;;  %p585_p4 = scmp.eq.s32.totalorder %s6908_s2, 1 }
  0x19   : > { %s7995_s30 = scalar_select %p566_p1, %s7826_s27, %s568_s0  }
  0x1a   : > { %p7997_p5 = por %p579_p2, %p578_p0  ;;  %p8001_p6 = por %p585_p4, %p584_p3 }
  0x1b   : > { %10514 = sst [smem:[#allocation9_spill]] %s7995_s30  ;;  %p6911_p7 = scmp.ge.s32.totalorder %s7830_s28, 1 }
  0x1c   : > { %s10515_s3 = scalar_select %p7997_p5, 1, 0 }
  0x1d   : > { %s10517_s25 = scalar_select %p8001_p6, 1, 0 }
  0x1e   : > { %10516 = sst [smem:[#allocation10_spill]] %s10515_s3  ;;  %p689_p8 = scmp.lt.s32.totalorder %s7830_s28, 3 }
  0x1f   : > { %10518 = sst [smem:[#allocation11_spill]] %s10517_s25 }
  0x20   : > { %p690_p9 = pnand %p6911_p7, %p689_p8 }
  0x21   : > { %p764_p10 = scmp.lt.s32.totalorder (!%p690_p9), %s7980_s6, 1  ;;  %s10519_s0 = sld [smem:[#allocation12_spill]] (!%p690_p9) }
  0x22   : > { %693 = sbr.rel (%p690_p9) target bundleno = 5758 (0x167e), region = 116  ;;  %s10520_s29 = sld [smem:[#allocation15_spill]] (!%p690_p9) }
  0x23   : > { %s10521_s10 = sld [smem:[#allocation22_spill]] (!%p690_p9) }
  0x24   : > { %s10523_s28 = sld [smem:[#allocation17_spill]] (!%p690_p9) }
  0x25   : > { %s10525_s23 = sld [smem:[#allocation14_spill]] (!%p690_p9) }
  0x26   : > { %s10534_s27 = sld [smem:[#allocation20_spill]] (!%p690_p9) }
  0x27   : > { %s8009_s8 = scalar_select %p764_p10, %s7980_s6, 1  ;;  %vm795_vm0 = vcmask 261120   ;;  %v7832_v3 = vmov 0   ;;  %v7833_v5 = vmov 32.0   ;;  %v1071_v20 = vld [vmem:[%s10465_s12 + $0x58] sm:$0xff]  ;;  %v1070_v24 = vld [vmem:[%s10465_s12 + $0x50] sm:$0xff] }
  0x28   : > { %7622 = vrcp.f32 %v7833_v5  ;;  %1176 = vmatpush.msra.mxu2 %v1071_v20  ;;  %v1069_v28 = vld [vmem:[%s10465_s12 + $0x48] sm:$0xff]  ;;  %v1068_v32 = vld [vmem:[%s10465_s12 + $0x40] sm:$0xff]  ;;  %v1087_v36 = vld [vmem:[%s10465_s12 + $0xd8] sm:$0xff]  ;;  %vm1508_vm6 = vcmask 31744   ;;  %vm1727_vm11 = vcmask 64512   ;;  %vm2011_vm12 = vcmask 1043456  }
  0x29   : > { %s10487_s4 = sshll.u32 %s8009_s8, 3  ;;  %s777_s25 = scalar_lea.vmem %s10520_s29, %s8009_s8  ;;  %v836_v17 = vld [vmem:[%s10521_s10 + $0x18] sm:$0xff]  ;;  %v835_v21 = vld [vmem:[%s10521_s10 + $0x10] sm:$0xff]  ;;  %v834_v25 = vld [vmem:[%s10521_s10 + $0x8] sm:$0xff] }
  0x2a   : > { %s8017_s7 = scalar_lea.vmem %s10519_s0, %s10487_s4  ;;  %v791_v1 = vld [vmem:[%s777_s25] sm:$0x1]  ;;  %v840_v18 = vld [vmem:[%s10521_s10 + $0x38] sm:$0xff]  ;;  %912 = vmatpush.msra.mxu0 %v836_v17  ;;  %v839_v22 = vld [vmem:[%s10521_s10 + $0x30] sm:$0xff]  ;;  %1177 = vmatpush.msra.mxu2 %v1070_v24  ;;  %s10522_s4 = sld [smem:[#allocation16_spill]] }
  0x2b   : > { %v778_v0 = vld [vmem:[%s8017_s7] sm:$0xff]  ;;  %vm792_vm1 = vcmp.gt.f32.partialorder %v791_v1, 0.5  ;;  %v844_v19 = vld [vmem:[%s10521_s10 + $0x58] sm:$0xff]  ;;  %932 = vmatpush.msra.mxu1 %v840_v18  ;;  %v843_v23 = vld [vmem:[%s10521_s10 + $0x50] sm:$0xff]  ;;  %s10524_s29 = smov %s10523_s28  ;;  %s10528_s0 = sld [smem:[#allocation18_spill]] }
  0x2c   : > { %v796_v2 = vsel %vm795_vm0, %v778_v0, 0.0  ;;  %v8026_v4 = vsel %vm792_vm1, 1, %v7832_v3  ;;  %952 = vmatpush.msra.mxu3 %v844_v19  ;;  %913 = vmatpush.msra.mxu0 %v835_v21  ;;  %v838_v26 = vld [vmem:[%s10521_s10 + $0x28] sm:$0xff]  ;;  %v833_v29 = vld [vmem:[%s10521_s10] sm:$0xff]  ;;  %v8087_v33 = vld [vmem:[%s10521_s10 + $0x78] sm:$0xff]  ;;  %s10531_s25 = sld [smem:[#allocation13_spill]]  ;;  %s10535_s30 = smov %s10534_s27 }
  0x2d   : > { %797 = vadd.xlane.f32.xlu0 %v796_v2  ;;  %933 = vmatpush.msra.mxu1 %v839_v22  ;;  %v842_v27 = vld [vmem:[%s10521_s10 + $0x48] sm:$0xff]  ;;  %v837_v30 = vld [vmem:[%s10521_s10 + $0x20] sm:$0xff]  ;;  %v852_v34 = vld [vmem:[%s10521_s10 + $0x98] sm:$0xff]  ;;  %s10536_s9 = sld [smem:[#allocation21_spill]] }
  0x2e   : > { %v7623_v6 = vpop.eup %7622  ;;  %953 = vmatpush.msra.mxu3 %v843_v23  ;;  %914 = vmatpush.msra.mxu0 %v834_v25  ;;  %v841_v31 = vld [vmem:[%s10521_s10 + $0x40] sm:$0xff]  ;;  %v856_v35 = vld [vmem:[%s10521_s10 + $0xb8] sm:$0xff]  ;;  %v8102_v37 = vld [vmem:[%s10521_s10 + $0x70] sm:$0xff]  ;;  %s10537_s2 = sld [smem:[#allocation23_spill]] }
  0x2f   : > { %v800_v7 = vmul.f32 32.0, %v7623_v6  ;;  %vm804_vm2 = vweird.f32 %v7623_v6  ;;  %934 = vmatpush.msra.mxu1 %v838_v26  ;;  %1178 = vmatpush.msra.mxu2 %v1069_v28  ;;  %v851_v38 = vld [vmem:[%s10521_s10 + $0x90] sm:$0xff]  ;;  %v8116_v42 = vld [vmem:[%s10521_s10 + $0x68] sm:$0xff]  ;;  %v8132_v47 = vld [vmem:[%s10521_s10 + $0x60] sm:$0xff] }
  0x30   : > { %954 = vmatpush.msra.mxu3 %v842_v27  ;;  %915 = vmatpush.msra.mxu0 %v833_v29  ;;  %v855_v40 = vld [vmem:[%s10521_s10 + $0xb0] sm:$0xff]  ;;  %v850_v44 = vld [vmem:[%s10521_s10 + $0x88] sm:$0xff]  ;;  %v849_v48 = vld [vmem:[%s10521_s10 + $0x80] sm:$0xff] }
  0x31   : > { %v801_v8 = vsub.f32 1.0, %v800_v7  ;;  %935 = vmatpush.msra.mxu1 %v837_v30  ;;  %1179 = vmatpush.msra.mxu2 %v1068_v32  ;;  %v1086_v41 = vld [vmem:[%s10465_s12 + $0xd0] sm:$0xff]  ;;  %v854_v45 = vld [vmem:[%s10521_s10 + $0xa8] sm:$0xff]  ;;  %v853_v50 = vld [vmem:[%s10521_s10 + $0xa0] sm:$0xff] }
  0x32   : > { %955 = vmatpush.msra.mxu3 %v841_v31  ;;  %992 = vmatpush.msrb.mxu0 %v852_v34  ;;  %v1085_v46 = vld [vmem:[%s10465_s12 + $0xc8] sm:$0xff]  ;;  %v1084_v51 = vld [vmem:[%s10465_s12 + $0xc0] sm:$0xff]  ;;  %v8162_v1 = vld [vmem:[%s10521_s10 + $0xf8] sm:$0xff] }
  0x33   : > { %v802_v9 = vmul.f32 %v7623_v6, %v801_v8  ;;  %1012 = vmatpush.msrb.mxu1 %v856_v35  ;;  %1256 = vmatpush.msrb.mxu2 %v1087_v36  ;;  %v7504_v58 = vld [vmem:[%s10522_s4] ss:$0 sm:$0xff]  ;;  %v1067_v2 = vld [vmem:[%s10465_s12 + $0x38] sm:$0xff]  ;;  %v8186_v7 = vld [vmem:[%s10521_s10 + $0xf0] sm:$0xff] }
  0x34   : > { %972 = vmatpush.msrb.mxu3 %v8087_v33  ;;  %993 = vmatpush.msrb.mxu0 %v851_v38  ;;  %v7505_v60 = vld [vmem:[%s10523_s28] ss:$0 sm:$0xff]  ;;  %v1295_v5 = vld [vmem:[%s10467_s14 + $0x58] sm:$0xff]  ;;  %v1066_v8 = vld [vmem:[%s10465_s12 + $0x30] sm:$0xff]  ;;  %s774_s28 = scalar_lea.vmem %s10525_s23, %s8009_s8  ;;  %s10538_s23 = sld [smem:[#allocation25_spill]] }
  0x35   : > { %v803_v10 = vadd.f32 %v7623_v6, %v802_v9  ;;  %1013 = vmatpush.msrb.mxu1 %v855_v40  ;;  %1257 = vmatpush.msrb.mxu2 %v1086_v41  ;;  %v1294_v9 = vld [vmem:[%s10467_s14 + $0x50] sm:$0xff]  ;;  %v1064_v17 = vld [vmem:[%s10465_s12 + $0x20] sm:$0xff]  ;;  %v8243_v19 = vld [vmem:[%s10465_s12 + $0x18] sm:$0xff] }
  0x36   : > { %973 = vmatpush.msrb.mxu3 %v8102_v37  ;;  %994 = vmatpush.msrb.mxu0 %v850_v44  ;;  %v1292_v18 = vld [vmem:[%s10467_s14 + $0x40] sm:$0xff]  ;;  %v8248_v20 = vld [vmem:[%s10465_s12 + $0x78] sm:$0xff]  ;;  %v8261_v23 = vld [vmem:[%s10465_s12 + $0x10] sm:$0xff] }
  0x37   : > { %v8028_v11 = vsel %vm804_vm2, %v7623_v6, %v803_v10  ;;  %1014 = vmatpush.msrb.mxu1 %v854_v45  ;;  %1258 = vmatpush.msrb.mxu2 %v1085_v46  ;;  %v8181_v6 = vld [vmem:[%s10521_s10 + $0xd0] sm:$0xff]  ;;  %v8199_v10 = vld [vmem:[%s10521_s10 + $0xc8] sm:$0xff]  ;;  %v1083_v21 = vld [vmem:[%s10465_s12 + $0xb8] sm:$0xff] }
  0x38   : > { %974 = vmatpush.msrb.mxu3 %v8116_v42  ;;  %995 = vmatpush.msrb.mxu0 %v849_v48  ;;  %v1311_v22 = vld [vmem:[%s10467_s14 + $0xd8] sm:$0xff]  ;;  %v8266_v24 = vld [vmem:[%s10465_s12 + $0x70] sm:$0xff]  ;;  %v8281_v27 = vld [vmem:[%s10465_s12 + $0x8] sm:$0xff] }
  0x39   : > { %1015 = vmatpush.msrb.mxu1 %v853_v50  ;;  %1259 = vmatpush.msrb.mxu2 %v1084_v51  ;;  %v1082_v25 = vld [vmem:[%s10465_s12 + $0xb0] sm:$0xff]  ;;  %v8286_v28 = vld [vmem:[%s10465_s12 + $0x68] sm:$0xff]  ;;  %v8305_v31 = vld [vmem:[%s10465_s12] sm:$0xff] }
  0x3a   : > { %975 = vmatpush.msrb.mxu3 %v8132_v47  ;;  %v1310_v26 = vld [vmem:[%s10467_s14 + $0xd0] sm:$0xff]  ;;  %v1081_v29 = vld [vmem:[%s10465_s12 + $0xa8] sm:$0xff]  ;;  %v8310_v32 = vld [vmem:[%s10465_s12 + $0x60] sm:$0xff] }
  0x3b   : > { %v1309_v30 = vld [vmem:[%s10467_s14 + $0xc8] sm:$0xff]  ;;  %v1080_v34 = vld [vmem:[%s10465_s12 + $0xa0] sm:$0xff]  ;;  %v8323_v36 = vld [vmem:[%s10465_s12 + $0x98] sm:$0xff] }
  0x3c   : > { %v1308_v35 = vld [vmem:[%s10467_s14 + $0xc0] sm:$0xff]  ;;  %v8328_v38 = vld [vmem:[%s10465_s12 + $0xf8] sm:$0xff]  ;;  %v8340_v40 = vld [vmem:[%s10465_s12 + $0x90] sm:$0xff] }
  0x3d   : > { %v8345_v41 = vld [vmem:[%s10465_s12 + $0xf0] sm:$0xff]  ;;  %v8361_v44 = vld [vmem:[%s10465_s12 + $0x88] sm:$0xff]  ;;  %v8376_v48 = vld [vmem:[%s10465_s12 + $0x80] sm:$0xff] }
  0x3e   : > { %v8366_v45 = vld [vmem:[%s10465_s12 + $0xe8] sm:$0xff]  ;;  %v1288_v50 = vld [vmem:[%s10467_s14 + $0x20] sm:$0xff]  ;;  %v8391_v51 = vld [vmem:[%s10467_s14 + $0x18] sm:$0xff] }
  0x3f   : > { %v1289_v46 = vld [vmem:[%s10467_s14 + $0x28] sm:$0xff] }
  0xa0   : > { %v798_v12 = vpop.xlane.xlu0 %797 }
  0xa1   : > { %v806_v13 = vmul.f32 %v8028_v11, %v798_v12  ;;  %v8204_v12 = vld [vmem:[%s10521_s10 + $0xe8] sm:$0xff] }
  0xa3   : > { %v8031_v14 = vsub.f32 %v778_v0, %v806_v13  ;;  %v8157_v0 = vld [vmem:[%s10521_s10 + $0xd8] sm:$0xff]  ;;  %v1065_v13 = vld [vmem:[%s10465_s12 + $0x28] sm:$0xff] }
  0xa5   : > { %v808_v15 = vmul.f32 %v8031_v14, %v8031_v14 }
  0xa7   : > { %v809_v16 = vsel %vm795_vm0, %v808_v15, 0.0  ;;  %v8219_v15 = vld [vmem:[%s10521_s10 + $0xc0] sm:$0xff] }
  0xa8   : > { %810 = vadd.xlane.f32.xlu0 %v809_v16  ;;  %v8224_v16 = vld [vmem:[%s10521_s10 + $0xe0] sm:$0xff] }
 0x11b   : > { %v811_v39 = vpop.xlane.xlu0 %810 }
 0x11c   : > { %v812_v43 = vmul.f32 %v811_v39, %v8028_v11  ;;  %v1291_v39 = vld [vmem:[%s10467_s14 + $0x38] sm:$0xff] }
 0x11e   : > { %v813_v49 = vadd.f32 1e-05, %v812_v43  ;;  %v1290_v43 = vld [vmem:[%s10467_s14 + $0x30] sm:$0xff] }
 0x120   : > { %7624 = vrsqrt.f32 %v813_v49  ;;  %vm820_vm4 = vweird.f32 %v813_v49 }
 0x126   : > { %v7625_v52 = vpop.eup %7624 }
 0x127   : > { %v815_v53 = vmul.f32 %v7625_v52, %v813_v49  ;;  %vm821_vm3 = vweird.f32 %v7625_v52  ;;  %v8381_v49 = vld [vmem:[%s10465_s12 + $0xe0] sm:$0xff] }
 0x128   : > { %vm822_vm5 = vmor %vm820_vm4, %vm821_vm3 }
 0x129   : > { %v816_v54 = vmul.f32 %v7625_v52, %v815_v53  ;;  %v1299_v53 = vld [vmem:[%s10467_s14 + $0x78] sm:$0xff] }
 0x12b   : > { %v817_v55 = vmul.f32 0.5, %v816_v54  ;;  %v1286_v54 = vld [vmem:[%s10467_s14 + $0x10] sm:$0xff] }
 0x12d   : > { %v818_v56 = vsub.f32 1.5, %v817_v55  ;;  %v1306_v55 = vld [vmem:[%s10467_s14 + $0xb0] sm:$0xff] }
 0x12f   : > { %v819_v57 = vmul.f32 %v7625_v52, %v818_v56  ;;  %v1298_v56 = vld [vmem:[%s10467_s14 + $0x70] sm:$0xff] }
 0x131   : > { %v823_v59 = vsel %vm822_vm5, %v7625_v52, %v819_v57  ;;  %v1307_v52 = vld [vmem:[%s10467_s14 + $0xb8] sm:$0xff]  ;;  %v1285_v57 = vld [vmem:[%s10467_s14 + $0x8] sm:$0xff] }
 0x132   : > { %v824_v61 = vmul.f32 %v823_v59, %v8031_v14  ;;  %v1293_v14 = vld [vmem:[%s10467_s14 + $0x48] sm:$0xff] }
 0x133   : > { %v1297_v59 = vld [vmem:[%s10467_s14 + $0x68] sm:$0xff] }
 0x134   : > { %v828_v62 = vmul.f32 %v7504_v58, %v824_v61  ;;  %v1305_v58 = vld [vmem:[%s10467_s14 + $0xa8] sm:$0xff]  ;;  %v1304_v61 = vld [vmem:[%s10467_s14 + $0xa0] sm:$0xff] }
 0x136   : > { %v8152_v63 = vadd.f32 %v7505_v60, %v828_v62  ;;  %v1284_v60 = vld [vmem:[%s10467_s14] sm:$0xff]  ;;  %v1303_v62 = vld [vmem:[%s10467_s14 + $0x98] sm:$0xff] }
 0x138   : > { %6915 = vmatmul.msk.f32.vlgmr.msra.gmra.mxu0 %vm795_vm0, %v8152_v63  ;;  %6916 = vmatmul.msk.f32.vlgmr.msra.gmra.mxu1 %vm795_vm0, %v8152_v63 }
 0x139   : > { %6917 = vmatmul.msk.f32.vlgmr.msra.gmra.mxu3 %vm795_vm0, %v8152_v63  ;;  %6925 = vmatmul.msk.f32.vlgmr.msra.gmra.mxu2 %vm795_vm0, %v8152_v63 }
 0x13a   : > { %1032 = vmatpush.msra.mxu0 %v8157_v0  ;;  %1052 = vmatpush.msra.mxu3 %v8162_v1 }
 0x13b   : > { %1156 = vmatpush.msra.mxu1 %v1067_v2  ;;  %1400 = vmatpush.msra.mxu2 %v1295_v5  ;;  %v1296_v2 = vld [vmem:[%s10467_s14 + $0x60] sm:$0xff]  ;;  %v1315_v5 = vld [vmem:[%s10467_s14 + $0xf8] sm:$0xff] }
 0x13c   : > { %1033 = vmatpush.msra.mxu0 %v8181_v6  ;;  %1053 = vmatpush.msra.mxu3 %v8186_v7 }
 0x13d   : > { %1157 = vmatpush.msra.mxu1 %v1066_v8  ;;  %1401 = vmatpush.msra.mxu2 %v1294_v9  ;;  %v1302_v8 = vld [vmem:[%s10467_s14 + $0x90] sm:$0xff] }
 0x13e   : > { %1034 = vmatpush.msra.mxu0 %v8199_v10  ;;  %1054 = vmatpush.msra.mxu3 %v8204_v12  ;;  %v1314_v9 = vld [vmem:[%s10467_s14 + $0xf0] sm:$0xff] }
 0x13f   : > { %1158 = vmatpush.msra.mxu1 %v1065_v13  ;;  %1402 = vmatpush.msra.mxu2 %v1293_v14  ;;  %v1301_v13 = vld [vmem:[%s10467_s14 + $0x88] sm:$0xff] }
 0x140   : > { %6919 = vmatmul.msk.f32.vlgmr.msrb.gmra.mxu0 %vm795_vm0, %v8152_v63  ;;  %6920 = vmatmul.msk.f32.vlgmr.msrb.gmra.mxu1 %vm795_vm0, %v8152_v63  ;;  %v1313_v14 = vld [vmem:[%s10467_s14 + $0xe8] sm:$0xff] }
 0x141   : > { %6918 = vmatmul.msk.f32.vlgmr.msrb.gmra.mxu3 %vm795_vm0, %v8152_v63  ;;  %6929 = vmatmul.msk.f32.vlgmr.msrb.gmra.mxu2 %vm795_vm0, %v8152_v63 }
 0x142   : > { %1035 = vmatpush.msra.mxu0 %v8219_v15  ;;  %1055 = vmatpush.msra.mxu3 %v8224_v16 }
 0x143   : > { %1159 = vmatpush.msra.mxu1 %v1064_v17  ;;  %1403 = vmatpush.msra.mxu2 %v1292_v18  ;;  %v1300_v17 = vld [vmem:[%s10467_s14 + $0x80] sm:$0xff] }
 0x144   : > { %1136 = vmatpush.msrb.mxu0 %v8243_v19  ;;  %1196 = vmatpush.msrb.mxu3 %v8248_v20  ;;  %v1312_v18 = vld [vmem:[%s10467_s14 + $0xe0] sm:$0xff] }
 0x145   : > { %1236 = vmatpush.msrb.mxu1 %v1083_v21  ;;  %1480 = vmatpush.msrb.mxu2 %v1311_v22 }
 0x146   : > { %1137 = vmatpush.msrb.mxu0 %v8261_v23  ;;  %1197 = vmatpush.msrb.mxu3 %v8266_v24 }
 0x147   : > { %1237 = vmatpush.msrb.mxu1 %v1082_v25  ;;  %1481 = vmatpush.msrb.mxu2 %v1310_v26  ;;  %v7509_v25 = vld [vmem:[%s10466_s13 + $0x2] ss:$0 sm:$0xff] }
 0x148   : > { %6921 = vmatmul.msk.f32.vlgmr.msra.gmra.mxu0 %vm795_vm0, %v8152_v63  ;;  %6924 = vmatmul.msk.f32.vlgmr.msra.gmra.mxu1 %vm795_vm0, %v8152_v63  ;;  %v7508_v26 = vld [vmem:[%s10464_s11 + $0x2] ss:$0 sm:$0xff] }
 0x149   : > { %6922 = vmatmul.msk.f32.vlgmr.msra.gmra.mxu3 %vm795_vm0, %v8152_v63  ;;  %6933 = vmatmul.msk.f32.vlgmr.msra.gmra.mxu2 %vm795_vm0, %v8152_v63 }
 0x14a   : > { %1138 = vmatpush.msrb.mxu0 %v8281_v27  ;;  %1198 = vmatpush.msrb.mxu3 %v8286_v28 }
 0x14b   : > { %1238 = vmatpush.msrb.mxu1 %v1081_v29  ;;  %1482 = vmatpush.msrb.mxu2 %v1309_v30 }
 0x14c   : > { %1139 = vmatpush.msrb.mxu0 %v8305_v31  ;;  %1199 = vmatpush.msrb.mxu3 %v8310_v32 }
 0x14d   : > { %1239 = vmatpush.msrb.mxu1 %v1080_v34  ;;  %1483 = vmatpush.msrb.mxu2 %v1308_v35 }
 0x14e   : > { %1216 = vmatpush.msra.mxu0 %v8323_v36  ;;  %1276 = vmatpush.msra.mxu3 %v8328_v38 }
 0x14f   : > { %1380 = vmatpush.msra.mxu1 %v1291_v39 }
 0x150   : > { %6923 = vmatmul.msk.f32.vlgmr.msrb.gmra.mxu0 %vm795_vm0, %v8152_v63  ;;  %6928 = vmatmul.msk.f32.vlgmr.msrb.gmra.mxu1 %vm795_vm0, %v8152_v63 }
 0x151   : > { %6926 = vmatmul.msk.f32.vlgmr.msrb.gmra.mxu3 %vm795_vm0, %v8152_v63  ;;  %6937 = vmatmul.msk.f32.vlgmr.msrb.gmra.mxu2 %vm795_vm0, %v8152_v63 }
 0x152   : > { %1217 = vmatpush.msra.mxu0 %v8340_v40  ;;  %1277 = vmatpush.msra.mxu3 %v8345_v41 }
 0x153   : > { %1381 = vmatpush.msra.mxu1 %v1290_v43 }
 0x154   : > { %1218 = vmatpush.msra.mxu0 %v8361_v44  ;;  %1278 = vmatpush.msra.mxu3 %v8366_v45 }
 0x155   : > { %1382 = vmatpush.msra.mxu1 %v1289_v46  ;;  %v7514_v46 = vld [vmem:[%s10464_s11 + $0x6] ss:$0 sm:$0xff] }
 0x156   : > { %1219 = vmatpush.msra.mxu0 %v8376_v48  ;;  %1279 = vmatpush.msra.mxu3 %v8381_v49 }
 0x157   : > { %1383 = vmatpush.msra.mxu1 %v1288_v50  ;;  %v7515_v50 = vld [vmem:[%s10466_s13 + $0x1] ss:$0 sm:$0xff] }
 0x158   : > { %1360 = vmatpush.msrb.mxu0 %v8391_v51  ;;  %6932 = vmatmul.msk.f32.vlgmr.msra.gmra.mxu1 %vm795_vm0, %v8152_v63 }
 0x159   : > { %6927 = vmatmul.msk.f32.vlgmr.msra.gmra.mxu0 %vm795_vm0, %v8152_v63  ;;  %6930 = vmatmul.msk.f32.vlgmr.msra.gmra.mxu3 %vm795_vm0, %v8152_v63 }
 0x15a   : > { %1460 = vmatpush.msrb.mxu1 %v1307_v52  ;;  %1420 = vmatpush.msrb.mxu3 %v1299_v53 }
 0x15b   : > { %1361 = vmatpush.msrb.mxu0 %v1286_v54  ;;  %v7507_v54 = vld [vmem:[%s10464_s11 + $0x1] ss:$0 sm:$0xff] }
 0x15c   : > { %1461 = vmatpush.msrb.mxu1 %v1306_v55  ;;  %1421 = vmatpush.msrb.mxu3 %v1298_v56 }
 0x15d   : > { %1362 = vmatpush.msrb.mxu0 %v1285_v57 }
 0x15e   : > { %1462 = vmatpush.msrb.mxu1 %v1305_v58  ;;  %1422 = vmatpush.msrb.mxu3 %v1297_v59 }
 0x15f   : > { %1363 = vmatpush.msrb.mxu0 %v1284_v60 }
 0x160   : > { %1463 = vmatpush.msrb.mxu1 %v1304_v61  ;;  %1423 = vmatpush.msrb.mxu3 %v1296_v2  ;;  %v7517_v61 = vld [vmem:[%s10468_s15 + $0x2] ss:$0 sm:$0xff]  ;;  %v7519_v2 = vld [vmem:[%s10466_s13 + $0x5] ss:$0 sm:$0xff] }
 0x161   : > { %1440 = vmatpush.msra.mxu0 %v1303_v62  ;;  %6934 = vmatmul.msk.f32.vlgmr.msrb.gmra.mxu3 %vm795_vm0, %v8152_v63  ;;  %v7518_v62 = vld [vmem:[%s10466_s13] ss:$0 sm:$0xff] }
 0x162   : > { %6931 = vmatmul.msk.f32.vlgmr.msrb.gmra.mxu0 %vm795_vm0, %v8152_v63  ;;  %6936 = vmatmul.msk.f32.vlgmr.msrb.gmra.mxu1 %vm795_vm0, %v8152_v63 }
 0x163   : > { %1500 = vmatpush.msra.mxu3 %v1315_v5  ;;  %1441 = vmatpush.msra.mxu0 %v1302_v8 }
 0x165   : > { %1501 = vmatpush.msra.mxu3 %v1314_v9  ;;  %1442 = vmatpush.msra.mxu0 %v1301_v13  ;;  %v7506_v9 = vld [vmem:[%s10464_s11] ss:$0 sm:$0xff]  ;;  %v7511_v13 = vld [vmem:[%s10464_s11 + $0x5] ss:$0 sm:$0xff] }
 0x167   : > { %1502 = vmatpush.msra.mxu3 %v1313_v14  ;;  %1443 = vmatpush.msra.mxu0 %v1300_v17 }
 0x169   : > { %1503 = vmatpush.msra.mxu3 %v1312_v18 }
 0x16a   : > { %6935 = vmatmul.msk.f32.vlgmr.msra.gmra.mxu0 %vm795_vm0, %v8152_v63  ;;  %6938 = vmatmul.msk.f32.vlgmr.msra.gmra.mxu3 %vm795_vm0, %v8152_v63  ;;  %v7513_v63 = vld [vmem:[%s10466_s13 + $0x6] ss:$0 sm:$0xff] }
 0x1b5   : > { %v917_v21 = vpop.f32.mrf.mxu0  ;;  %v937_v22 = vpop.f32.mrf.mxu1 }
 0x1b6   : > { %v938_v60 = vadd.f32 %v7507_v54, %v937_v22 }
 0x1bc   : > { %v957_v29 = vpop.f32.mrf.mxu3  ;;  %v1181_v30 = vpop.f32.mrf.mxu2 }
 0x1bd   : > { %v1182_v34 = vadd.f32 %v7509_v25, %v1181_v30  ;;  %v997_v35 = vpop.f32.mrf.mxu0  ;;  %v1017_v39 = vpop.f32.mrf.mxu1  ;;  %v958_v43 = vadd.f32 %v7508_v26, %v957_v29  ;;  %v918_v26 = vadd.f32 %v7506_v9, %v917_v21  ;;  %v7520_v30 = vld [vmem:[%s10466_s13 + $0x3] ss:$0 sm:$0xff] }
 0x1be   : > { %v1018_v29 = vadd.f32 %v7511_v13, %v1017_v39  ;;  %v7512_v21 = vld [vmem:[%s10464_s11 + $0x3] ss:$0 sm:$0xff] }
 0x1bf   : > { %6943 = vmatpush.xpose.msk.msra.mxu2 %vm1508_vm6, %v1182_v34  ;;  %v7521_v34 = vld [vmem:[%s10468_s15 + $0x6] ss:$0 sm:$0xff] }
 0x1c2   : > { %6944 = vmatmul.msk.f32.vlgmr.msra.gmra.mxu2 %vm1508_vm6, %v958_v43  ;;  %v7522_v43 = vld [vmem:[%s10466_s13 + $0x4] ss:$0 sm:$0xff] }
 0x1c4   : > { %v977_v52 = vpop.f32.mrf.mxu3  ;;  %v1261_v53 = vpop.f32.mrf.mxu2 }
 0x1c5   : > { %v1262_v55 = vadd.f32 %v7513_v63, %v1261_v53  ;;  %v1037_v56 = vpop.f32.mrf.mxu0  ;;  %v1161_v57 = vpop.f32.mrf.mxu1  ;;  %v7523_v63 = vld [vmem:[%s10468_s15 + $0x1] ss:$0 sm:$0xff] }
 0x1c6   : > { %v1038_v58 = vadd.f32 %v7514_v46, %v1037_v56  ;;  %v1162_v59 = vadd.f32 %v7515_v50, %v1161_v57  ;;  %v7510_v50 = vld [vmem:[%s10464_s11 + $0x4] ss:$0 sm:$0xff] }
 0x1c7   : > { %6951 = vmatpush.xpose.msk.msrb.mxu2 %vm1508_vm6, %v1262_v55 }
 0x1c8   : > { %6941 = vmatpush.xpose.msk.msra.mxu1 %vm1508_vm6, %v1162_v59  ;;  %v978_v59 = vadd.f32 %v7512_v21, %v977_v52  ;;  %v7526_v52 = vld [vmem:[%s10468_s15 + $0x5] ss:$0 sm:$0xff]  ;;  %v785_v21 = vld [vmem:[%s774_s28] sm:$0x1]  ;;  %s10530_s28 = sshll.u32 %s8009_s8, 3 }
 0x1c9   : > { %vm786_vm7 = vcmp.gt.f32.partialorder %v785_v21, 0.5  ;;  %s8799_s1 = scalar_lea.vmem %s10531_s25, %s10530_s28  ;;  %s7460_s25 = sshll.u32 %s7980_s6, 3 }
 0x1ca   : > { %6952 = vmatmul.msk.f32.vlgmr.msrb.gmra.mxu2 %vm1508_vm6, %v1038_v58  ;;  %s6814_s24 = scalar_lea.hbm %s10538_s23, %s7460_s25 }
 0x1cb   : > { %6942 = vmatmul.msk.f32.vlgmr.msra.gmra.mxu1 %vm1508_vm6, %v938_v60  ;;  %v998_v60 = vadd.f32 %v7510_v50, %v997_v35  ;;  %v7516_v35 = vld [vmem:[%s10464_s11 + $0x7] ss:$0 sm:$0xff] }
 0x1cc   : > { %v1057_v5 = vpop.f32.mrf.mxu3  ;;  %v1405_v8 = vpop.f32.mrf.mxu2 }
 0x1cd   : > { %v1406_v14 = vadd.f32 %v7517_v61, %v1405_v8  ;;  %v1141_v17 = vpop.f32.mrf.mxu0  ;;  %v1241_v18 = vpop.f32.mrf.mxu1  ;;  %v7524_v61 = vld [vmem:[%s10466_s13 + $0x7] ss:$0 sm:$0xff] }
 0x1ce   : > { %v1142_v22 = vadd.f32 %v7518_v62, %v1141_v17  ;;  %v1242_v25 = vadd.f32 %v7519_v2, %v1241_v18  ;;  %v7525_v62 = vld [vmem:[%s10468_s15] ss:$0 sm:$0xff]  ;;  %v1058_v18 = vadd.f32 %v7516_v35, %v1057_v5  ;;  %v7529_v5 = vld [vmem:[%s10468_s15 + $0x7] ss:$0 sm:$0xff] }
 0x1cf   : > { %1880 = vmatpush.msra.mxu2 %v1406_v14 }
 0x1d0   : > { %6939 = vmatpush.xpose.msk.msrb.mxu0 %vm1508_vm6, %v1142_v22  ;;  %6949 = vmatpush.xpose.msk.msrb.mxu1 %vm1508_vm6, %v1242_v25  ;;  %v7527_v22 = vld [vmem:[%s10468_s15 + $0x3] ss:$0 sm:$0xff]  ;;  %v7528_v25 = vld [vmem:[%s10468_s15 + $0x4] ss:$0 sm:$0xff] }
 0x1d3   : > { %6940 = vmatmul.msk.f32.vlgmr.msrb.gmra.mxu0 %vm1508_vm6, %v918_v26  ;;  %6950 = vmatmul.msk.f32.vlgmr.msrb.gmra.mxu1 %vm1508_vm6, %v1018_v29 }
 0x1d4   : > { %v1201_v39 = vpop.f32.mrf.mxu3  ;;  %v1485_v46 = vpop.f32.mrf.mxu2 }
 0x1d5   : > { %v1202_v53 = vadd.f32 %v7520_v30, %v1201_v39  ;;  %v1486_v54 = vadd.f32 %v7521_v34, %v1485_v46  ;;  %v1385_v56 = vpop.f32.mrf.mxu1  ;;  %v780_v39 = vlaneseq  ;;  %v787_v46 = vsel %vm786_vm7, 1, %v7832_v3 }
 0x1d6   : > { %v1221_v55 = vpop.f32.mrf.mxu0  ;;  %v1386_v58 = vadd.f32 %v7523_v63, %v1385_v56 }
 0x1d7   : > { %v1222_v57 = vadd.f32 %v7522_v43, %v1221_v55  ;;  %6945 = vmatpush.xpose.msk.msrb.mxu3 %vm1508_vm6, %v1202_v53  ;;  %1972 = vmatpush.msrb.mxu2 %v1486_v54  ;;  %v781_v50 = vshrl.u32 %v780_v39, 7  ;;  %v783_v53 = vand.u32 127, %v780_v39  ;;  %v788_v54 = vperm.slane %v787_v46, 0 }
 0x1d8   : > { %1857 = vmatpush.msra.mxu1 %v1386_v58 }
 0x1d9   : > { %6947 = vmatpush.xpose.msk.msra.mxu0 %vm1508_vm6, %v1222_v57  ;;  %vm784_vm8 = vcmp.le.s32.totalorder %v783_v53, %v781_v50  ;;  %vm789_vm9 = vcmp.eq.s32.totalorder %v788_v54, 1 }
 0x1da   : > { %6946 = vmatmul.msk.f32.vlgmr.msrb.gmra.mxu3 %vm1508_vm6, %v978_v59  ;;  %vm8562_vm10 = vmand %vm784_vm8, %vm789_vm9 }
 0x1dc   : > { %6948 = vmatmul.msk.f32.vlgmr.msra.gmra.mxu0 %vm1508_vm6, %v998_v60  ;;  %v1281_v2 = vpop.f32.mrf.mxu3 }
 0x1dd   : > { %v1282_v8 = vadd.f32 %v7524_v61, %v1281_v2 }
 0x1df   : > { %v1365_v9 = vpop.f32.mrf.mxu0  ;;  %v1465_v14 = vpop.f32.mrf.mxu1  ;;  %6953 = vmatpush.xpose.msk.msra.mxu3 %vm1508_vm6, %v1282_v8 }
 0x1e0   : > { %v1366_v13 = vadd.f32 %v7525_v62, %v1365_v9  ;;  %v1466_v17 = vadd.f32 %v7526_v52, %v1465_v14 }
 0x1e2   : > { %1834 = vmatpush.msrb.mxu0 %v1366_v13  ;;  %1949 = vmatpush.msrb.mxu1 %v1466_v17 }
 0x1e3   : > { %6954 = vmatmul.msk.f32.vlgmr.msra.gmra.mxu3 %vm1508_vm6, %v1058_v18 }
 0x1e4   : > { %v1425_v26 = vpop.f32.mrf.mxu3 }
 0x1e5   : > { %v1426_v29 = vadd.f32 %v7527_v22, %v1425_v26 }
 0x1e7   : > { %v1445_v30 = vpop.f32.mrf.mxu0  ;;  %1903 = vmatpush.msrb.mxu3 %v1426_v29 }
 0x1e8   : > { %v1446_v34 = vadd.f32 %v7528_v25, %v1445_v30 }
 0x1ea   : > { %1926 = vmatpush.msra.mxu0 %v1446_v34 }
 0x1ed   : > { %v1505_v43 = vpop.f32.mrf.mxu3 }
 0x1ee   : > { %v1506_v63 = vadd.f32 %v7529_v5, %v1505_v43 }
 0x1f0   : > { %1995 = vmatpush.msra.mxu3 %v1506_v63 }
 0x245   : > { %v1584_v56 = vpop.f32.mrf.mxu2 }
 0x246   : > { %v1721_v57 = vsel %vm8562_vm10, %v1584_v56, -1e+09 }
 0x247   : > { %v1734_v58 = vsel %vm1727_vm11, %v1721_v57, -inf }
 0x248   : > { %1735 = vmax.xlane.f32.xlu1 %v1734_v58  ;;  %v1558_v59 = vpop.f32.mrf.mxu1 }
 0x249   : > { %v1720_v3 = vsel %vm8562_vm10, %v1558_v59, -1e+09 }
 0x24a   : > { %v1731_v60 = vsel %vm1727_vm11, %v1720_v3, -inf }
 0x24b   : > { %1732 = vmax.xlane.f32.xlu0 %v1731_v60 }
 0x24d   : > { %v1688_v61 = vpop.f32.mrf.mxu2 }
 0x24e   : > { %v1725_v62 = vsel %vm8562_vm10, %v1688_v61, -1e+09 }
 0x24f   : > { %v1746_v52 = vsel %vm1727_vm11, %v1725_v62, -inf }
 0x250   : > { %1747 = vmax.xlane.f32.xlu2 %v1746_v52  ;;  %v1532_v35 = vpop.f32.mrf.mxu0  ;;  %v1662_v2 = vpop.f32.mrf.mxu1 }
 0x251   : > { %v8577_v8 = vsel %vm8562_vm10, %v1662_v2, -1e+09  ;;  %v1719_v13 = vsel %vm8562_vm10, %v1532_v35, -1e+09 }
 0x252   : > { %v1743_v9 = vsel %vm1727_vm11, %v8577_v8, -inf  ;;  %v1728_v14 = vsel %vm1727_vm11, %v1719_v13, -inf }
 0x253   : > { %1744 = vmax.xlane.f32.xlu0 %v1743_v9 }
 0x258   : > { %1729 = vmax.xlane.f32.xlu2 %v1728_v14 }
 0x259   : > { %v1636_v17 = vpop.f32.mrf.mxu0 }
 0x25a   : > { %v1723_v18 = vsel %vm8562_vm10, %v1636_v17, -1e+09 }
 0x25b   : > { %v1740_v29 = vsel %vm1727_vm11, %v1723_v18, -inf }
 0x25d   : > { %v1610_v22 = vpop.f32.mrf.mxu3 }
 0x25e   : > { %v1722_v25 = vsel %vm8562_vm10, %v1610_v22, -1e+09 }
 0x25f   : > { %v1737_v26 = vsel %vm1727_vm11, %v1722_v25, -inf }
 0x260   : > { %1738 = vmax.xlane.f32.xlu1 %v1737_v26  ;;  %1741 = vmax.xlane.f32.xlu2 %v1740_v29 }
 0x266   : > { %v1714_v30 = vpop.f32.mrf.mxu3 }
 0x267   : > { %v1726_v34 = vsel %vm8562_vm10, %v1714_v30, -1e+09 }
 0x268   : > { %v1749_v5 = vsel %vm1727_vm11, %v1726_v34, -inf }
 0x269   : > { %1750 = vmax.xlane.f32.xlu1 %v1749_v5 }
 0x2bb   : > { %v1736_v43 = vpop.xlane.xlu1 %1735 }
 0x2bc   : > { %v1754_v63 = vsub.f32 %v1721_v57, %v1736_v43 }
 0x2be   : > { %v1764_v21 = vmul.f32 1.442695, %v1754_v63  ;;  %v1733_v52 = vpop.xlane.xlu0 %1732 }
 0x2bf   : > { %v1753_v14 = vsub.f32 %v1720_v3, %v1733_v52 }
 0x2c0   : > { %7626 = vpow2.f32 %v1764_v21 }
 0x2c3   : > { %v1748_v39 = vpop.xlane.xlu2 %1747 }
 0x2c4   : > { %v1758_v46 = vsub.f32 %v1725_v62, %v1748_v39 }
 0x2c6   : > { %v7627_v50 = vpop.eup %7626  ;;  %v1772_v53 = vmul.f32 1.442695, %v1758_v46  ;;  %v1745_v29 = vpop.xlane.xlu0 %1744 }
 0x2c7   : > { %v1782_v54 = vsel %vm1727_vm11, %v7627_v50, 0.0  ;;  %v1757_v63 = vsub.f32 %v8577_v8, %v1745_v29 }
 0x2c8   : > { %7628 = vpow2.f32 %v1772_v53  ;;  %1783 = vadd.xlane.f32.xlu1 %v1782_v54 }
 0x2c9   : > { %v1770_v39 = vmul.f32 1.442695, %v1757_v63 }
 0x2cb   : > { %v1730_v56 = vpop.xlane.xlu2 %1729 }
 0x2cc   : > { %v1752_v58 = vsub.f32 %v1719_v13, %v1730_v56  ;;  %v1762_v13 = vmul.f32 1.442695, %v1753_v14 }
 0x2ce   : > { %v7629_v59 = vpop.eup %7628  ;;  %v1760_v60 = vmul.f32 1.442695, %v1752_v58 }
 0x2cf   : > { %v1794_v61 = vsel %vm1727_vm11, %v7629_v59, 0.0 }
 0x2d0   : > { %7630 = vpow2.f32 %v1760_v60  ;;  %1795 = vadd.xlane.f32.xlu1 %v1794_v61 }
 0x2d3   : > { %v1739_v57 = vpop.xlane.xlu1 %1738  ;;  %v1742_v35 = vpop.xlane.xlu2 %1741 }
 0x2d4   : > { %v1755_v2 = vsub.f32 %v1722_v25, %v1739_v57  ;;  %v1756_v9 = vsub.f32 %v1723_v18, %v1742_v35 }
 0x2d6   : > { %v7631_v62 = vpop.eup %7630  ;;  %v1766_v17 = vmul.f32 1.442695, %v1755_v2  ;;  %v1768_v22 = vmul.f32 1.442695, %v1756_v9 }
 0x2d7   : > { %v1776_v26 = vsel %vm1727_vm11, %v7631_v62, 0.0 }
 0x2d8   : > { %7632 = vpow2.f32 %v1766_v17  ;;  %1777 = vadd.xlane.f32.xlu0 %v1776_v26 }
 0x2d9   : > { %7634 = vpow2.f32 %v1768_v22 }
 0x2da   : > { %7636 = vpow2.f32 %v1762_v13 }
 0x2dc   : > { %v1751_v30 = vpop.xlane.xlu1 %1750 }
 0x2dd   : > { %v1759_v5 = vsub.f32 %v1726_v34, %v1751_v30 }
 0x2de   : > { %v7633_v43 = vpop.eup %7632 }
 0x2df   : > { %v1774_v21 = vmul.f32 1.442695, %v1759_v5  ;;  %v7635_v25 = vpop.eup %7634  ;;  %v1785_v18 = vsel %vm1727_vm11, %v7633_v43, 0.0 }
 0x2e0   : > { %1786 = vadd.xlane.f32.xlu2 %v1785_v18  ;;  %v1788_v3 = vsel %vm1727_vm11, %v7635_v25, 0.0  ;;  %v7637_v46 = vpop.eup %7636 }
 0x2e1   : > { %7638 = vpow2.f32 %v1774_v21  ;;  %1789 = vadd.xlane.f32.xlu1 %v1788_v3  ;;  %v1779_v34 = vsel %vm1727_vm11, %v7637_v46, 0.0 }
 0x2e2   : > { %7640 = vpow2.f32 %v1770_v39  ;;  %v2006_v39 = vld [vmem:[%s10469_s16 + $0x18] sm:$0xf] }
 0x2e7   : > { %v7639_v53 = vpop.eup %7638 }
 0x2e8   : > { %v1797_v54 = vsel %vm1727_vm11, %v7639_v53, 0.0  ;;  %1780 = vadd.xlane.f32.xlu2 %v1779_v34  ;;  %v7641_v8 = vpop.eup %7640  ;;  %v2001_v34 = vld [vmem:[%s10469_s16 + $0x4] sm:$0xf] }
 0x2e9   : > { %1798 = vadd.xlane.f32.xlu0 %v1797_v54  ;;  %v1791_v56 = vsel %vm1727_vm11, %v7641_v8, 0.0  ;;  %v2003_v54 = vld [vmem:[%s10469_s16 + $0xc] sm:$0xf] }
 0x2f0   : > { %1792 = vadd.xlane.f32.xlu2 %v1791_v56 }
 0x33b   : > { %v1784_v58 = vpop.xlane.xlu1 %1783 }
 0x33c   : > { %7642 = vrcp.f32 %v1784_v58  ;;  %v2005_v58 = vld [vmem:[%s10469_s16 + $0x14] sm:$0xf] }
 0x342   : > { %v7643_v60 = vpop.eup %7642 }
 0x343   : > { %v1810_v61 = vmul.f32 %v7643_v60, %v7627_v50  ;;  %v1796_v52 = vpop.xlane.xlu1 %1795 }
 0x344   : > { %7644 = vrcp.f32 %v1796_v52 }
 0x345   : > { %6957 = vmatmul.msk.f32.vlgmr.msra.gmra.mxu2 %vm1727_vm11, %v1810_v61 }
 0x34a   : > { %v7645_v57 = vpop.eup %7644 }
 0x34b   : > { %v1814_v35 = vmul.f32 %v7645_v57, %v7629_v59  ;;  %v1778_v2 = vpop.xlane.xlu0 %1777 }
 0x34c   : > { %7646 = vrcp.f32 %v1778_v2 }
 0x34d   : > { %6961 = vmatmul.msk.f32.vlgmr.msrb.gmra.mxu2 %vm1727_vm11, %v1814_v35 }
 0x352   : > { %v7647_v9 = vpop.eup %7646 }
 0x353   : > { %v1808_v14 = vmul.f32 %v7647_v9, %v7631_v62  ;;  %v1787_v17 = vpop.xlane.xlu2 %1786 }
 0x354   : > { %v1790_v22 = vpop.xlane.xlu1 %1789  ;;  %7648 = vrcp.f32 %v1787_v17 }
 0x355   : > { %7650 = vrcp.f32 %v1790_v22  ;;  %6955 = vmatmul.msk.f32.vlgmr.msrb.gmra.mxu0 %vm1727_vm11, %v1808_v14 }
 0x35a   : > { %v7649_v26 = vpop.eup %7648 }
 0x35b   : > { %v7651_v50 = vpop.eup %7650  ;;  %v1811_v13 = vmul.f32 %v7649_v26, %v7633_v43  ;;  %v1781_v30 = vpop.xlane.xlu2 %1780 }
 0x35c   : > { %v1799_v29 = vpop.xlane.xlu0 %1798  ;;  %v1812_v5 = vmul.f32 %v7651_v50, %v7635_v25  ;;  %v2002_v25 = vld [vmem:[%s10469_s16 + $0x8] sm:$0xf] }
 0x35d   : > { %7652 = vrcp.f32 %v1799_v29  ;;  %6958 = vmatmul.msk.f32.vlgmr.msrb.gmra.mxu3 %vm1727_vm11, %v1811_v13  ;;  %6967 = vmatpush.msk.msra.mxu2 %vm2011_vm12, %v2002_v25 }
 0x35e   : > { %7654 = vrcp.f32 %v1781_v30  ;;  %6959 = vmatmul.msk.f32.vlgmr.msra.gmra.mxu0 %vm1727_vm11, %v1812_v5  ;;  %6969 = vmatpush.msk.msrb.mxu3 %vm2011_vm12, %v2003_v54 }
 0x35f   : > { %6975 = vmatpush.msk.msrb.mxu2 %vm2011_vm12, %v2006_v39  ;;  %v7766_v39 = vld [vmem:[%s8017_s7] sm:$0xff]  ;;  %s10529_s7 = sld [smem:[#allocation19_spill]] }
 0x363   : > { %v7653_v59 = vpop.eup %7652  ;;  %v1793_v21 = vpop.xlane.xlu2 %1792 }
 0x364   : > { %v7655_v62 = vpop.eup %7654  ;;  %v1815_v63 = vmul.f32 %v7653_v59, %v7639_v53  ;;  %7656 = vrcp.f32 %v1793_v21  ;;  %v2004_v53 = vld [vmem:[%s10469_s16 + $0x10] sm:$0xf] }
 0x365   : > { %v1809_v18 = vmul.f32 %v7655_v62, %v7637_v46  ;;  %v2000_v46 = vld [vmem:[%s10469_s16] sm:$0xf] }
 0x366   : > { %6962 = vmatmul.msk.f32.vlgmr.msra.gmra.mxu3 %vm1727_vm11, %v1815_v63  ;;  %6963 = vmatpush.msk.msrb.mxu0 %vm2011_vm12, %v2000_v46 }
 0x367   : > { %6956 = vmatmul.msk.f32.vlgmr.msra.gmra.mxu1 %vm1727_vm11, %v1809_v18 }
 0x368   : > { %6971 = vmatpush.msk.msra.mxu0 %vm2011_vm12, %v2004_v53  ;;  %6965 = vmatpush.msk.msra.mxu1 %vm2011_vm12, %v2001_v34 }
 0x36a   : > { %v7657_v43 = vpop.eup %7656 }
 0x36b   : > { %v1813_v3 = vmul.f32 %v7657_v43, %v7641_v8  ;;  %v2007_v8 = vld [vmem:[%s10469_s16 + $0x1c] sm:$0xf]  ;;  %v7530_v43 = vld [vmem:[%s10470_s17] ss:$0 sm:$0xff] }
 0x36c   : > { %6977 = vmatpush.msk.msra.mxu3 %vm2011_vm12, %v2007_v8 }
 0x36f   : > { %6960 = vmatmul.msk.f32.vlgmr.msrb.gmra.mxu1 %vm1727_vm11, %v1813_v3 }
 0x370   : > { %6973 = vmatpush.msk.msrb.mxu1 %vm2011_vm12, %v2005_v58 }
 0x3c8   : > { %v1882_v56 = vpop.f32.mrf.mxu2 }
 0x3c9   : > { %6968 = vmatmul.msk.f32.vlgmr.msra.gmra.mxu2 %vm1508_vm6, %v1882_v56 }
 0x3d0   : > { %v1974_v60 = vpop.f32.mrf.mxu2 }
 0x3d1   : > { %6976 = vmatmul.msk.f32.vlgmr.msrb.gmra.mxu2 %vm1508_vm6, %v1974_v60  ;;  %v2273_v60 = vld [vmem:[%s10521_s10 + $0x18] sm:$0xff] }
 0x3d2   : > { %v1836_v61 = vpop.f32.mrf.mxu0 }
 0x3d3   : > { %6964 = vmatmul.msk.f32.vlgmr.msrb.gmra.mxu0 %vm1508_vm6, %v1836_v61  ;;  %v2277_v61 = vld [vmem:[%s10521_s10 + $0x38] sm:$0xff] }
 0x3d4   : > { %2349 = vmatpush.msrb.mxu0 %v2273_v60  ;;  %v2739_v60 = vld [vmem:[%s10467_s14 + $0x78] sm:$0xff] }
 0x3db   : > { %v1928_v52 = vpop.f32.mrf.mxu0 }
 0x3dc   : > { %6972 = vmatmul.msk.f32.vlgmr.msra.gmra.mxu0 %vm1508_vm6, %v1928_v52  ;;  %v2281_v52 = vld [vmem:[%s10521_s10 + $0x58] sm:$0xff] }
 0x3dd   : > { %2389 = vmatpush.msra.mxu2 %v2281_v52  ;;  %v2738_v52 = vld [vmem:[%s10467_s14 + $0x70] sm:$0xff] }
 0x3e0   : > { %v1905_v57 = vpop.f32.mrf.mxu3 }
 0x3e1   : > { %6970 = vmatmul.msk.f32.vlgmr.msrb.gmra.mxu3 %vm1508_vm6, %v1905_v57  ;;  %v2272_v57 = vld [vmem:[%s10521_s10 + $0x10] sm:$0xff] }
 0x3e2   : > { %2409 = vmatpush.msrb.mxu3 %v8087_v33  ;;  %2350 = vmatpush.msrb.mxu0 %v2272_v57  ;;  %v2743_v57 = vld [vmem:[%s10467_s14 + $0x98] sm:$0xff] }
 0x3e4   : > { %v1859_v35 = vpop.f32.mrf.mxu1  ;;  %2410 = vmatpush.msrb.mxu3 %v8102_v37 }
 0x3e5   : > { %6966 = vmatmul.msk.f32.vlgmr.msra.gmra.mxu1 %vm1508_vm6, %v1859_v35  ;;  %v2276_v35 = vld [vmem:[%s10521_s10 + $0x30] sm:$0xff] }
 0x3e6   : > { %2411 = vmatpush.msrb.mxu3 %v8116_v42  ;;  %2369 = vmatpush.msra.mxu1 %v2277_v61  ;;  %v2734_v61 = vld [vmem:[%s10467_s14 + $0x50] sm:$0xff] }
 0x3e8   : > { %2412 = vmatpush.msrb.mxu3 %v8132_v47  ;;  %2370 = vmatpush.msra.mxu1 %v2276_v35  ;;  %v2747_v35 = vld [vmem:[%s10467_s14 + $0xb8] sm:$0xff] }
 0x3e9   : > { %v1997_v2 = vpop.f32.mrf.mxu3 }
 0x3ea   : > { %6978 = vmatmul.msk.f32.vlgmr.msra.gmra.mxu3 %vm1508_vm6, %v1997_v2  ;;  %v2280_v2 = vld [vmem:[%s10521_s10 + $0x50] sm:$0xff] }
 0x3eb   : > { %2489 = vmatpush.msra.mxu3 %v8162_v1  ;;  %2390 = vmatpush.msra.mxu2 %v2280_v2  ;;  %v2733_v2 = vld [vmem:[%s10467_s14 + $0x48] sm:$0xff] }
 0x3ec   : > { %v1951_v9 = vpop.f32.mrf.mxu1 }
 0x3ed   : > { %6974 = vmatmul.msk.f32.vlgmr.msrb.gmra.mxu1 %vm1508_vm6, %v1951_v9  ;;  %2490 = vmatpush.msra.mxu3 %v8186_v7  ;;  %v2271_v9 = vld [vmem:[%s10521_s10 + $0x8] sm:$0xff] }
 0x3ee   : > { %2351 = vmatpush.msrb.mxu0 %v2271_v9  ;;  %v2737_v9 = vld [vmem:[%s10467_s14 + $0x68] sm:$0xff] }
 0x3ef   : > { %2491 = vmatpush.msra.mxu3 %v8204_v12 }
 0x3f1   : > { %2492 = vmatpush.msra.mxu3 %v8224_v16 }
 0x44c   : > { %v2084_v37 = vpop.f32.mrf.mxu2 }
 0x44d   : > { %v2220_v22 = vsel %vm795_vm0, %v2084_v37, 0.0  ;;  %v2279_v37 = vld [vmem:[%s10521_s10 + $0x48] sm:$0xff] }
 0x44e   : > { %2391 = vmatpush.msra.mxu2 %v2279_v37  ;;  %v2746_v37 = vld [vmem:[%s10467_s14 + $0xb0] sm:$0xff] }
 0x450   : > { %v2032_v33 = vpop.f32.mrf.mxu0 }
 0x451   : > { %v2217_v42 = vsel %vm795_vm0, %v2032_v33, 0.0  ;;  %v2275_v33 = vld [vmem:[%s10521_s10 + $0x28] sm:$0xff] }
 0x452   : > { %2371 = vmatpush.msra.mxu1 %v2275_v33  ;;  %v2742_v33 = vld [vmem:[%s10467_s14 + $0x90] sm:$0xff] }
 0x454   : > { %v2188_v16 = vpop.f32.mrf.mxu2 }
 0x455   : > { %v2228_v62 = vsel %vm795_vm0, %v2188_v16, 0.0 }
 0x459   : > { %v2136_v26 = vpop.f32.mrf.mxu0 }
 0x45a   : > { %v2224_v12 = vsel %vm795_vm0, %v2136_v26, 0.0  ;;  %v2292_v26 = vld [vmem:[%s10521_s10 + $0xb0] sm:$0xff] }
 0x462   : > { %v2058_v14 = vpop.f32.mrf.mxu1 }
 0x463   : > { %v2218_v47 = vsel %vm795_vm0, %v2058_v14, 0.0  ;;  %v2270_v14 = vld [vmem:[%s10521_s10] sm:$0xff] }
 0x464   : > { %v2219_v17 = vadd.f32 %v2218_v47, %v2217_v42  ;;  %v2110_v1 = vpop.f32.mrf.mxu3  ;;  %v2274_v42 = vld [vmem:[%s10521_s10 + $0x20] sm:$0xff]  ;;  %2352 = vmatpush.msrb.mxu0 %v2270_v14 }
 0x465   : > { %v2222_v7 = vsel %vm795_vm0, %v2110_v1, 0.0  ;;  %v2278_v47 = vld [vmem:[%s10521_s10 + $0x40] sm:$0xff]  ;;  %2372 = vmatpush.msra.mxu1 %v2274_v42  ;;  %v2288_v1 = vld [vmem:[%s10521_s10 + $0x90] sm:$0xff] }
 0x466   : > { %v2221_v50 = vadd.f32 %v2220_v22, %v2219_v17  ;;  %2392 = vmatpush.msra.mxu2 %v2278_v47  ;;  %v2289_v17 = vld [vmem:[%s10521_s10 + $0x98] sm:$0xff]  ;;  %v2732_v14 = vld [vmem:[%s10467_s14 + $0x40] sm:$0xff]  ;;  %v2741_v47 = vld [vmem:[%s10467_s14 + $0x88] sm:$0xff] }
 0x467   : > { %v2293_v22 = vld [vmem:[%s10521_s10 + $0xb8] sm:$0xff]  ;;  %2429 = vmatpush.msra.mxu0 %v2289_v17  ;;  %v2736_v42 = vld [vmem:[%s10467_s14 + $0x60] sm:$0xff]  ;;  %v2745_v17 = vld [vmem:[%s10467_s14 + $0xa8] sm:$0xff] }
 0x468   : > { %v2223_v13 = vadd.f32 %v2222_v7, %v2221_v50  ;;  %2469 = vmatpush.msrb.mxu2 %v8157_v0  ;;  %2449 = vmatpush.msrb.mxu1 %v2293_v22  ;;  %v2287_v7 = vld [vmem:[%s10521_s10 + $0x88] sm:$0xff]  ;;  %v2740_v22 = vld [vmem:[%s10467_s14 + $0x80] sm:$0xff] }
 0x469   : > { %v2291_v0 = vld [vmem:[%s10521_s10 + $0xa8] sm:$0xff]  ;;  %2430 = vmatpush.msra.mxu0 %v2288_v1  ;;  %v2744_v1 = vld [vmem:[%s10467_s14 + $0xa0] sm:$0xff] }
 0x46a   : > { %v2162_v29 = vpop.f32.mrf.mxu1  ;;  %v2225_v30 = vadd.f32 %v2224_v12, %v2223_v13  ;;  %2470 = vmatpush.msrb.mxu2 %v8181_v6  ;;  %2450 = vmatpush.msrb.mxu1 %v2292_v26  ;;  %v2286_v12 = vld [vmem:[%s10521_s10 + $0x80] sm:$0xff]  ;;  %v2751_v26 = vld [vmem:[%s10467_s14 + $0xd8] sm:$0xff] }
 0x46b   : > { %v2226_v5 = vsel %vm795_vm0, %v2162_v29, 0.0  ;;  %v2290_v6 = vld [vmem:[%s10521_s10 + $0xa0] sm:$0xff]  ;;  %2431 = vmatpush.msra.mxu0 %v2287_v7  ;;  %v2750_v7 = vld [vmem:[%s10467_s14 + $0xd0] sm:$0xff] }
 0x46c   : > { %v2227_v59 = vadd.f32 %v2226_v5, %v2225_v30  ;;  %2471 = vmatpush.msrb.mxu2 %v8199_v10  ;;  %2451 = vmatpush.msrb.mxu1 %v2291_v0  ;;  %v2754_v0 = vld [vmem:[%s10467_s14 + $0xf0] sm:$0xff] }
 0x46d   : > { %v2214_v63 = vpop.f32.mrf.mxu3  ;;  %2432 = vmatpush.msra.mxu0 %v2286_v12  ;;  %v2753_v12 = vld [vmem:[%s10467_s14 + $0xe8] sm:$0xff] }
 0x46e   : > { %v2229_v21 = vadd.f32 %v2228_v62, %v2227_v59  ;;  %v2230_v18 = vsel %vm795_vm0, %v2214_v63, 0.0  ;;  %2472 = vmatpush.msrb.mxu2 %v8219_v15  ;;  %2452 = vmatpush.msrb.mxu1 %v2290_v6  ;;  %v7531_v63 = vld [vmem:[%s10528_s0] ss:$0 sm:$0xff] }
 0x46f   : > { %v7532_v15 = vld [vmem:[%s10529_s7] ss:$0 sm:$0xff] }
 0x470   : > { %v2231_v3 = vadd.f32 %v2230_v18, %v2229_v21  ;;  %v2748_v6 = vld [vmem:[%s10467_s14 + $0xc0] sm:$0xff] }
 0x472   : > { %v2236_v25 = vadd.f32 %v7530_v43, %v2231_v3 }
 0x474   : > { %v8670_v46 = vadd.f32 %v7766_v39, %v2236_v25  ;;  %v2504_v25 = vld [vmem:[%s10465_s12 + $0x38] sm:$0xff] }
 0x475   : > { %v2508_v39 = vld [vmem:[%s10465_s12 + $0x58] sm:$0xff] }
 0x476   : > { %v2240_v53 = vsel %vm795_vm0, %v8670_v46, 0.0 }
 0x477   : > { %2241 = vadd.xlane.f32.xlu0 %v2240_v53  ;;  %v2503_v53 = vld [vmem:[%s10465_s12 + $0x30] sm:$0xff] }
 0x4ea   : > { %v2242_v54 = vpop.xlane.xlu0 %2241 }
 0x4eb   : > { %v2243_v34 = vmul.f32 %v2242_v54, %v8028_v11  ;;  %v2507_v54 = vld [vmem:[%s10465_s12 + $0x50] sm:$0xff] }
 0x4ed   : > { %v8676_v8 = vsub.f32 %v8670_v46, %v2243_v34  ;;  %v2502_v34 = vld [vmem:[%s10465_s12 + $0x28] sm:$0xff] }
 0x4ef   : > { %v2245_v56 = vmul.f32 %v8676_v8, %v8676_v8 }
 0x4f1   : > { %v2246_v58 = vsel %vm795_vm0, %v2245_v56, 0.0  ;;  %v2728_v56 = vld [vmem:[%s10467_s14 + $0x20] sm:$0xff] }
 0x4f2   : > { %2247 = vadd.xlane.f32.xlu1 %v2246_v58  ;;  %v2735_v58 = vld [vmem:[%s10467_s14 + $0x58] sm:$0xff] }
 0x565   : > { %v2248_v50 = vpop.xlane.xlu1 %2247 }
 0x566   : > { %v2249_v13 = vmul.f32 %v2248_v50, %v8028_v11  ;;  %v2755_v50 = vld [vmem:[%s10467_s14 + $0xf8] sm:$0xff] }
 0x568   : > { %v2250_v16 = vadd.f32 1e-05, %v2249_v13  ;;  %v2749_v13 = vld [vmem:[%s10467_s14 + $0xc8] sm:$0xff] }
 0x56a   : > { %7658 = vrsqrt.f32 %v2250_v16  ;;  %vm2257_vm14 = vweird.f32 %v2250_v16 }
 0x570   : > { %v7659_v29 = vpop.eup %7658 }
 0x571   : > { %v2252_v30 = vmul.f32 %v7659_v29, %v2250_v16  ;;  %vm2258_vm13 = vweird.f32 %v7659_v29  ;;  %v2752_v16 = vld [vmem:[%s10467_s14 + $0xe0] sm:$0xff] }
 0x572   : > { %vm2259_vm15 = vmor %vm2257_vm14, %vm2258_vm13 }
 0x573   : > { %v2253_v5 = vmul.f32 %v7659_v29, %v2252_v30 }
 0x575   : > { %v2254_v10 = vmul.f32 0.5, %v2253_v5 }
 0x577   : > { %v2255_v59 = vsub.f32 1.5, %v2254_v10 }
 0x579   : > { %v2256_v62 = vmul.f32 %v7659_v29, %v2255_v59 }
 0x57b   : > { %v2260_v21 = vsel %vm2259_vm15, %v7659_v29, %v2256_v62 }
 0x57c   : > { %v2261_v18 = vmul.f32 %v2260_v21, %v8676_v8  ;;  %v2523_v8 = vld [vmem:[%s10465_s12 + $0xd0] sm:$0xff]  ;;  %v7542_v21 = vld [vmem:[%s10466_s13 + $0x1] ss:$0 sm:$0xff] }
 0x57e   : > { %v2265_v43 = vmul.f32 %v7531_v63, %v2261_v18  ;;  %v7541_v63 = vld [vmem:[%s10466_s13] ss:$0 sm:$0xff] }
 0x580   : > { %v2269_v3 = vadd.f32 %v7532_v15, %v2265_v43  ;;  %v7533_v43 = vld [vmem:[%s10464_s11] ss:$0 sm:$0xff] }
 0x582   : > { %6979 = vmatmul.msk.f32.vlgmr.msrb.gmra.mxu0 %vm795_vm0, %v2269_v3  ;;  %6980 = vmatmul.msk.f32.vlgmr.msra.gmra.mxu1 %vm795_vm0, %v2269_v3 }
 0x583   : > { %6981 = vmatmul.msk.f32.vlgmr.msra.gmra.mxu2 %vm795_vm0, %v2269_v3  ;;  %6982 = vmatmul.msk.f32.vlgmr.msrb.gmra.mxu3 %vm795_vm0, %v2269_v3 }
 0x584   : > { %2576 = vmatpush.msrb.mxu0 %v8243_v19  ;;  %2596 = vmatpush.msra.mxu1 %v2504_v25  ;;  %v2506_v19 = vld [vmem:[%s10465_s12 + $0x48] sm:$0xff] }
 0x585   : > { %2616 = vmatpush.msra.mxu2 %v2508_v39  ;;  %2636 = vmatpush.msrb.mxu3 %v8248_v20  ;;  %v2501_v20 = vld [vmem:[%s10465_s12 + $0x20] sm:$0xff] }
 0x586   : > { %2577 = vmatpush.msrb.mxu0 %v8261_v23  ;;  %2597 = vmatpush.msra.mxu1 %v2503_v53  ;;  %v2505_v23 = vld [vmem:[%s10465_s12 + $0x40] sm:$0xff] }
 0x587   : > { %2617 = vmatpush.msra.mxu2 %v2507_v54  ;;  %2637 = vmatpush.msrb.mxu3 %v8266_v24  ;;  %v2520_v24 = vld [vmem:[%s10465_s12 + $0xb8] sm:$0xff] }
 0x588   : > { %2578 = vmatpush.msrb.mxu0 %v8281_v27  ;;  %2598 = vmatpush.msra.mxu1 %v2502_v34  ;;  %v2524_v27 = vld [vmem:[%s10465_s12 + $0xd8] sm:$0xff] }
 0x589   : > { %2618 = vmatpush.msra.mxu2 %v2506_v19  ;;  %2638 = vmatpush.msrb.mxu3 %v8286_v28  ;;  %v2519_v28 = vld [vmem:[%s10465_s12 + $0xb0] sm:$0xff] }
 0x58a   : > { %6983 = vmatmul.msk.f32.vlgmr.msra.gmra.mxu0 %vm795_vm0, %v2269_v3  ;;  %6984 = vmatmul.msk.f32.vlgmr.msrb.gmra.mxu1 %vm795_vm0, %v2269_v3 }
 0x58b   : > { %6985 = vmatmul.msk.f32.vlgmr.msrb.gmra.mxu2 %vm795_vm0, %v2269_v3  ;;  %6986 = vmatmul.msk.f32.vlgmr.msra.gmra.mxu3 %vm795_vm0, %v2269_v3  ;;  %v7534_v3 = vld [vmem:[%s10464_s11 + $0x1] ss:$0 sm:$0xff] }
 0x58c   : > { %2579 = vmatpush.msrb.mxu0 %v8305_v31  ;;  %2599 = vmatpush.msra.mxu1 %v2501_v20  ;;  %v8814_v31 = vld [vmem:[%s8799_s1] sm:$0xff] }
 0x58d   : > { %2619 = vmatpush.msra.mxu2 %v2505_v23  ;;  %2639 = vmatpush.msrb.mxu3 %v8310_v32  ;;  %v2518_v32 = vld [vmem:[%s10465_s12 + $0xa8] sm:$0xff]  ;;  %v7543_v20 = vld [vmem:[%s10466_s13 + $0x2] ss:$0 sm:$0xff]  ;;  %v7544_v23 = vld [vmem:[%s10466_s13 + $0x3] ss:$0 sm:$0xff] }
 0x58e   : > { %2656 = vmatpush.msra.mxu0 %v8323_v36  ;;  %2676 = vmatpush.msrb.mxu1 %v2520_v24  ;;  %v2522_v36 = vld [vmem:[%s10465_s12 + $0xc8] sm:$0xff]  ;;  %v7545_v24 = vld [vmem:[%s10466_s13 + $0x4] ss:$0 sm:$0xff] }
 0x58f   : > { %2696 = vmatpush.msrb.mxu2 %v2524_v27  ;;  %2716 = vmatpush.msra.mxu3 %v8328_v38  ;;  %v2517_v38 = vld [vmem:[%s10465_s12 + $0xa0] sm:$0xff] }
 0x590   : > { %2657 = vmatpush.msra.mxu0 %v8340_v40  ;;  %2677 = vmatpush.msrb.mxu1 %v2519_v28  ;;  %v2521_v40 = vld [vmem:[%s10465_s12 + $0xc0] sm:$0xff] }
 0x591   : > { %2697 = vmatpush.msrb.mxu2 %v2523_v8  ;;  %2717 = vmatpush.msra.mxu3 %v8345_v41  ;;  %v2731_v41 = vld [vmem:[%s10467_s14 + $0x38] sm:$0xff]  ;;  %v7546_v27 = vld [vmem:[%s10466_s13 + $0x5] ss:$0 sm:$0xff]  ;;  %v7535_v28 = vld [vmem:[%s10464_s11 + $0x2] ss:$0 sm:$0xff] }
 0x592   : > { %6987 = vmatmul.msk.f32.vlgmr.msrb.gmra.mxu0 %vm795_vm0, %v8814_v31  ;;  %6988 = vmatmul.msk.f32.vlgmr.msra.gmra.mxu1 %vm795_vm0, %v8814_v31  ;;  %v7536_v8 = vld [vmem:[%s10464_s11 + $0x3] ss:$0 sm:$0xff] }
 0x593   : > { %6989 = vmatmul.msk.f32.vlgmr.msra.gmra.mxu2 %vm795_vm0, %v8814_v31  ;;  %6990 = vmatmul.msk.f32.vlgmr.msrb.gmra.mxu3 %vm795_vm0, %v8814_v31 }
 0x594   : > { %2658 = vmatpush.msra.mxu0 %v8361_v44  ;;  %2678 = vmatpush.msrb.mxu1 %v2518_v32  ;;  %v2726_v44 = vld [vmem:[%s10467_s14 + $0x10] sm:$0xff] }
 0x595   : > { %2698 = vmatpush.msrb.mxu2 %v2522_v36  ;;  %2718 = vmatpush.msra.mxu3 %v8366_v45  ;;  %v2730_v45 = vld [vmem:[%s10467_s14 + $0x30] sm:$0xff]  ;;  %v7537_v36 = vld [vmem:[%s10464_s11 + $0x4] ss:$0 sm:$0xff] }
 0x596   : > { %2659 = vmatpush.msra.mxu0 %v8376_v48  ;;  %2679 = vmatpush.msrb.mxu1 %v2517_v38  ;;  %v2725_v48 = vld [vmem:[%s10467_s14 + $0x8] sm:$0xff]  ;;  %v7538_v38 = vld [vmem:[%s10464_s11 + $0x5] ss:$0 sm:$0xff] }
 0x597   : > { %2699 = vmatpush.msrb.mxu2 %v2521_v40  ;;  %2719 = vmatpush.msra.mxu3 %v8381_v49  ;;  %v2729_v49 = vld [vmem:[%s10467_s14 + $0x28] sm:$0xff] }
 0x598   : > { %2800 = vmatpush.msrb.mxu0 %v8391_v51  ;;  %2820 = vmatpush.msra.mxu1 %v2731_v41  ;;  %v2724_v51 = vld [vmem:[%s10467_s14] sm:$0xff] }
 0x599   : > { %2840 = vmatpush.msra.mxu2 %v2735_v58  ;;  %2860 = vmatpush.msrb.mxu3 %v2739_v60 }
 0x59a   : > { %6991 = vmatmul.msk.f32.vlgmr.msra.gmra.mxu0 %vm795_vm0, %v8814_v31  ;;  %6992 = vmatmul.msk.f32.vlgmr.msrb.gmra.mxu1 %vm795_vm0, %v8814_v31 }
 0x59b   : > { %6993 = vmatmul.msk.f32.vlgmr.msrb.gmra.mxu2 %vm795_vm0, %v8814_v31  ;;  %6994 = vmatmul.msk.f32.vlgmr.msra.gmra.mxu3 %vm795_vm0, %v8814_v31 }
 0x59c   : > { %2801 = vmatpush.msrb.mxu0 %v2726_v44  ;;  %2821 = vmatpush.msra.mxu1 %v2730_v45 }
 0x59d   : > { %2841 = vmatpush.msra.mxu2 %v2734_v61  ;;  %2861 = vmatpush.msrb.mxu3 %v2738_v52  ;;  %v7547_v61 = vld [vmem:[%s10466_s13 + $0x6] ss:$0 sm:$0xff]  ;;  %v7548_v52 = vld [vmem:[%s10466_s13 + $0x7] ss:$0 sm:$0xff] }
 0x59e   : > { %2802 = vmatpush.msrb.mxu0 %v2725_v48  ;;  %2822 = vmatpush.msra.mxu1 %v2729_v49 }
 0x59f   : > { %2842 = vmatpush.msra.mxu2 %v2733_v2  ;;  %2862 = vmatpush.msrb.mxu3 %v2737_v9 }
 0x5a0   : > { %2803 = vmatpush.msrb.mxu0 %v2724_v51  ;;  %2823 = vmatpush.msra.mxu1 %v2728_v56 }
 0x5a1   : > { %2843 = vmatpush.msra.mxu2 %v2732_v14  ;;  %2863 = vmatpush.msrb.mxu3 %v2736_v42 }
 0x5a2   : > { %6995 = vmatmul.msk.f32.vlgmr.msrb.gmra.mxu0 %vm795_vm0, %v8814_v31  ;;  %6996 = vmatmul.msk.f32.vlgmr.msra.gmra.mxu1 %vm795_vm0, %v8814_v31 }
 0x5a3   : > { %2880 = vmatpush.msra.mxu0 %v2743_v57  ;;  %2900 = vmatpush.msrb.mxu1 %v2747_v35  ;;  %v7539_v57 = vld [vmem:[%s10464_s11 + $0x6] ss:$0 sm:$0xff]  ;;  %v7540_v35 = vld [vmem:[%s10464_s11 + $0x7] ss:$0 sm:$0xff] }
 0x5a4   : > { %6997 = vmatmul.msk.f32.vlgmr.msra.gmra.mxu2 %vm795_vm0, %v8814_v31  ;;  %6998 = vmatmul.msk.f32.vlgmr.msrb.gmra.mxu3 %vm795_vm0, %v8814_v31 }
 0x5a5   : > { %2881 = vmatpush.msra.mxu0 %v2742_v33  ;;  %2901 = vmatpush.msrb.mxu1 %v2746_v37 }
 0x5a6   : > { %2920 = vmatpush.msrb.mxu2 %v2751_v26  ;;  %2940 = vmatpush.msra.mxu3 %v2755_v50 }
 0x5a7   : > { %2882 = vmatpush.msra.mxu0 %v2741_v47  ;;  %2902 = vmatpush.msrb.mxu1 %v2745_v17  ;;  %v7549_v47 = vld [vmem:[%s10468_s15] ss:$0 sm:$0xff]  ;;  %v7550_v17 = vld [vmem:[%s10468_s15 + $0x1] ss:$0 sm:$0xff] }
 0x5a8   : > { %2921 = vmatpush.msrb.mxu2 %v2750_v7  ;;  %2941 = vmatpush.msra.mxu3 %v2754_v0  ;;  %v7551_v7 = vld [vmem:[%s10468_s15 + $0x4] ss:$0 sm:$0xff]  ;;  %v7552_v0 = vld [vmem:[%s10468_s15 + $0x5] ss:$0 sm:$0xff] }
 0x5a9   : > { %2883 = vmatpush.msra.mxu0 %v2740_v22  ;;  %2903 = vmatpush.msrb.mxu1 %v2744_v1 }
 0x5aa   : > { %6999 = vmatmul.msk.f32.vlgmr.msra.gmra.mxu0 %vm795_vm0, %v8814_v31  ;;  %7000 = vmatmul.msk.f32.vlgmr.msrb.gmra.mxu1 %vm795_vm0, %v8814_v31 }
 0x5ab   : > { %2922 = vmatpush.msrb.mxu2 %v2749_v13  ;;  %2942 = vmatpush.msra.mxu3 %v2753_v12 }
 0x5ad   : > { %2923 = vmatpush.msrb.mxu2 %v2748_v6  ;;  %2943 = vmatpush.msra.mxu3 %v2752_v16  ;;  %v7553_v6 = vld [vmem:[%s10468_s15 + $0x2] ss:$0 sm:$0xff]  ;;  %v7554_v16 = vld [vmem:[%s10468_s15 + $0x3] ss:$0 sm:$0xff] }
 0x5ae   : > { %7001 = vmatmul.msk.f32.vlgmr.msrb.gmra.mxu2 %vm795_vm0, %v8814_v31  ;;  %7002 = vmatmul.msk.f32.vlgmr.msra.gmra.mxu3 %vm795_vm0, %v8814_v31 }
 0x5ff   : > { %v2354_v29 = vpop.f32.mrf.mxu0  ;;  %v2374_v30 = vpop.f32.mrf.mxu1 }
 0x600   : > { %v2355_v34 = vadd.f32 %v7533_v43, %v2354_v29  ;;  %v2375_v19 = vadd.f32 %v7534_v3, %v2374_v30 }
 0x606   : > { %v2394_v5 = vpop.f32.mrf.mxu2  ;;  %v2414_v10 = vpop.f32.mrf.mxu3 }
 0x607   : > { %v2434_v59 = vpop.f32.mrf.mxu0  ;;  %v2454_v62 = vpop.f32.mrf.mxu1  ;;  %v2395_v51 = vadd.f32 %v7535_v28, %v2394_v5  ;;  %v2415_v56 = vadd.f32 %v7536_v8, %v2414_v10 }
 0x608   : > { %v2435_v58 = vadd.f32 %v7537_v36, %v2434_v59  ;;  %v2455_v60 = vadd.f32 %v7538_v38, %v2454_v62 }
 0x60e   : > { %v2474_v15 = vpop.f32.mrf.mxu2  ;;  %v2494_v18 = vpop.f32.mrf.mxu3 }
 0x60f   : > { %v2581_v25 = vpop.f32.mrf.mxu0  ;;  %v2601_v39 = vpop.f32.mrf.mxu1  ;;  %v2475_v14 = vadd.f32 %v7539_v57, %v2474_v15  ;;  %v2495_v42 = vadd.f32 %v7540_v35, %v2494_v18 }
 0x610   : > { %v2582_v53 = vadd.f32 %v7541_v63, %v2581_v25  ;;  %v2602_v54 = vadd.f32 %v7542_v21, %v2601_v39  ;;  %v7555_v63 = vld [vmem:[%s10468_s15 + $0x6] ss:$0 sm:$0xff]  ;;  %v7556_v21 = vld [vmem:[%s10468_s15 + $0x7] ss:$0 sm:$0xff]  ;;  %v3157_v25 = vperm.slane %v8026_v4, 0 }
 0x612   : > { %7003 = vmatpush.xpose.msk.msrb.mxu0 %vm1508_vm6, %v2582_v53  ;;  %7005 = vmatpush.xpose.msk.msra.mxu1 %vm1508_vm6, %v2602_v54  ;;  %vm9050_vm1 = vcmp.eq.s32.totalorder %v3157_v25, 1 }
 0x615   : > { %7004 = vmatmul.msk.f32.vlgmr.msrb.gmra.mxu0 %vm1508_vm6, %v2355_v34  ;;  %7006 = vmatmul.msk.f32.vlgmr.msra.gmra.mxu1 %vm1508_vm6, %v2375_v19 }
 0x616   : > { %v2621_v31 = vpop.f32.mrf.mxu2  ;;  %v2641_v32 = vpop.f32.mrf.mxu3 }
 0x617   : > { %v2622_v40 = vadd.f32 %v7543_v20, %v2621_v31  ;;  %v2642_v41 = vadd.f32 %v7544_v23, %v2641_v32  ;;  %v2661_v44 = vpop.f32.mrf.mxu0  ;;  %v2681_v45 = vpop.f32.mrf.mxu1 }
 0x618   : > { %v2662_v48 = vadd.f32 %v7545_v24, %v2661_v44  ;;  %v2682_v49 = vadd.f32 %v7546_v27, %v2681_v45 }
 0x619   : > { %7007 = vmatpush.xpose.msk.msra.mxu2 %vm1508_vm6, %v2622_v40  ;;  %7009 = vmatpush.xpose.msk.msrb.mxu3 %vm1508_vm6, %v2642_v41 }
 0x61a   : > { %7011 = vmatpush.xpose.msk.msra.mxu0 %vm1508_vm6, %v2662_v48  ;;  %7013 = vmatpush.xpose.msk.msrb.mxu1 %vm1508_vm6, %v2682_v49 }
 0x61c   : > { %7008 = vmatmul.msk.f32.vlgmr.msra.gmra.mxu2 %vm1508_vm6, %v2395_v51  ;;  %7010 = vmatmul.msk.f32.vlgmr.msrb.gmra.mxu3 %vm1508_vm6, %v2415_v56 }
 0x61d   : > { %7012 = vmatmul.msk.f32.vlgmr.msra.gmra.mxu0 %vm1508_vm6, %v2435_v58  ;;  %7014 = vmatmul.msk.f32.vlgmr.msrb.gmra.mxu1 %vm1508_vm6, %v2455_v60 }
 0x61e   : > { %v2701_v2 = vpop.f32.mrf.mxu2  ;;  %v2721_v9 = vpop.f32.mrf.mxu3 }
 0x61f   : > { %v2702_v33 = vadd.f32 %v7547_v61, %v2701_v2  ;;  %v2722_v37 = vadd.f32 %v7548_v52, %v2721_v9  ;;  %v2805_v22 = vpop.f32.mrf.mxu0  ;;  %v2825_v1 = vpop.f32.mrf.mxu1 }
 0x620   : > { %v2806_v26 = vadd.f32 %v7549_v47, %v2805_v22  ;;  %v2826_v50 = vadd.f32 %v7550_v17, %v2825_v1 }
 0x621   : > { %7015 = vmatpush.xpose.msk.msrb.mxu2 %vm1508_vm6, %v2702_v33  ;;  %7017 = vmatpush.xpose.msk.msra.mxu3 %vm1508_vm6, %v2722_v37 }
 0x622   : > { %3273 = vmatpush.msrb.mxu0 %v2806_v26  ;;  %3296 = vmatpush.msra.mxu1 %v2826_v50 }
 0x624   : > { %7016 = vmatmul.msk.f32.vlgmr.msrb.gmra.mxu2 %vm1508_vm6, %v2475_v14  ;;  %7018 = vmatmul.msk.f32.vlgmr.msra.gmra.mxu3 %vm1508_vm6, %v2495_v42 }
 0x627   : > { %v2885_v13 = vpop.f32.mrf.mxu0  ;;  %v2905_v12 = vpop.f32.mrf.mxu1 }
 0x628   : > { %v2886_v29 = vadd.f32 %v7551_v7, %v2885_v13  ;;  %v2906_v30 = vadd.f32 %v7552_v0, %v2905_v12  ;;  %v2845_v5 = vpop.f32.mrf.mxu2  ;;  %v2865_v10 = vpop.f32.mrf.mxu3 }
 0x629   : > { %v2846_v59 = vadd.f32 %v7553_v6, %v2845_v5  ;;  %v2866_v62 = vadd.f32 %v7554_v16, %v2865_v10 }
 0x62a   : > { %3365 = vmatpush.msra.mxu0 %v2886_v29  ;;  %3388 = vmatpush.msrb.mxu1 %v2906_v30 }
 0x62b   : > { %3319 = vmatpush.msra.mxu2 %v2846_v59  ;;  %3342 = vmatpush.msrb.mxu3 %v2866_v62 }
 0x631   : > { %v2925_v15 = vpop.f32.mrf.mxu2  ;;  %v2945_v18 = vpop.f32.mrf.mxu3 }
 0x632   : > { %v2926_v43 = vadd.f32 %v7555_v63, %v2925_v15  ;;  %v2946_v3 = vadd.f32 %v7556_v21, %v2945_v18 }
 0x634   : > { %3411 = vmatpush.msrb.mxu2 %v2926_v43  ;;  %3434 = vmatpush.msra.mxu3 %v2946_v3 }
 0x692   : > { %v2971_v53 = vpop.f32.mrf.mxu0  ;;  %v2997_v4 = vpop.f32.mrf.mxu1 }
 0x693   : > { %v3159_v54 = vsel %vm9050_vm1, %v2971_v53, -1e+09  ;;  %v3160_v8 = vsel %vm9050_vm1, %v2997_v4, -1e+09 }
 0x694   : > { %v3167_v34 = vsel %vm1727_vm11, %v3159_v54, -inf  ;;  %v3170_v41 = vsel %vm1727_vm11, %v3160_v8, -inf }
 0x695   : > { %3168 = vmax.xlane.f32.xlu1 %v3167_v34 }
 0x69a   : > { %v3075_v45 = vpop.f32.mrf.mxu0  ;;  %v3101_v48 = vpop.f32.mrf.mxu1 }
 0x69b   : > { %v3164_v49 = vsel %vm9050_vm1, %v3101_v48, -1e+09  ;;  %v3163_v51 = vsel %vm9050_vm1, %v3075_v45, -1e+09 }
 0x69c   : > { %v3182_v56 = vsel %vm1727_vm11, %v3164_v49, -inf  ;;  %v3179_v58 = vsel %vm1727_vm11, %v3163_v51, -inf }
 0x69f   : > { %v3023_v19 = vpop.f32.mrf.mxu2  ;;  %v3049_v20 = vpop.f32.mrf.mxu3 }
 0x6a0   : > { %v3162_v23 = vsel %vm9050_vm1, %v3049_v20, -1e+09  ;;  %v3161_v24 = vsel %vm9050_vm1, %v3023_v19, -1e+09 }
 0x6a1   : > { %v3176_v27 = vsel %vm1727_vm11, %v3162_v23, -inf  ;;  %v3173_v28 = vsel %vm1727_vm11, %v3161_v24, -inf }
 0x6a2   : > { %3177 = vmax.xlane.f32.xlu0 %v3176_v27  ;;  %3174 = vmax.xlane.f32.xlu2 %v3173_v28 }
 0x6a7   : > { %v3127_v31 = vpop.f32.mrf.mxu2  ;;  %v3153_v32 = vpop.f32.mrf.mxu3 }
 0x6a8   : > { %v3165_v36 = vsel %vm9050_vm1, %v3127_v31, -1e+09  ;;  %v3166_v38 = vsel %vm9050_vm1, %v3153_v32, -1e+09 }
 0x6a9   : > { %v3185_v40 = vsel %vm1727_vm11, %v3165_v36, -inf  ;;  %v3188_v44 = vsel %vm1727_vm11, %v3166_v38, -inf }
 0x6aa   : > { %3186 = vmax.xlane.f32.xlu2 %v3185_v40  ;;  %3171 = vmax.xlane.f32.xlu0 %v3170_v41 }
 0x6ab   : > { %3189 = vmax.xlane.f32.xlu1 %v3188_v44 }
 0x6b2   : > { %3183 = vmax.xlane.f32.xlu0 %v3182_v56  ;;  %3180 = vmax.xlane.f32.xlu2 %v3179_v58 }
 0x708   : > { %v3169_v60 = vpop.xlane.xlu1 %3168 }
 0x709   : > { %v3191_v61 = vsub.f32 %v3159_v54, %v3169_v60 }
 0x70b   : > { %v3199_v52 = vmul.f32 1.442695, %v3191_v61 }
 0x70d   : > { %7660 = vpow2.f32 %v3199_v52 }
 0x713   : > { %v7661_v57 = vpop.eup %7660 }
 0x714   : > { %v3215_v35 = vsel %vm1727_vm11, %v7661_v57, 0.0 }
 0x715   : > { %v3178_v2 = vpop.xlane.xlu0 %3177  ;;  %v3175_v9 = vpop.xlane.xlu2 %3174  ;;  %3216 = vadd.xlane.f32.xlu0 %v3215_v35  ;;  %v3439_v35 = vld [vmem:[%s10469_s16] sm:$0xf] }
 0x716   : > { %v3194_v33 = vsub.f32 %v3162_v23, %v3178_v2  ;;  %v3193_v37 = vsub.f32 %v3161_v24, %v3175_v9  ;;  %v3441_v2 = vld [vmem:[%s10469_s16 + $0x8] sm:$0xf]  ;;  %v3442_v9 = vld [vmem:[%s10469_s16 + $0xc] sm:$0xf] }
 0x718   : > { %v3205_v14 = vmul.f32 1.442695, %v3194_v33  ;;  %v3203_v42 = vmul.f32 1.442695, %v3193_v37  ;;  %v3440_v33 = vld [vmem:[%s10469_s16 + $0x4] sm:$0xf] }
 0x719   : > { %v3445_v37 = vld [vmem:[%s10469_s16 + $0x18] sm:$0xf] }
 0x71a   : > { %7662 = vpow2.f32 %v3205_v14  ;;  %v3443_v14 = vld [vmem:[%s10469_s16 + $0x10] sm:$0xf] }
 0x71b   : > { %7664 = vpow2.f32 %v3203_v42  ;;  %v3446_v42 = vld [vmem:[%s10469_s16 + $0x1c] sm:$0xf] }
 0x71d   : > { %v3187_v47 = vpop.xlane.xlu2 %3186  ;;  %v3172_v17 = vpop.xlane.xlu0 %3171 }
 0x71e   : > { %v3197_v22 = vsub.f32 %v3165_v36, %v3187_v47  ;;  %v3192_v1 = vsub.f32 %v3160_v8, %v3172_v17  ;;  %v3190_v26 = vpop.xlane.xlu1 %3189  ;;  %v3444_v47 = vld [vmem:[%s10469_s16 + $0x14] sm:$0xf] }
 0x71f   : > { %v3198_v50 = vsub.f32 %v3166_v38, %v3190_v26 }
 0x720   : > { %v7663_v7 = vpop.eup %7662  ;;  %v3211_v0 = vmul.f32 1.442695, %v3197_v22  ;;  %v3201_v13 = vmul.f32 1.442695, %v3192_v1 }
 0x721   : > { %v7665_v12 = vpop.eup %7664  ;;  %v3213_v6 = vmul.f32 1.442695, %v3198_v50  ;;  %v3224_v16 = vsel %vm1727_vm11, %v7663_v7, 0.0 }
 0x722   : > { %7666 = vpow2.f32 %v3211_v0  ;;  %v3221_v29 = vsel %vm1727_vm11, %v7665_v12, 0.0  ;;  %3225 = vadd.xlane.f32.xlu2 %v3224_v16 }
 0x723   : > { %7668 = vpow2.f32 %v3201_v13  ;;  %3222 = vadd.xlane.f32.xlu1 %v3221_v29 }
 0x724   : > { %7670 = vpow2.f32 %v3213_v6 }
 0x725   : > { %v3184_v30 = vpop.xlane.xlu0 %3183  ;;  %v3181_v5 = vpop.xlane.xlu2 %3180 }
 0x726   : > { %v3196_v10 = vsub.f32 %v3164_v49, %v3184_v30  ;;  %v3195_v59 = vsub.f32 %v3163_v51, %v3181_v5 }
 0x728   : > { %v7667_v62 = vpop.eup %7666  ;;  %v3209_v63 = vmul.f32 1.442695, %v3196_v10  ;;  %v3207_v21 = vmul.f32 1.442695, %v3195_v59 }
 0x729   : > { %v7669_v15 = vpop.eup %7668  ;;  %v3233_v18 = vsel %vm1727_vm11, %v7667_v62, 0.0 }
 0x72a   : > { %v7671_v43 = vpop.eup %7670  ;;  %7672 = vpow2.f32 %v3209_v63  ;;  %v3218_v3 = vsel %vm1727_vm11, %v7669_v15, 0.0 }
 0x72b   : > { %7674 = vpow2.f32 %v3207_v21  ;;  %3234 = vadd.xlane.f32.xlu1 %v3233_v18  ;;  %v3236_v25 = vsel %vm1727_vm11, %v7671_v43, 0.0  ;;  %3219 = vadd.xlane.f32.xlu2 %v3218_v3 }
 0x72c   : > { %3237 = vadd.xlane.f32.xlu0 %v3236_v25 }
 0x730   : > { %v7673_v53 = vpop.eup %7672 }
 0x731   : > { %v7675_v54 = vpop.eup %7674  ;;  %v3230_v34 = vsel %vm1727_vm11, %v7673_v53, 0.0 }
 0x732   : > { %v3227_v19 = vsel %vm1727_vm11, %v7675_v54, 0.0 }
 0x733   : > { %3231 = vadd.xlane.f32.xlu2 %v3230_v34  ;;  %3228 = vadd.xlane.f32.xlu1 %v3227_v19 }
 0x788   : > { %v3217_v20 = vpop.xlane.xlu0 %3216 }
 0x789   : > { %7676 = vrcp.f32 %v3217_v20 }
 0x78f   : > { %v7677_v23 = vpop.eup %7676 }
 0x790   : > { %v3247_v24 = vmul.f32 %v7677_v23, %v7661_v57  ;;  %v7557_v23 = vld [vmem:[%s10470_s17] ss:$0 sm:$0xff] }
 0x792   : > { %7019 = vmatmul.msk.f32.vlgmr.msrb.gmra.mxu0 %vm1727_vm11, %v3247_v24 }
 0x793   : > { %7027 = vmatpush.msk.msrb.mxu0 %vm2011_vm12, %v3439_v35  ;;  %v3749_v35 = vld [vmem:[%s10473_s20 + $0x48] sm:$0xff] }
 0x795   : > { %v3226_v4 = vpop.xlane.xlu2 %3225 }
 0x796   : > { %v3223_v27 = vpop.xlane.xlu1 %3222  ;;  %7678 = vrcp.f32 %v3226_v4 }
 0x797   : > { %7680 = vrcp.f32 %v3223_v27 }
 0x79c   : > { %v7679_v28 = vpop.eup %7678 }
 0x79d   : > { %v7681_v8 = vpop.eup %7680  ;;  %v3250_v31 = vmul.f32 %v7679_v28, %v7663_v7 }
 0x79e   : > { %v3249_v32 = vmul.f32 %v7681_v8, %v7665_v12  ;;  %v3235_v36 = vpop.xlane.xlu1 %3234  ;;  %v3220_v38 = vpop.xlane.xlu2 %3219 }
 0x79f   : > { %v3238_v40 = vpop.xlane.xlu0 %3237  ;;  %7682 = vrcp.f32 %v3235_v36  ;;  %7022 = vmatmul.msk.f32.vlgmr.msrb.gmra.mxu3 %vm1727_vm11, %v3250_v31 }
 0x7a0   : > { %7684 = vrcp.f32 %v3238_v40  ;;  %7021 = vmatmul.msk.f32.vlgmr.msra.gmra.mxu2 %vm1727_vm11, %v3249_v32  ;;  %7033 = vmatpush.msk.msrb.mxu3 %vm2011_vm12, %v3442_v9 }
 0x7a1   : > { %7686 = vrcp.f32 %v3220_v38  ;;  %7031 = vmatpush.msk.msra.mxu2 %vm2011_vm12, %v3441_v2  ;;  %v3748_v2 = vld [vmem:[%s10473_s20 + $0x40] sm:$0xff] }
 0x7a5   : > { %v7683_v41 = vpop.eup %7682 }
 0x7a6   : > { %v7685_v44 = vpop.eup %7684  ;;  %v3253_v45 = vmul.f32 %v7683_v41, %v7667_v62  ;;  %v3229_v48 = vpop.xlane.xlu1 %3228  ;;  %v3711_v41 = vld [vmem:[%s10471_s18 + $0x18] sm:$0xff] }
 0x7a7   : > { %v3232_v49 = vpop.xlane.xlu2 %3231  ;;  %v7687_v51 = vpop.eup %7686  ;;  %v3254_v56 = vmul.f32 %v7685_v44, %v7671_v43  ;;  %7688 = vrcp.f32 %v3229_v48  ;;  %v3709_v44 = vld [vmem:[%s10471_s18 + $0x8] sm:$0xff]  ;;  %v3755_v48 = vld [vmem:[%s10473_s20 + $0x78] sm:$0xff] }
 0x7a8   : > { %v3248_v58 = vmul.f32 %v7687_v51, %v7669_v15  ;;  %7690 = vrcp.f32 %v3232_v49  ;;  %7025 = vmatmul.msk.f32.vlgmr.msrb.gmra.mxu2 %vm1727_vm11, %v3253_v45  ;;  %v3708_v45 = vld [vmem:[%s10471_s18] sm:$0xff]  ;;  %v3754_v49 = vld [vmem:[%s10473_s20 + $0x70] sm:$0xff]  ;;  %v3753_v51 = vld [vmem:[%s10473_s20 + $0x68] sm:$0xff] }
 0x7a9   : > { %7026 = vmatmul.msk.f32.vlgmr.msra.gmra.mxu3 %vm1727_vm11, %v3254_v56  ;;  %7039 = vmatpush.msk.msrb.mxu2 %vm2011_vm12, %v3445_v37 }
 0x7aa   : > { %7020 = vmatmul.msk.f32.vlgmr.msra.gmra.mxu1 %vm1727_vm11, %v3248_v58  ;;  %7041 = vmatpush.msk.msra.mxu3 %vm2011_vm12, %v3446_v42 }
 0x7ab   : > { %7029 = vmatpush.msk.msra.mxu1 %vm2011_vm12, %v3440_v33  ;;  %v3747_v33 = vld [vmem:[%s10473_s20 + $0x38] sm:$0xff] }
 0x7ad   : > { %v7689_v60 = vpop.eup %7688 }
 0x7ae   : > { %v7691_v61 = vpop.eup %7690  ;;  %v3251_v52 = vmul.f32 %v7689_v60, %v7675_v54  ;;  %v3752_v60 = vld [vmem:[%s10473_s20 + $0x60] sm:$0xff] }
 0x7af   : > { %v3252_v57 = vmul.f32 %v7691_v61, %v7673_v53 }
 0x7b0   : > { %7023 = vmatmul.msk.f32.vlgmr.msra.gmra.mxu0 %vm1727_vm11, %v3251_v52  ;;  %v3751_v52 = vld [vmem:[%s10473_s20 + $0x58] sm:$0xff] }
 0x7b1   : > { %7035 = vmatpush.msk.msra.mxu0 %vm2011_vm12, %v3443_v14  ;;  %v3746_v14 = vld [vmem:[%s10473_s20 + $0x30] sm:$0xff] }
 0x7b2   : > { %7024 = vmatmul.msk.f32.vlgmr.msrb.gmra.mxu1 %vm1727_vm11, %v3252_v57  ;;  %v3750_v57 = vld [vmem:[%s10473_s20 + $0x50] sm:$0xff] }
 0x7b3   : > { %7037 = vmatpush.msk.msrb.mxu1 %vm2011_vm12, %v3444_v47  ;;  %v3745_v47 = vld [vmem:[%s10473_s20 + $0x28] sm:$0xff] }
 0x80f   : > { %v3275_v17 = vpop.f32.mrf.mxu0 }
 0x810   : > { %7028 = vmatmul.msk.f32.vlgmr.msrb.gmra.mxu0 %vm1508_vm6, %v3275_v17 }
 0x811   : > { %3731 = vmatpush.msrb.mxu0 %v3711_v41  ;;  %v7046_v41 = vld [vmem:[%s10521_s10 + $0x100] sm:$0xff] }
 0x822   : > { %v3344_v22 = vpop.f32.mrf.mxu3 }
 0x823   : > { %v3321_v1 = vpop.f32.mrf.mxu2  ;;  %7034 = vmatmul.msk.f32.vlgmr.msrb.gmra.mxu3 %vm1508_vm6, %v3344_v22  ;;  %v3744_v22 = vld [vmem:[%s10473_s20 + $0x20] sm:$0xff] }
 0x824   : > { %7032 = vmatmul.msk.f32.vlgmr.msra.gmra.mxu2 %vm1508_vm6, %v3321_v1 }
 0x827   : > { %v3298_v26 = vpop.f32.mrf.mxu1 }
 0x828   : > { %7030 = vmatmul.msk.f32.vlgmr.msra.gmra.mxu1 %vm1508_vm6, %v3298_v26  ;;  %v3743_v26 = vld [vmem:[%s10473_s20 + $0x18] sm:$0xff] }
 0x829   : > { %3756 = vmatpush.msra.mxu1 %v3755_v48  ;;  %v9290_v48 = vld [vmem:[%s10521_s10 + $0x178] sm:$0xff] }
 0x82b   : > { %v3413_v50 = vpop.f32.mrf.mxu2  ;;  %3757 = vmatpush.msra.mxu1 %v3754_v49  ;;  %v7065_v49 = vld [vmem:[%s10521_s10 + $0x198] sm:$0xff] }
 0x82c   : > { %v3436_v7 = vpop.f32.mrf.mxu3  ;;  %7040 = vmatmul.msk.f32.vlgmr.msrb.gmra.mxu2 %vm1508_vm6, %v3413_v50 }
 0x82d   : > { %7042 = vmatmul.msk.f32.vlgmr.msra.gmra.mxu3 %vm1508_vm6, %v3436_v7  ;;  %v3367_v0 = vpop.f32.mrf.mxu0  ;;  %3758 = vmatpush.msra.mxu1 %v3753_v51  ;;  %v7558_v7 = vld [vmem:[%s10534_s27] ss:$0 sm:$0xff]  ;;  %v7069_v51 = vld [vmem:[%s10521_s10 + $0x1b8] sm:$0xff]  ;;  %s761_s27 = sand.u32 1, %s7822_s26  }
 0x82e   : > { %7036 = vmatmul.msk.f32.vlgmr.msra.gmra.mxu0 %vm1508_vm6, %v3367_v0  ;;  %s6804_s3 = scalar_lea.sflag [#allocation3], %s761_s27 }
 0x82f   : > { %v3390_v13 = vpop.f32.mrf.mxu1  ;;  %3759 = vmatpush.msra.mxu1 %v3752_v60  ;;  %v7064_v60 = vld [vmem:[%s10521_s10 + $0x190] sm:$0xff] }
 0x830   : > { %7038 = vmatmul.msk.f32.vlgmr.msrb.gmra.mxu1 %vm1508_vm6, %v3390_v13  ;;  %v7559_v13 = vld [vmem:[%s10536_s9] ss:$0 sm:$0xff] }
 0x831   : > { %3760 = vmatpush.msra.mxu1 %v3751_v52  ;;  %v7068_v52 = vld [vmem:[%s10521_s10 + $0x1b0] sm:$0xff] }
 0x833   : > { %3761 = vmatpush.msra.mxu1 %v3750_v57  ;;  %v7144_v57 = vld [vmem:[%s10467_s14 + $0x110] sm:$0xff] }
 0x835   : > { %3762 = vmatpush.msra.mxu1 %v3749_v35 }
 0x837   : > { %3763 = vmatpush.msra.mxu1 %v3748_v2  ;;  %v9320_v2 = vld [vmem:[%s10521_s10 + $0x168] sm:$0xff] }
 0x839   : > { %3764 = vmatpush.msra.mxu1 %v3747_v33  ;;  %v7067_v33 = vld [vmem:[%s10521_s10 + $0x1a8] sm:$0xff] }
 0x83b   : > { %3765 = vmatpush.msra.mxu1 %v3746_v14 }
 0x83d   : > { %3766 = vmatpush.msra.mxu1 %v3745_v47  ;;  %v7062_v47 = vld [vmem:[%s10521_s10 + $0x180] sm:$0xff] }
 0x83f   : > { %3767 = vmatpush.msra.mxu1 %v3744_v22  ;;  %v7142_v22 = vld [vmem:[%s10467_s14 + $0x100] sm:$0xff] }
 0x841   : > { %3768 = vmatpush.msra.mxu1 %v3743_v26 }
 0x88d   : > { %v3470_v12 = vpop.f32.mrf.mxu0 }
 0x88e   : > { %v3655_v16 = vsel %vm795_vm0, %v3470_v12, 0.0 }
 0x8a5   : > { %v3496_v6 = vpop.f32.mrf.mxu1 }
 0x8a6   : > { %v3656_v29 = vsel %vm795_vm0, %v3496_v6, 0.0  ;;  %v3548_v30 = vpop.f32.mrf.mxu3 }
 0x8a7   : > { %v3657_v5 = vadd.f32 %v3656_v29, %v3655_v16  ;;  %v3522_v10 = vpop.f32.mrf.mxu2  ;;  %v3660_v63 = vsel %vm795_vm0, %v3548_v30, 0.0  ;;  %v3742_v29 = vld [vmem:[%s10473_s20 + $0x10] sm:$0xff]  ;;  %v3741_v30 = vld [vmem:[%s10473_s20 + $0x8] sm:$0xff] }
 0x8a8   : > { %v3658_v59 = vsel %vm795_vm0, %v3522_v10, 0.0  ;;  %3769 = vmatpush.msra.mxu1 %v3742_v29  ;;  %v7560_v10 = vld [vmem:[%s10472_s19] ss:$0 sm:$0xff] }
 0x8a9   : > { %v3659_v62 = vadd.f32 %v3658_v59, %v3657_v5  ;;  %v3740_v5 = vld [vmem:[%s10473_s20] sm:$0xff] }
 0x8aa   : > { %3770 = vmatpush.msra.mxu1 %v3741_v30 }
 0x8ab   : > { %v3661_v21 = vadd.f32 %v3660_v63, %v3659_v62  ;;  %v3574_v15 = vpop.f32.mrf.mxu0 }
 0x8ac   : > { %v3662_v18 = vsel %vm795_vm0, %v3574_v15, 0.0  ;;  %3771 = vmatpush.msra.mxu1 %v3740_v5 }
 0x8ad   : > { %v3663_v43 = vadd.f32 %v3662_v18, %v3661_v21  ;;  %v3600_v3 = vpop.f32.mrf.mxu1  ;;  %v7561_v21 = vld [vmem:[%s10474_s21] ss:$0 sm:$0xff] }
 0x8ae   : > { %v3664_v25 = vsel %vm795_vm0, %v3600_v3, 0.0 }
 0x8af   : > { %v3665_v53 = vadd.f32 %v3664_v25, %v3663_v43  ;;  %v3626_v54 = vpop.f32.mrf.mxu2 }
 0x8b0   : > { %v3666_v34 = vsel %vm795_vm0, %v3626_v54, 0.0  ;;  %v3652_v19 = vpop.f32.mrf.mxu3 }
 0x8b1   : > { %v3667_v20 = vadd.f32 %v3666_v34, %v3665_v53  ;;  %v3668_v24 = vsel %vm795_vm0, %v3652_v19, 0.0 }
 0x8b3   : > { %v3669_v4 = vadd.f32 %v3668_v24, %v3667_v20  ;;  %v7049_v20 = vld [vmem:[%s10521_s10 + $0x118] sm:$0xff] }
 0x8b4   : > { %v7057_v24 = vld [vmem:[%s10521_s10 + $0x158] sm:$0xff]  ;;  %3897 = vmatpush.msra.mxu2 %v7049_v20  ;;  %v9427_v20 = vld [vmem:[%s10521_s10 + $0x1e0] sm:$0xff] }
 0x8b5   : > { %v3674_v27 = vadd.f32 %v7557_v23, %v3669_v4  ;;  %v7053_v23 = vld [vmem:[%s10521_s10 + $0x138] sm:$0xff] }
 0x8b6   : > { %3917 = vmatpush.msrb.mxu3 %v7053_v23  ;;  %v7113_v4 = vld [vmem:[%s10465_s12 + $0x198] sm:$0xff]  ;;  %v7094_v23 = vld [vmem:[%s10465_s12 + $0x100] sm:$0xff] }
 0x8b7   : > { %v9146_v28 = vadd.f32 %v3674_v27, %v8670_v46  ;;  %v3710_v46 = vld [vmem:[%s10471_s18 + $0x10] sm:$0xff]  ;;  %4203 = vmatpush.msrb.mxu1 %v7113_v4  ;;  %v9446_v4 = vld [vmem:[%s10465_s12 + $0x138] sm:$0xff] }
 0x8b8   : > { %3732 = vmatpush.msrb.mxu0 %v3710_v46  ;;  %v7048_v27 = vld [vmem:[%s10521_s10 + $0x110] sm:$0xff]  ;;  %v7050_v46 = vld [vmem:[%s10521_s10 + $0x120] sm:$0xff] }
 0x8b9   : > { %v3678_v8 = vsel %vm795_vm0, %v9146_v28, 0.0  ;;  %3898 = vmatpush.msra.mxu2 %v7048_v27  ;;  %v9451_v27 = vld [vmem:[%s10465_s12 + $0x158] sm:$0xff] }
 0x8ba   : > { %3679 = vadd.xlane.f32.xlu0 %v3678_v8  ;;  %3733 = vmatpush.msrb.mxu0 %v3709_v44  ;;  %v7056_v8 = vld [vmem:[%s10521_s10 + $0x150] sm:$0xff]  ;;  %v7054_v44 = vld [vmem:[%s10521_s10 + $0x140] sm:$0xff] }
 0x8bc   : > { %3734 = vmatpush.msrb.mxu0 %v3708_v45  ;;  %v7110_v45 = vld [vmem:[%s10465_s12 + $0x180] sm:$0xff] }
 0x8be   : > { %3937 = vmatpush.msra.mxu0 %v7057_v24  ;;  %v7158_v24 = vld [vmem:[%s10467_s14 + $0x180] sm:$0xff] }
 0x8c0   : > { %3938 = vmatpush.msra.mxu0 %v7056_v8  ;;  %v9463_v8 = vld [vmem:[%s10465_s12 + $0x130] sm:$0xff] }
 0x92d   : > { %v3680_v31 = vpop.xlane.xlu0 %3679 }
 0x92e   : > { %v3681_v32 = vmul.f32 %v3680_v31, %v8028_v11  ;;  %v7112_v31 = vld [vmem:[%s10465_s12 + $0x190] sm:$0xff] }
 0x92f   : > { %4204 = vmatpush.msrb.mxu1 %v7112_v31  ;;  %v9468_v31 = vld [vmem:[%s10465_s12 + $0x150] sm:$0xff] }
 0x930   : > { %v3682_v36 = vsub.f32 %v9146_v28, %v3681_v32  ;;  %v7047_v32 = vld [vmem:[%s10521_s10 + $0x108] sm:$0xff] }
 0x931   : > { %3899 = vmatpush.msra.mxu2 %v7047_v32  ;;  %v9475_v32 = vld [vmem:[%s10465_s12 + $0x170] sm:$0xff] }
 0x932   : > { %v3683_v38 = vmul.f32 %v3682_v36, %v3682_v36 }
 0x933   : > { %3900 = vmatpush.msra.mxu2 %v7046_v41  ;;  %v9507_v41 = vld [vmem:[%s10465_s12 + $0x120] sm:$0xff] }
 0x934   : > { %v3684_v40 = vsel %vm795_vm0, %v3683_v38, 0.0  ;;  %v7055_v38 = vld [vmem:[%s10521_s10 + $0x148] sm:$0xff] }
 0x935   : > { %3685 = vadd.xlane.f32.xlu1 %v3684_v40  ;;  %v7111_v40 = vld [vmem:[%s10465_s12 + $0x188] sm:$0xff]  ;;  %3939 = vmatpush.msra.mxu0 %v7055_v38 }
 0x936   : > { %4205 = vmatpush.msrb.mxu1 %v7111_v40  ;;  %3957 = vmatpush.msrb.mxu2 %v9290_v48  ;;  %v9489_v38 = vld [vmem:[%s10465_s12 + $0x148] sm:$0xff] }
 0x937   : > { %3940 = vmatpush.msra.mxu0 %v7054_v44  ;;  %v9498_v40 = vld [vmem:[%s10465_s12 + $0x168] sm:$0xff]  ;;  %v9519_v44 = vld [vmem:[%s10465_s12 + $0x160] sm:$0xff] }
 0x938   : > { %4206 = vmatpush.msrb.mxu1 %v7110_v45  ;;  %v9524_v45 = vld [vmem:[%s10465_s12 + $0x1b8] sm:$0xff] }
 0x9a8   : > { %v3686_v56 = vpop.xlane.xlu1 %3685 }
 0x9a9   : > { %v3687_v58 = vmul.f32 %v3686_v56, %v8028_v11  ;;  %v7145_v56 = vld [vmem:[%s10467_s14 + $0x118] sm:$0xff] }
 0x9ab   : > { %v3688_v61 = vadd.f32 1e-05, %v3687_v58  ;;  %v9304_v58 = vld [vmem:[%s10521_s10 + $0x170] sm:$0xff] }
 0x9ac   : > { %3958 = vmatpush.msrb.mxu2 %v9304_v58 }
 0x9ad   : > { %7692 = vrsqrt.f32 %v3688_v61  ;;  %vm3695_vm3 = vweird.f32 %v3688_v61 }
 0x9ae   : > { %3959 = vmatpush.msrb.mxu2 %v9320_v2 }
 0x9b3   : > { %v7693_v9 = vpop.eup %7692 }
 0x9b4   : > { %v3690_v37 = vmul.f32 %v7693_v9, %v3688_v61  ;;  %vm3696_vm2 = vweird.f32 %v7693_v9 }
 0x9b5   : > { %vm3697_vm4 = vmor %vm3695_vm3, %vm3696_vm2 }
 0x9b6   : > { %v3691_v42 = vmul.f32 %v7693_v9, %v3690_v37  ;;  %v7143_v37 = vld [vmem:[%s10467_s14 + $0x108] sm:$0xff] }
 0x9b8   : > { %v3692_v17 = vmul.f32 0.5, %v3691_v42  ;;  %v9335_v42 = vld [vmem:[%s10521_s10 + $0x160] sm:$0xff] }
 0x9b9   : > { %3960 = vmatpush.msrb.mxu2 %v9335_v42 }
 0x9ba   : > { %v3693_v1 = vsub.f32 1.5, %v3692_v17  ;;  %v7066_v17 = vld [vmem:[%s10521_s10 + $0x1a0] sm:$0xff] }
 0x9bc   : > { %v3694_v50 = vmul.f32 %v7693_v9, %v3693_v1 }
 0x9be   : > { %v3698_v0 = vsel %vm3697_vm4, %v7693_v9, %v3694_v50  ;;  %v7063_v9 = vld [vmem:[%s10521_s10 + $0x188] sm:$0xff] }
 0x9bf   : > { %v3699_v12 = vmul.f32 %v3698_v0, %v3682_v36  ;;  %v7051_v36 = vld [vmem:[%s10521_s10 + $0x128] sm:$0xff] }
 0x9c1   : > { %v3703_v6 = vmul.f32 %v7558_v7, %v3699_v12  ;;  %v7562_v12 = vld [vmem:[%s10522_s4 + $0x1] ss:$0 sm:$0xff] }
 0x9c3   : > { %v3707_v16 = vadd.f32 %v7559_v13, %v3703_v6 }
 0x9c5   : > { %7043 = vmatmul.msk.f32.vlgmr.msrb.gmra.mxu0 %vm795_vm0, %v3707_v16  ;;  %v7563_v16 = vld [vmem:[%s10524_s29 + $0x1] ss:$0 sm:$0xff] }
 0x9c6   : > { %3997 = vmatpush.msrb.mxu0 %v7069_v51  ;;  %v9535_v51 = vld [vmem:[%s10465_s12 + $0x1f8] sm:$0xff] }
 0x9c8   : > { %3998 = vmatpush.msrb.mxu0 %v7068_v52  ;;  %v7115_v52 = vld [vmem:[%s10465_s12 + $0x1a8] sm:$0xff] }
 0x9ca   : > { %3999 = vmatpush.msrb.mxu0 %v7067_v33  ;;  %v7118_v33 = vld [vmem:[%s10465_s12 + $0x1c0] sm:$0xff] }
 0x9cc   : > { %4000 = vmatpush.msrb.mxu0 %v7066_v17  ;;  %v7157_v17 = vld [vmem:[%s10467_s14 + $0x178] sm:$0xff] }
 0xa42   : > { %v3736_v59 = vpop.f32.mrf.mxu0 }
 0xa43   : > { %v3737_v62 = vadd.f32 %v7560_v10, %v3736_v59  ;;  %v9360_v10 = vld [vmem:[%s10521_s10 + $0x1d8] sm:$0xff] }
 0xa44   : > { %v9365_v59 = vld [vmem:[%s10521_s10 + $0x1f8] sm:$0xff] }
 0xa45   : > { %v3739_v63 = vmax.f32 %v3737_v62, 0.0  ;;  %v7097_v62 = vld [vmem:[%s10465_s12 + $0x118] sm:$0xff] }
 0xa47   : > { %3772 = vmatmul.f32.vlgmr.msra.gmra.mxu1 %v3739_v63  ;;  %v7161_v63 = vld [vmem:[%s10467_s14 + $0x198] sm:$0xff] }
 0xa48   : > { %4349 = vmatpush.msra.mxu1 %v7145_v56  ;;  %v9542_v56 = vld [vmem:[%s10465_s12 + $0x1b0] sm:$0xff] }
 0xa4a   : > { %4350 = vmatpush.msra.mxu1 %v7144_v57  ;;  %v7119_v57 = vld [vmem:[%s10465_s12 + $0x1c8] sm:$0xff] }
 0xa4c   : > { %4351 = vmatpush.msra.mxu1 %v7143_v37  ;;  %v7149_v37 = vld [vmem:[%s10467_s14 + $0x138] sm:$0xff] }
 0xa4e   : > { %4352 = vmatpush.msra.mxu1 %v7142_v22  ;;  %v7148_v22 = vld [vmem:[%s10467_s14 + $0x130] sm:$0xff] }
 0xac4   : > { %v3773_v15 = vpop.f32.mrf.mxu1 }
 0xac5   : > { %v3776_v18 = vadd.f32 %v3773_v15, %v9146_v28  ;;  %v7052_v28 = vld [vmem:[%s10521_s10 + $0x130] sm:$0xff] }
 0xac6   : > { %3918 = vmatpush.msrb.mxu3 %v7052_v28  ;;  %v9389_v15 = vld [vmem:[%s10521_s10 + $0x1f0] sm:$0xff]  ;;  %v9458_v28 = vld [vmem:[%s10465_s12 + $0x178] sm:$0xff] }
 0xac7   : > { %v9228_v43 = vadd.f32 %v7561_v21, %v3776_v18  ;;  %v9384_v21 = vld [vmem:[%s10521_s10 + $0x1d0] sm:$0xff] }
 0xac8   : > { %3919 = vmatpush.msrb.mxu3 %v7051_v36  ;;  %v7096_v18 = vld [vmem:[%s10465_s12 + $0x110] sm:$0xff]  ;;  %v9484_v36 = vld [vmem:[%s10465_s12 + $0x128] sm:$0xff] }
 0xac9   : > { %v3786_v3 = vsel %vm795_vm0, %v9228_v43, 0.0 }
 0xaca   : > { %3787 = vadd.xlane.f32.xlu2 %v3786_v3  ;;  %3920 = vmatpush.msrb.mxu3 %v7050_v46  ;;  %v7160_v3 = vld [vmem:[%s10467_s14 + $0x190] sm:$0xff]  ;;  %v9512_v46 = vld [vmem:[%s10465_s12 + $0x140] sm:$0xff] }
 0xacc   : > { %3977 = vmatpush.msra.mxu3 %v7065_v49  ;;  %v9530_v49 = vld [vmem:[%s10465_s12 + $0x1d8] sm:$0xff] }
 0xace   : > { %3978 = vmatpush.msra.mxu3 %v7064_v60  ;;  %v9551_v60 = vld [vmem:[%s10465_s12 + $0x1d0] sm:$0xff] }
 0xad0   : > { %3979 = vmatpush.msra.mxu3 %v7063_v9  ;;  %v7114_v9 = vld [vmem:[%s10465_s12 + $0x1a0] sm:$0xff] }
 0xad2   : > { %3980 = vmatpush.msra.mxu3 %v7062_v47  ;;  %v7153_v47 = vld [vmem:[%s10467_s14 + $0x158] sm:$0xff] }
 0xb3d   : > { %v3788_v25 = vpop.xlane.xlu2 %3787 }
 0xb3e   : > { %v3789_v53 = vmul.f32 %v3788_v25, %v8028_v11  ;;  %v9402_v25 = vld [vmem:[%s10521_s10 + $0x1c8] sm:$0xff] }
 0xb40   : > { %v9234_v54 = vsub.f32 %v9228_v43, %v3789_v53  ;;  %v9407_v53 = vld [vmem:[%s10521_s10 + $0x1e8] sm:$0xff] }
 0xb42   : > { %v3791_v34 = vmul.f32 %v9234_v54, %v9234_v54 }
 0xb44   : > { %v3792_v19 = vsel %vm795_vm0, %v3791_v34, 0.0  ;;  %v7159_v34 = vld [vmem:[%s10467_s14 + $0x188] sm:$0xff] }
 0xb45   : > { %3793 = vadd.xlane.f32.xlu0 %v3792_v19  ;;  %v9422_v19 = vld [vmem:[%s10521_s10 + $0x1c0] sm:$0xff] }
 0xbb8   : > { %v3794_v61 = vpop.xlane.xlu0 %3793 }
 0xbb9   : > { %v3795_v35 = vmul.f32 %v3794_v61, %v8028_v11  ;;  %v9557_v61 = vld [vmem:[%s10465_s12 + $0x1f0] sm:$0xff] }
 0xbbb   : > { %v3796_v14 = vadd.f32 1e-05, %v3795_v35  ;;  %v7123_v35 = vld [vmem:[%s10465_s12 + $0x1e8] sm:$0xff] }
 0xbbd   : > { %7694 = vrsqrt.f32 %v3796_v14  ;;  %vm3803_vm7 = vweird.f32 %v3796_v14 }
 0xbc3   : > { %v7695_v1 = vpop.eup %7694 }
 0xbc4   : > { %v3798_v26 = vmul.f32 %v7695_v1, %v3796_v14  ;;  %vm3804_vm5 = vweird.f32 %v7695_v1  ;;  %v7122_v14 = vld [vmem:[%s10465_s12 + $0x1e0] sm:$0xff] }
 0xbc5   : > { %vm3805_vm8 = vmor %vm3803_vm7, %vm3804_vm5 }
 0xbc6   : > { %v3799_v50 = vmul.f32 %v7695_v1, %v3798_v26  ;;  %v7156_v26 = vld [vmem:[%s10467_s14 + $0x170] sm:$0xff] }
 0xbc8   : > { %v3800_v7 = vmul.f32 0.5, %v3799_v50  ;;  %v7147_v50 = vld [vmem:[%s10467_s14 + $0x128] sm:$0xff] }
 0xbca   : > { %v3801_v0 = vsub.f32 1.5, %v3800_v7  ;;  %v7151_v7 = vld [vmem:[%s10467_s14 + $0x148] sm:$0xff] }
 0xbcc   : > { %v3802_v13 = vmul.f32 %v7695_v1, %v3801_v0  ;;  %v7155_v0 = vld [vmem:[%s10467_s14 + $0x168] sm:$0xff] }
 0xbce   : > { %v3806_v6 = vsel %vm3805_vm8, %v7695_v1, %v3802_v13  ;;  %v7152_v1 = vld [vmem:[%s10467_s14 + $0x150] sm:$0xff]  ;;  %v7146_v13 = vld [vmem:[%s10467_s14 + $0x120] sm:$0xff] }
 0xbcf   : > { %v3807_v29 = vmul.f32 %v3806_v6, %v9234_v54  ;;  %v7095_v54 = vld [vmem:[%s10465_s12 + $0x108] sm:$0xff]  ;;  %v7165_v6 = vld [vmem:[%s10467_s14 + $0x1b8] sm:$0xff] }
 0xbd1   : > { %v3811_v30 = vmul.f32 %v7562_v12, %v3807_v29  ;;  %v7150_v12 = vld [vmem:[%s10467_s14 + $0x140] sm:$0xff]  ;;  %v7169_v29 = vld [vmem:[%s10467_s14 + $0x1d8] sm:$0xff] }
 0xbd3   : > { %v9355_v5 = vadd.f32 %v7563_v16, %v3811_v30  ;;  %v7154_v16 = vld [vmem:[%s10467_s14 + $0x160] sm:$0xff]  ;;  %v7173_v30 = vld [vmem:[%s10467_s14 + $0x1f8] sm:$0xff] }
 0xbd5   : > { %7086 = vmatmul.msk.f32.vlgmr.msra.gmra.mxu2 %vm795_vm0, %v9355_v5  ;;  %7087 = vmatmul.msk.f32.vlgmr.msrb.gmra.mxu3 %vm795_vm0, %v9355_v5 }
 0xbd6   : > { %7088 = vmatmul.msk.f32.vlgmr.msra.gmra.mxu0 %vm795_vm0, %v9355_v5  ;;  %7138 = vmatmul.msk.f32.vlgmr.msrb.gmra.mxu1 %vm795_vm0, %v9355_v5 }
 0xbd7   : > { %4017 = vmatpush.msra.mxu2 %v9360_v10  ;;  %4037 = vmatpush.msrb.mxu3 %v9365_v59 }
 0xbd8   : > { %4123 = vmatpush.msra.mxu0 %v7097_v62  ;;  %4429 = vmatpush.msrb.mxu1 %v7161_v63  ;;  %v7164_v62 = vld [vmem:[%s10467_s14 + $0x1b0] sm:$0xff] }
 0xbd9   : > { %4018 = vmatpush.msra.mxu2 %v9384_v21  ;;  %4038 = vmatpush.msrb.mxu3 %v9389_v15  ;;  %v7168_v63 = vld [vmem:[%s10467_s14 + $0x1d0] sm:$0xff] }
 0xbda   : > { %4124 = vmatpush.msra.mxu0 %v7096_v18  ;;  %4430 = vmatpush.msrb.mxu1 %v7160_v3  ;;  %v7172_v18 = vld [vmem:[%s10467_s14 + $0x1f0] sm:$0xff]  ;;  %v7163_v3 = vld [vmem:[%s10467_s14 + $0x1a8] sm:$0xff] }
 0xbdb   : > { %4019 = vmatpush.msra.mxu2 %v9402_v25  ;;  %4039 = vmatpush.msrb.mxu3 %v9407_v53 }
 0xbdc   : > { %4125 = vmatpush.msra.mxu0 %v7095_v54  ;;  %4431 = vmatpush.msrb.mxu1 %v7159_v34  ;;  %v7167_v54 = vld [vmem:[%s10467_s14 + $0x1c8] sm:$0xff] }
 0xbdd   : > { %7089 = vmatmul.msk.f32.vlgmr.msrb.gmra.mxu2 %vm795_vm0, %v9355_v5  ;;  %7090 = vmatmul.msk.f32.vlgmr.msra.gmra.mxu3 %vm795_vm0, %v9355_v5  ;;  %v7171_v34 = vld [vmem:[%s10467_s14 + $0x1e8] sm:$0xff] }
 0xbde   : > { %7091 = vmatmul.msk.f32.vlgmr.msrb.gmra.mxu0 %vm795_vm0, %v9355_v5  ;;  %7182 = vmatmul.msk.f32.vlgmr.msra.gmra.mxu1 %vm795_vm0, %v9355_v5 }
 0xbdf   : > { %4020 = vmatpush.msra.mxu2 %v9422_v19  ;;  %4040 = vmatpush.msrb.mxu3 %v9427_v20 }
 0xbe0   : > { %4126 = vmatpush.msra.mxu0 %v7094_v23  ;;  %4432 = vmatpush.msrb.mxu1 %v7158_v24  ;;  %v7162_v23 = vld [vmem:[%s10467_s14 + $0x1a0] sm:$0xff] }
 0xbe1   : > { %4143 = vmatpush.msrb.mxu2 %v9446_v4  ;;  %4163 = vmatpush.msra.mxu3 %v9451_v27  ;;  %v7166_v24 = vld [vmem:[%s10467_s14 + $0x1c0] sm:$0xff] }
 0xbe2   : > { %4183 = vmatpush.msrb.mxu0 %v9458_v28 }
 0xbe3   : > { %4144 = vmatpush.msrb.mxu2 %v9463_v8  ;;  %4164 = vmatpush.msra.mxu3 %v9468_v31 }
 0xbe4   : > { %4184 = vmatpush.msrb.mxu0 %v9475_v32 }
 0xbe5   : > { %7092 = vmatmul.msk.f32.vlgmr.msra.gmra.mxu2 %vm795_vm0, %v9355_v5  ;;  %7093 = vmatmul.msk.f32.vlgmr.msrb.gmra.mxu3 %vm795_vm0, %v9355_v5 }
 0xbe6   : > { %7134 = vmatmul.msk.f32.vlgmr.msra.gmra.mxu0 %vm795_vm0, %v9355_v5  ;;  %7186 = vmatmul.msk.f32.vlgmr.msrb.gmra.mxu1 %vm795_vm0, %v9355_v5 }
 0xbe7   : > { %4145 = vmatpush.msrb.mxu2 %v9484_v36  ;;  %4165 = vmatpush.msra.mxu3 %v9489_v38 }
 0xbe8   : > { %4185 = vmatpush.msrb.mxu0 %v9498_v40 }
 0xbe9   : > { %4146 = vmatpush.msrb.mxu2 %v9507_v41  ;;  %4166 = vmatpush.msra.mxu3 %v9512_v46 }
 0xbea   : > { %4186 = vmatpush.msrb.mxu0 %v9519_v44 }
 0xbeb   : > { %4223 = vmatpush.msra.mxu2 %v9524_v45  ;;  %4243 = vmatpush.msrb.mxu3 %v9530_v49 }
 0xbec   : > { %4263 = vmatpush.msra.mxu0 %v9535_v51 }
 0xbed   : > { %4224 = vmatpush.msra.mxu2 %v9542_v56  ;;  %7136 = vmatmul.msk.f32.vlgmr.msra.gmra.mxu3 %vm795_vm0, %v9355_v5 }
 0xbee   : > { %7135 = vmatmul.msk.f32.vlgmr.msrb.gmra.mxu2 %vm795_vm0, %v9355_v5  ;;  %7137 = vmatmul.msk.f32.vlgmr.msrb.gmra.mxu0 %vm795_vm0, %v9355_v5 }
 0xbef   : > { %4244 = vmatpush.msrb.mxu3 %v9551_v60  ;;  %4264 = vmatpush.msra.mxu0 %v9557_v61 }
 0xbf0   : > { %4225 = vmatpush.msra.mxu2 %v7115_v52  ;;  %v7170_v52 = vld [vmem:[%s10467_s14 + $0x1e0] sm:$0xff] }
 0xbf1   : > { %4245 = vmatpush.msrb.mxu3 %v7119_v57  ;;  %4265 = vmatpush.msra.mxu0 %v7123_v35 }
 0xbf2   : > { %4226 = vmatpush.msra.mxu2 %v7114_v9 }
 0xbf3   : > { %4246 = vmatpush.msrb.mxu3 %v7118_v33  ;;  %4266 = vmatpush.msra.mxu0 %v7122_v14 }
 0xbf4   : > { %4369 = vmatpush.msrb.mxu2 %v7149_v37 }
 0xbf5   : > { %4389 = vmatpush.msra.mxu3 %v7153_v47  ;;  %4409 = vmatpush.msrb.mxu0 %v7157_v17  ;;  %v7572_v17 = vld [vmem:[%s10466_s13 + $0x8] ss:$0 sm:$0xff] }
 0xbf6   : > { %4370 = vmatpush.msrb.mxu2 %v7148_v22  ;;  %7140 = vmatmul.msk.f32.vlgmr.msrb.gmra.mxu3 %vm795_vm0, %v9355_v5  ;;  %v7565_v22 = vld [vmem:[%s10466_s13 + $0xc] ss:$0 sm:$0xff] }
 0xbf7   : > { %7139 = vmatmul.msk.f32.vlgmr.msra.gmra.mxu2 %vm795_vm0, %v9355_v5  ;;  %7141 = vmatmul.msk.f32.vlgmr.msra.gmra.mxu0 %vm795_vm0, %v9355_v5 }
 0xbf8   : > { %4390 = vmatpush.msra.mxu3 %v7152_v1  ;;  %4410 = vmatpush.msrb.mxu0 %v7156_v26 }
 0xbf9   : > { %4371 = vmatpush.msrb.mxu2 %v7147_v50  ;;  %v7569_v50 = vld [vmem:[%s10468_s15 + $0x8] ss:$0 sm:$0xff] }
 0xbfa   : > { %4391 = vmatpush.msra.mxu3 %v7151_v7  ;;  %4411 = vmatpush.msrb.mxu0 %v7155_v0 }
 0xbfb   : > { %4372 = vmatpush.msrb.mxu2 %v7146_v13 }
 0xbfc   : > { %4392 = vmatpush.msra.mxu3 %v7150_v12  ;;  %4412 = vmatpush.msrb.mxu0 %v7154_v16 }
 0xbfd   : > { %4449 = vmatpush.msra.mxu2 %v7165_v6 }
 0xbfe   : > { %4469 = vmatpush.msrb.mxu3 %v7169_v29  ;;  %4489 = vmatpush.msra.mxu0 %v7173_v30  ;;  %v7576_v29 = vld [vmem:[%s10466_s13 + $0xb] ss:$0 sm:$0xff] }
 0xbff   : > { %4450 = vmatpush.msra.mxu2 %v7164_v62  ;;  %7184 = vmatmul.msk.f32.vlgmr.msra.gmra.mxu3 %vm795_vm0, %v9355_v5  ;;  %v7570_v30 = vld [vmem:[%s10464_s11 + $0xb] ss:$0 sm:$0xff]  ;;  %v7571_v62 = vld [vmem:[%s10464_s11 + $0xc] ss:$0 sm:$0xff] }
 0xc00   : > { %7183 = vmatmul.msk.f32.vlgmr.msrb.gmra.mxu2 %vm795_vm0, %v9355_v5  ;;  %7185 = vmatmul.msk.f32.vlgmr.msrb.gmra.mxu0 %vm795_vm0, %v9355_v5 }
 0xc01   : > { %4470 = vmatpush.msrb.mxu3 %v7168_v63  ;;  %4490 = vmatpush.msra.mxu0 %v7172_v18  ;;  %v7573_v18 = vld [vmem:[%s10468_s15 + $0xc] ss:$0 sm:$0xff] }
 0xc02   : > { %4451 = vmatpush.msra.mxu2 %v7163_v3 }
 0xc03   : > { %4471 = vmatpush.msrb.mxu3 %v7167_v54  ;;  %4491 = vmatpush.msra.mxu0 %v7171_v34  ;;  %v7577_v34 = vld [vmem:[%s10466_s13 + $0x9] ss:$0 sm:$0xff] }
 0xc04   : > { %4452 = vmatpush.msra.mxu2 %v7162_v23  ;;  %v7578_v23 = vld [vmem:[%s10466_s13 + $0xa] ss:$0 sm:$0xff] }
 0xc05   : > { %4472 = vmatpush.msrb.mxu3 %v7166_v24  ;;  %4492 = vmatpush.msra.mxu0 %v7170_v52 }
 0xc07   : > { %7188 = vmatmul.msk.f32.vlgmr.msrb.gmra.mxu3 %vm795_vm0, %v9355_v5 }
 0xc08   : > { %7187 = vmatmul.msk.f32.vlgmr.msra.gmra.mxu2 %vm795_vm0, %v9355_v5  ;;  %7189 = vmatmul.msk.f32.vlgmr.msra.gmra.mxu0 %vm795_vm0, %v9355_v5  ;;  %v7566_v5 = vld [vmem:[%s10464_s11 + $0x8] ss:$0 sm:$0xff] }
 0xc53   : > { %v3942_v57 = vpop.f32.mrf.mxu0  ;;  %v4208_v33 = vpop.f32.mrf.mxu1 }
 0xc54   : > { %v4209_v0 = vadd.f32 %v7565_v22, %v4208_v33 }
 0xc58   : > { %v3902_v35 = vpop.f32.mrf.mxu2  ;;  %v3922_v9 = vpop.f32.mrf.mxu3 }
 0xc59   : > { %v3903_v13 = vadd.f32 %v7566_v5, %v3902_v35  ;;  %v7567_v35 = vld [vmem:[%s10464_s11 + $0x9] ss:$0 sm:$0xff]  ;;  %v7579_v5 = vld [vmem:[%s10466_s13 + $0xf] ss:$0 sm:$0xff] }
 0xc5b   : > { %v9675_v37 = vpop.f32.mrf.mxu0  ;;  %v4354_v1 = vpop.f32.mrf.mxu1 }
 0xc5c   : > { %v4355_v12 = vadd.f32 %v7569_v50, %v4354_v1  ;;  %v7564_v1 = vld [vmem:[%s10464_s11 + $0xa] ss:$0 sm:$0xff] }
 0xc60   : > { %v3962_v14 = vpop.f32.mrf.mxu2  ;;  %v3982_v47 = vpop.f32.mrf.mxu3 }
 0xc61   : > { %v3963_v24 = vadd.f32 %v7570_v30, %v3962_v14  ;;  %v3983_v52 = vadd.f32 %v7571_v62, %v3982_v47  ;;  %v7575_v14 = vld [vmem:[%s10464_s11 + $0xf] ss:$0 sm:$0xff] }
 0xc63   : > { %v4128_v26 = vpop.f32.mrf.mxu0  ;;  %v4434_v54 = vpop.f32.mrf.mxu1 }
 0xc64   : > { %v4129_v7 = vadd.f32 %v7572_v17, %v4128_v26  ;;  %v4435_v33 = vadd.f32 %v7573_v18, %v4434_v54  ;;  %v7574_v18 = vld [vmem:[%s10464_s11 + $0xe] ss:$0 sm:$0xff] }
 0xc66   : > { %7190 = vmatpush.xpose.msk.msra.mxu1 %vm1508_vm6, %v4129_v7  ;;  %v3923_v7 = vadd.f32 %v7567_v35, %v3922_v9  ;;  %v7568_v9 = vld [vmem:[%s10464_s11 + $0xd] ss:$0 sm:$0xff]  ;;  %v7584_v35 = vld [vmem:[%s10468_s15 + $0xa] ss:$0 sm:$0xff] }
 0xc68   : > { %v4022_v6 = vpop.f32.mrf.mxu2  ;;  %v4042_v16 = vpop.f32.mrf.mxu3 }
 0xc69   : > { %7191 = vmatmul.msk.f32.vlgmr.msra.gmra.mxu1 %vm1508_vm6, %v3903_v13  ;;  %v3943_v13 = vadd.f32 %v7564_v1, %v3942_v57  ;;  %v4043_v30 = vadd.f32 %v7575_v14, %v4042_v16 }
 0xc6a   : > { %7198 = vmatpush.xpose.msk.msrb.mxu1 %vm1508_vm6, %v4209_v0 }
 0xc6b   : > { %v4188_v63 = vpop.f32.mrf.mxu0 }
 0xc6c   : > { %v4189_v3 = vadd.f32 %v7576_v29, %v4188_v63  ;;  %v7581_v29 = vld [vmem:[%s10466_s13 + $0xe] ss:$0 sm:$0xff]  ;;  %v7582_v63 = vld [vmem:[%s10468_s15 + $0xb] ss:$0 sm:$0xff] }
 0xc6e   : > { %4819 = vmatpush.msra.mxu1 %v4355_v12  ;;  %7196 = vmatpush.xpose.msk.msrb.mxu0 %vm1508_vm6, %v4189_v3  ;;  %v7580_v12 = vld [vmem:[%s10466_s13 + $0xd] ss:$0 sm:$0xff] }
 0xc70   : > { %v4168_v22 = vpop.f32.mrf.mxu3 }
 0xc71   : > { %v4148_v17 = vpop.f32.mrf.mxu2  ;;  %v4169_v50 = vadd.f32 %v7578_v23, %v4168_v22  ;;  %7197 = vmatmul.msk.f32.vlgmr.msrb.gmra.mxu0 %vm1508_vm6, %v3963_v24  ;;  %7199 = vmatmul.msk.f32.vlgmr.msrb.gmra.mxu1 %vm1508_vm6, %v3983_v52  ;;  %v4023_v24 = vadd.f32 %v7574_v18, %v4022_v6  ;;  %v7583_v52 = vld [vmem:[%s10468_s15 + $0x9] ss:$0 sm:$0xff] }
 0xc72   : > { %v4149_v26 = vadd.f32 %v7577_v34, %v4148_v17  ;;  %4911 = vmatpush.msrb.mxu1 %v4435_v33  ;;  %v4003_v34 = vadd.f32 %v7568_v9, %v9675_v37  ;;  %v7585_v37 = vld [vmem:[%s10468_s15 + $0xf] ss:$0 sm:$0xff] }
 0xc73   : > { %7194 = vmatpush.xpose.msk.msra.mxu3 %vm1508_vm6, %v4169_v50  ;;  %v7587_v50 = vld [vmem:[%s10468_s15 + $0xe] ss:$0 sm:$0xff] }
 0xc74   : > { %v4268_v47 = vpop.f32.mrf.mxu0  ;;  %7192 = vmatpush.xpose.msk.msrb.mxu2 %vm1508_vm6, %v4149_v26  ;;  %v7586_v26 = vld [vmem:[%s10468_s15 + $0xd] ss:$0 sm:$0xff] }
 0xc75   : > { %v4269_v0 = vadd.f32 %v7579_v5, %v4268_v47 }
 0xc76   : > { %7195 = vmatmul.msk.f32.vlgmr.msra.gmra.mxu3 %vm1508_vm6, %v3943_v13 }
 0xc77   : > { %7204 = vmatpush.xpose.msk.msra.mxu0 %vm1508_vm6, %v4269_v0  ;;  %7193 = vmatmul.msk.f32.vlgmr.msrb.gmra.mxu2 %vm1508_vm6, %v3923_v7 }
 0xc79   : > { %v4248_v62 = vpop.f32.mrf.mxu3 }
 0xc7a   : > { %v4228_v57 = vpop.f32.mrf.mxu2  ;;  %v4249_v54 = vadd.f32 %v7581_v29, %v4248_v62  ;;  %7205 = vmatmul.msk.f32.vlgmr.msra.gmra.mxu0 %vm1508_vm6, %v4043_v30 }
 0xc7b   : > { %v4229_v3 = vadd.f32 %v7580_v12, %v4228_v57 }
 0xc7c   : > { %7202 = vmatpush.xpose.msk.msrb.mxu3 %vm1508_vm6, %v4249_v54 }
 0xc7d   : > { %v4414_v16 = vpop.f32.mrf.mxu0  ;;  %7200 = vmatpush.xpose.msk.msra.mxu2 %vm1508_vm6, %v4229_v3 }
 0xc7e   : > { %v4415_v23 = vadd.f32 %v7582_v63, %v4414_v16 }
 0xc7f   : > { %7203 = vmatmul.msk.f32.vlgmr.msrb.gmra.mxu3 %vm1508_vm6, %v4023_v24 }
 0xc80   : > { %4888 = vmatpush.msrb.mxu0 %v4415_v23  ;;  %7201 = vmatmul.msk.f32.vlgmr.msra.gmra.mxu2 %vm1508_vm6, %v4003_v34 }
 0xc82   : > { %v4394_v17 = vpop.f32.mrf.mxu3 }
 0xc83   : > { %v4374_v33 = vpop.f32.mrf.mxu2  ;;  %v4395_v22 = vadd.f32 %v7584_v35, %v4394_v17 }
 0xc84   : > { %v4375_v6 = vadd.f32 %v7583_v52, %v4374_v33 }
 0xc85   : > { %v4494_v5 = vpop.f32.mrf.mxu0  ;;  %4865 = vmatpush.msra.mxu3 %v4395_v22 }
 0xc86   : > { %4842 = vmatpush.msrb.mxu2 %v4375_v6  ;;  %v4495_v1 = vadd.f32 %v7585_v37, %v4494_v5 }
 0xc88   : > { %4980 = vmatpush.msra.mxu0 %v4495_v1 }
 0xc8a   : > { %v4474_v47 = vpop.f32.mrf.mxu3 }
 0xc8b   : > { %v4454_v14 = vpop.f32.mrf.mxu2  ;;  %v4475_v0 = vadd.f32 %v7587_v50, %v4474_v47 }
 0xc8c   : > { %v4455_v7 = vadd.f32 %v7586_v26, %v4454_v14 }
 0xc8d   : > { %4957 = vmatpush.msrb.mxu3 %v4475_v0 }
 0xc8e   : > { %4934 = vmatpush.msra.mxu2 %v4455_v7 }
 0xce6   : > { %v4520_v30 = vpop.f32.mrf.mxu1 }
 0xce7   : > { %v4705_v18 = vsel %vm8562_vm10, %v4520_v30, -1e+09 }
 0xce8   : > { %v4713_v24 = vsel %vm1727_vm11, %v4705_v18, -inf }
 0xcee   : > { %v4598_v62 = vpop.f32.mrf.mxu0  ;;  %v4624_v35 = vpop.f32.mrf.mxu1 }
 0xcef   : > { %v4708_v17 = vsel %vm8562_vm10, %v4598_v62, -1e+09  ;;  %v4709_v37 = vsel %vm8562_vm10, %v4624_v35, -1e+09 }
 0xcf0   : > { %v4722_v22 = vsel %vm1727_vm11, %v4708_v17, -inf  ;;  %v4725_v5 = vsel %vm1727_vm11, %v4709_v37, -inf }
 0xcf7   : > { %v4702_v33 = vpop.f32.mrf.mxu0 }
 0xcf8   : > { %v4712_v6 = vsel %vm8562_vm10, %v4702_v33, -1e+09 }
 0xcf9   : > { %v4572_v29 = vpop.f32.mrf.mxu3  ;;  %v4734_v1 = vsel %vm1727_vm11, %v4712_v6, -inf }
 0xcfa   : > { %v4546_v13 = vpop.f32.mrf.mxu2  ;;  %v4707_v9 = vsel %vm8562_vm10, %v4572_v29, -1e+09 }
 0xcfb   : > { %v4706_v12 = vsel %vm8562_vm10, %v4546_v13, -1e+09  ;;  %v4719_v63 = vsel %vm1727_vm11, %v4707_v9, -inf }
 0xcfc   : > { %v4716_v57 = vsel %vm1727_vm11, %v4706_v12, -inf  ;;  %4720 = vmax.xlane.f32.xlu2 %v4719_v63 }
 0xcfd   : > { %4717 = vmax.xlane.f32.xlu1 %v4716_v57 }
 0xd02   : > { %v4676_v16 = vpop.f32.mrf.mxu3 }
 0xd03   : > { %v4650_v3 = vpop.f32.mrf.mxu2  ;;  %v4711_v34 = vsel %vm8562_vm10, %v4676_v16, -1e+09 }
 0xd04   : > { %v4710_v54 = vsel %vm8562_vm10, %v4650_v3, -1e+09  ;;  %v4731_v52 = vsel %vm1727_vm11, %v4711_v34, -inf }
 0xd05   : > { %v4728_v23 = vsel %vm1727_vm11, %v4710_v54, -inf  ;;  %4714 = vmax.xlane.f32.xlu1 %v4713_v24  ;;  %4732 = vmax.xlane.f32.xlu2 %v4731_v52 }
 0xd06   : > { %4729 = vmax.xlane.f32.xlu0 %v4728_v23 }
 0xd0d   : > { %4726 = vmax.xlane.f32.xlu1 %v4725_v5  ;;  %4735 = vmax.xlane.f32.xlu2 %v4734_v1 }
 0xd0e   : > { %4723 = vmax.xlane.f32.xlu0 %v4722_v22 }
 0xd6f   : > { %v4721_v50 = vpop.xlane.xlu2 %4720 }
 0xd70   : > { %v4718_v26 = vpop.xlane.xlu1 %4717  ;;  %v4739_v47 = vsub.f32 %v4707_v9, %v4721_v50 }
 0xd71   : > { %v4738_v14 = vsub.f32 %v4706_v12, %v4718_v26 }
 0xd72   : > { %v4749_v0 = vmul.f32 1.442695, %v4739_v47 }
 0xd73   : > { %v4747_v7 = vmul.f32 1.442695, %v4738_v14 }
 0xd75   : > { %7696 = vpow2.f32 %v4747_v7 }
 0xd76   : > { %7698 = vpow2.f32 %v4749_v0 }
 0xd78   : > { %v4715_v55 = vpop.xlane.xlu1 %4714  ;;  %v4733_v30 = vpop.xlane.xlu2 %4732 }
 0xd79   : > { %v4730_v13 = vpop.xlane.xlu0 %4729  ;;  %v4737_v57 = vsub.f32 %v4705_v18, %v4715_v55  ;;  %v4743_v62 = vsub.f32 %v4711_v34, %v4733_v30 }
 0xd7a   : > { %v4742_v29 = vsub.f32 %v4710_v54, %v4730_v13 }
 0xd7b   : > { %v7697_v63 = vpop.eup %7696  ;;  %v4745_v16 = vmul.f32 1.442695, %v4737_v57  ;;  %v4757_v24 = vmul.f32 1.442695, %v4743_v62 }
 0xd7c   : > { %v4755_v3 = vmul.f32 1.442695, %v4742_v29  ;;  %v7699_v23 = vpop.eup %7698  ;;  %v4764_v52 = vsel %vm1727_vm11, %v7697_v63, 0.0 }
 0xd7d   : > { %4765 = vadd.xlane.f32.xlu0 %v4764_v52  ;;  %v4767_v12 = vsel %vm1727_vm11, %v7699_v23, 0.0  ;;  %v7215_v52 = vld [vmem:[%s10469_s16 + $0x24] sm:$0xf] }
 0xd7e   : > { %7700 = vpow2.f32 %v4755_v3  ;;  %4768 = vadd.xlane.f32.xlu1 %v4767_v12 }
 0xd7f   : > { %7702 = vpow2.f32 %v4757_v24 }
 0xd80   : > { %7704 = vpow2.f32 %v4745_v16  ;;  %v4727_v35 = vpop.xlane.xlu1 %4726  ;;  %v4736_v33 = vpop.xlane.xlu2 %4735 }
 0xd81   : > { %v4724_v9 = vpop.xlane.xlu0 %4723  ;;  %v4741_v18 = vsub.f32 %v4709_v37, %v4727_v35  ;;  %v4744_v34 = vsub.f32 %v4712_v6, %v4736_v33 }
 0xd82   : > { %v4740_v54 = vsub.f32 %v4708_v17, %v4724_v9 }
 0xd83   : > { %v4753_v1 = vmul.f32 1.442695, %v4741_v18  ;;  %v4759_v50 = vmul.f32 1.442695, %v4744_v34 }
 0xd84   : > { %v7701_v22 = vpop.eup %7700  ;;  %v4751_v5 = vmul.f32 1.442695, %v4740_v54 }
 0xd85   : > { %v7703_v26 = vpop.eup %7702  ;;  %v4776_v14 = vsel %vm1727_vm11, %v7701_v22, 0.0 }
 0xd86   : > { %v7705_v47 = vpop.eup %7704  ;;  %7706 = vpow2.f32 %v4751_v5  ;;  %4777 = vadd.xlane.f32.xlu2 %v4776_v14  ;;  %v4779_v7 = vsel %vm1727_vm11, %v7703_v26, 0.0 }
 0xd87   : > { %7708 = vpow2.f32 %v4759_v50  ;;  %v4761_v0 = vsel %vm1727_vm11, %v7705_v47, 0.0  ;;  %4780 = vadd.xlane.f32.xlu1 %v4779_v7 }
 0xd88   : > { %7710 = vpow2.f32 %v4753_v1  ;;  %4762 = vadd.xlane.f32.xlu0 %v4761_v0 }
 0xd8c   : > { %v7707_v17 = vpop.eup %7706 }
 0xd8d   : > { %v7709_v37 = vpop.eup %7708  ;;  %v4770_v6 = vsel %vm1727_vm11, %v7707_v17, 0.0 }
 0xd8e   : > { %v7711_v13 = vpop.eup %7710  ;;  %4771 = vadd.xlane.f32.xlu2 %v4770_v6  ;;  %v4782_v55 = vsel %vm1727_vm11, %v7709_v37, 0.0 }
 0xd8f   : > { %4783 = vadd.xlane.f32.xlu1 %v4782_v55  ;;  %v4773_v29 = vsel %vm1727_vm11, %v7711_v13, 0.0  ;;  %v7220_v55 = vld [vmem:[%s10469_s16 + $0x38] sm:$0xf] }
 0xd90   : > { %4774 = vadd.xlane.f32.xlu0 %v4773_v29  ;;  %v7218_v29 = vld [vmem:[%s10469_s16 + $0x30] sm:$0xf] }
 0xdf0   : > { %v4766_v30 = vpop.xlane.xlu0 %4765 }
 0xdf1   : > { %7712 = vrcp.f32 %v4766_v30  ;;  %v4769_v57 = vpop.xlane.xlu1 %4768  ;;  %v7221_v30 = vld [vmem:[%s10469_s16 + $0x3c] sm:$0xf] }
 0xdf2   : > { %7714 = vrcp.f32 %v4769_v57 }
 0xdf7   : > { %v7713_v62 = vpop.eup %7712 }
 0xdf8   : > { %v7715_v3 = vpop.eup %7714  ;;  %v4794_v16 = vmul.f32 %v7713_v62, %v7697_v63 }
 0xdf9   : > { %v4778_v24 = vpop.xlane.xlu2 %4777  ;;  %v4795_v12 = vmul.f32 %v7715_v3, %v7699_v23 }
 0xdfa   : > { %7716 = vrcp.f32 %v4778_v24  ;;  %v4781_v9 = vpop.xlane.xlu1 %4780  ;;  %7207 = vmatmul.msk.f32.vlgmr.msrb.gmra.mxu2 %vm1727_vm11, %v4794_v16 }
 0xdfb   : > { %v4763_v35 = vpop.xlane.xlu0 %4762  ;;  %7718 = vrcp.f32 %v4781_v9  ;;  %7208 = vmatmul.msk.f32.vlgmr.msra.gmra.mxu3 %vm1727_vm11, %v4795_v12  ;;  %7224 = vmatpush.msk.msrb.mxu2 %vm2011_vm12, %v7215_v52 }
 0xdfc   : > { %7720 = vrcp.f32 %v4763_v35 }
 0xe00   : > { %v7717_v54 = vpop.eup %7716 }
 0xe01   : > { %v7719_v33 = vpop.eup %7718  ;;  %v4798_v63 = vmul.f32 %v7717_v54, %v7701_v22  ;;  %v4772_v18 = vpop.xlane.xlu2 %4771 }
 0xe02   : > { %v7721_v34 = vpop.eup %7720  ;;  %v4799_v5 = vmul.f32 %v7719_v33, %v7703_v26  ;;  %7722 = vrcp.f32 %v4772_v18  ;;  %v4784_v50 = vpop.xlane.xlu1 %4783 }
 0xe03   : > { %v4793_v1 = vmul.f32 %v7721_v34, %v7705_v47  ;;  %v4775_v23 = vpop.xlane.xlu0 %4774  ;;  %7211 = vmatmul.msk.f32.vlgmr.msra.gmra.mxu2 %vm1727_vm11, %v4798_v63  ;;  %v7216_v47 = vld [vmem:[%s10469_s16 + $0x28] sm:$0xf] }
 0xe04   : > { %7724 = vrcp.f32 %v4775_v23  ;;  %7212 = vmatmul.msk.f32.vlgmr.msrb.gmra.mxu3 %vm1727_vm11, %v4799_v5 }
 0xe05   : > { %7206 = vmatmul.msk.f32.vlgmr.msra.gmra.mxu1 %vm1727_vm11, %v4793_v1  ;;  %7726 = vrcp.f32 %v4784_v50  ;;  %7226 = vmatpush.msk.msra.mxu3 %vm2011_vm12, %v7216_v47 }
 0xe07   : > { %7234 = vmatpush.msk.msrb.mxu3 %vm2011_vm12, %v7220_v55 }
 0xe08   : > { %v7723_v14 = vpop.eup %7722 }
 0xe09   : > { %v4796_v7 = vmul.f32 %v7723_v14, %v7707_v17  ;;  %v7214_v17 = vld [vmem:[%s10469_s16 + $0x20] sm:$0xf] }
 0xe0a   : > { %v7725_v0 = vpop.eup %7724  ;;  %7222 = vmatpush.msk.msra.mxu1 %vm2011_vm12, %v7214_v17 }
 0xe0b   : > { %v4797_v6 = vmul.f32 %v7725_v0, %v7711_v13  ;;  %7209 = vmatmul.msk.f32.vlgmr.msrb.gmra.mxu0 %vm1727_vm11, %v4796_v7  ;;  %v7727_v22 = vpop.eup %7726  ;;  %v7219_v13 = vld [vmem:[%s10469_s16 + $0x34] sm:$0xf] }
 0xe0c   : > { %v4800_v26 = vmul.f32 %v7727_v22, %v7709_v37  ;;  %7232 = vmatpush.msk.msra.mxu2 %vm2011_vm12, %v7219_v13  ;;  %v7217_v37 = vld [vmem:[%s10469_s16 + $0x2c] sm:$0xf] }
 0xe0d   : > { %7210 = vmatmul.msk.f32.vlgmr.msrb.gmra.mxu1 %vm1727_vm11, %v4797_v6  ;;  %7228 = vmatpush.msk.msrb.mxu0 %vm2011_vm12, %v7217_v37  ;;  %v7588_v6 = vld [vmem:[%s10470_s17 + $0x1] ss:$0 sm:$0xff] }
 0xe0e   : > { %7230 = vmatpush.msk.msrb.mxu1 %vm2011_vm12, %v7218_v29 }
 0xe13   : > { %7213 = vmatmul.msk.f32.vlgmr.msra.gmra.mxu0 %vm1727_vm11, %v4800_v26 }
 0xe14   : > { %7236 = vmatpush.msk.msra.mxu0 %vm2011_vm12, %v7221_v30 }
 0xe7d   : > { %v4844_v57 = vpop.f32.mrf.mxu2 }
 0xe7e   : > { %v4867_v62 = vpop.f32.mrf.mxu3  ;;  %7225 = vmatmul.msk.f32.vlgmr.msrb.gmra.mxu2 %vm1508_vm6, %v4844_v57 }
 0xe7f   : > { %7227 = vmatmul.msk.f32.vlgmr.msra.gmra.mxu3 %vm1508_vm6, %v4867_v62  ;;  %v7248_v62 = vld [vmem:[%s10521_s10 + $0x138] sm:$0xff] }
 0xe80   : > { %5357 = vmatpush.msrb.mxu2 %v7248_v62  ;;  %v7356_v62 = vld [vmem:[%s10467_s14 + $0x198] sm:$0xff] }
 0xe82   : > { %v4821_v3 = vpop.f32.mrf.mxu1 }
 0xe83   : > { %7223 = vmatmul.msk.f32.vlgmr.msra.gmra.mxu1 %vm1508_vm6, %v4821_v3  ;;  %v7252_v3 = vld [vmem:[%s10521_s10 + $0x158] sm:$0xff] }
 0xe84   : > { %5377 = vmatpush.msra.mxu3 %v7252_v3  ;;  %v7368_v3 = vld [vmem:[%s10467_s14 + $0x1f8] sm:$0xff] }
 0xe86   : > { %v4936_v16 = vpop.f32.mrf.mxu2 }
 0xe87   : > { %v4959_v24 = vpop.f32.mrf.mxu3  ;;  %7233 = vmatmul.msk.f32.vlgmr.msra.gmra.mxu2 %vm1508_vm6, %v4936_v16  ;;  %v7243_v16 = vld [vmem:[%s10521_s10 + $0x110] sm:$0xff] }
 0xe88   : > { %7235 = vmatmul.msk.f32.vlgmr.msrb.gmra.mxu3 %vm1508_vm6, %v4959_v24  ;;  %v4890_v52 = vpop.f32.mrf.mxu0  ;;  %v7247_v24 = vld [vmem:[%s10521_s10 + $0x130] sm:$0xff] }
 0xe89   : > { %7229 = vmatmul.msk.f32.vlgmr.msrb.gmra.mxu0 %vm1508_vm6, %v4890_v52  ;;  %v7251_v52 = vld [vmem:[%s10521_s10 + $0x150] sm:$0xff]  ;;  %5358 = vmatpush.msrb.mxu2 %v7247_v24  ;;  %v7346_v24 = vld [vmem:[%s10467_s14 + $0x148] sm:$0xff] }
 0xe8a   : > { %v4913_v12 = vpop.f32.mrf.mxu1  ;;  %5397 = vmatpush.msrb.mxu0 %v9290_v48  ;;  %5378 = vmatpush.msra.mxu3 %v7251_v52  ;;  %v7355_v52 = vld [vmem:[%s10467_s14 + $0x190] sm:$0xff] }
 0xe8b   : > { %7231 = vmatmul.msk.f32.vlgmr.msrb.gmra.mxu1 %vm1508_vm6, %v4913_v12  ;;  %v7242_v12 = vld [vmem:[%s10521_s10 + $0x108] sm:$0xff] }
 0xe8c   : > { %5398 = vmatpush.msrb.mxu0 %v9304_v58 }
 0xe8e   : > { %5399 = vmatpush.msrb.mxu0 %v9320_v2 }
 0xe90   : > { %v4982_v9 = vpop.f32.mrf.mxu0  ;;  %5400 = vmatpush.msrb.mxu0 %v9335_v42 }
 0xe91   : > { %7237 = vmatmul.msk.f32.vlgmr.msra.gmra.mxu0 %vm1508_vm6, %v4982_v9  ;;  %v7246_v9 = vld [vmem:[%s10521_s10 + $0x128] sm:$0xff] }
 0xe92   : > { %5477 = vmatpush.msra.mxu0 %v9365_v59  ;;  %5359 = vmatpush.msrb.mxu2 %v7246_v9  ;;  %v7341_v9 = vld [vmem:[%s10467_s14 + $0x120] sm:$0xff] }
 0xe94   : > { %5478 = vmatpush.msra.mxu0 %v9389_v15 }
 0xe96   : > { %5479 = vmatpush.msra.mxu0 %v9407_v53 }
 0xe98   : > { %5480 = vmatpush.msra.mxu0 %v9427_v20 }
 0xf00   : > { %v5017_v48 = vpop.f32.mrf.mxu1 }
 0xf01   : > { %v5043_v35 = vpop.f32.mrf.mxu2  ;;  %v5202_v54 = vsel %vm795_vm0, %v5017_v48, 0.0  ;;  %v7250_v48 = vld [vmem:[%s10521_s10 + $0x148] sm:$0xff] }
 0xf02   : > { %v5203_v58 = vsel %vm795_vm0, %v5043_v35, 0.0  ;;  %v5069_v2 = vpop.f32.mrf.mxu3  ;;  %v7241_v35 = vld [vmem:[%s10521_s10 + $0x100] sm:$0xff]  ;;  %5379 = vmatpush.msra.mxu3 %v7250_v48 }
 0xf03   : > { %v5204_v33 = vadd.f32 %v5203_v58, %v5202_v54  ;;  %v5205_v42 = vsel %vm795_vm0, %v5069_v2, 0.0  ;;  %v7245_v54 = vld [vmem:[%s10521_s10 + $0x120] sm:$0xff]  ;;  %v7260_v2 = vld [vmem:[%s10521_s10 + $0x198] sm:$0xff] }
 0xf04   : > { %v7249_v58 = vld [vmem:[%s10521_s10 + $0x140] sm:$0xff]  ;;  %5360 = vmatpush.msrb.mxu2 %v7245_v54  ;;  %v7366_v54 = vld [vmem:[%s10467_s14 + $0x1e8] sm:$0xff] }
 0xf05   : > { %v5206_v63 = vadd.f32 %v5205_v42, %v5204_v33  ;;  %v7264_v33 = vld [vmem:[%s10521_s10 + $0x1b8] sm:$0xff]  ;;  %v7259_v42 = vld [vmem:[%s10521_s10 + $0x190] sm:$0xff]  ;;  %5380 = vmatpush.msra.mxu3 %v7249_v58  ;;  %v7345_v48 = vld [vmem:[%s10467_s14 + $0x140] sm:$0xff] }
 0xf06   : > { %v5095_v18 = vpop.f32.mrf.mxu0  ;;  %5437 = vmatpush.msra.mxu2 %v7264_v33  ;;  %v7353_v58 = vld [vmem:[%s10467_s14 + $0x180] sm:$0xff]  ;;  %v7364_v33 = vld [vmem:[%s10467_s14 + $0x1d8] sm:$0xff] }
 0xf07   : > { %v5207_v59 = vsel %vm795_vm0, %v5095_v18, 0.0  ;;  %5457 = vmatpush.msrb.mxu3 %v9360_v10  ;;  %v7261_v10 = vld [vmem:[%s10521_s10 + $0x1a0] sm:$0xff] }
 0xf08   : > { %v5208_v34 = vadd.f32 %v5207_v59, %v5206_v63  ;;  %v5121_v15 = vpop.f32.mrf.mxu1  ;;  %v7263_v63 = vld [vmem:[%s10521_s10 + $0x1b0] sm:$0xff]  ;;  %v7258_v59 = vld [vmem:[%s10521_s10 + $0x188] sm:$0xff] }
 0xf09   : > { %v5209_v53 = vsel %vm795_vm0, %v5121_v15, 0.0  ;;  %v7262_v15 = vld [vmem:[%s10521_s10 + $0x1a8] sm:$0xff]  ;;  %5438 = vmatpush.msra.mxu2 %v7263_v63  ;;  %5458 = vmatpush.msrb.mxu3 %v9384_v21  ;;  %v7359_v63 = vld [vmem:[%s10467_s14 + $0x1b0] sm:$0xff] }
 0xf0a   : > { %v5210_v5 = vadd.f32 %v5209_v53, %v5208_v34  ;;  %v5147_v20 = vpop.f32.mrf.mxu2  ;;  %v7257_v53 = vld [vmem:[%s10521_s10 + $0x180] sm:$0xff] }
 0xf0b   : > { %v5211_v1 = vsel %vm795_vm0, %v5147_v20, 0.0  ;;  %v5173_v23 = vpop.f32.mrf.mxu3  ;;  %5439 = vmatpush.msra.mxu2 %v7262_v15  ;;  %5459 = vmatpush.msrb.mxu3 %v9402_v25  ;;  %v7590_v25 = vld [vmem:[%s10529_s7 + $0x1] ss:$0 sm:$0xff]  ;;  %s10540_s7 = sld [smem:[#allocation24_spill]] }
 0xf0c   : > { %v5212_v50 = vadd.f32 %v5211_v1, %v5210_v5  ;;  %v5213_v14 = vsel %vm795_vm0, %v5173_v23, 0.0  ;;  %v7357_v15 = vld [vmem:[%s10467_s14 + $0x1a0] sm:$0xff] }
 0xf0d   : > { %5440 = vmatpush.msra.mxu2 %v7261_v10  ;;  %5460 = vmatpush.msrb.mxu3 %v9422_v19 }
 0xf0e   : > { %v5214_v7 = vadd.f32 %v5213_v14, %v5212_v50  ;;  %v5199_v0 = vpop.f32.mrf.mxu0 }
 0xf0f   : > { %v5215_v22 = vsel %vm795_vm0, %v5199_v0, 0.0 }
 0xf10   : > { %v5216_v26 = vadd.f32 %v5215_v22, %v5214_v7  ;;  %v7589_v7 = vld [vmem:[%s10528_s0 + $0x1] ss:$0 sm:$0xff]  ;;  %s7788_s0 = scalar_lea.hbm %s10538_s23, 16 }
 0xf12   : > { %v5222_v47 = vadd.f32 %v7588_v6, %v5216_v26  ;;  %v7292_v26 = vld [vmem:[%s10465_s12 + $0x118] sm:$0xff] }
 0xf14   : > { %v9866_v17 = vadd.f32 %v5222_v47, %v9228_v43  ;;  %v7244_v43 = vld [vmem:[%s10521_s10 + $0x118] sm:$0xff]  ;;  %v7291_v47 = vld [vmem:[%s10465_s12 + $0x110] sm:$0xff]  ;;  %s6818_s10 = sshll.u32 %s6814_s24, 4  ;;  %s6819_s10 = int_to_ptr.hbm [resolvable:$true] %s6818_s10 }
 0xf15   : > { %5337 = vmatpush.msra.mxu1 %v7244_v43  ;;  %v7347_v43 = vld [vmem:[%s10467_s14 + $0x150] sm:$0xff]  ;;  %s7782_s22 = sshra.s32 %s6819_s10, 4  ;;  %s7783_s22 = int_to_ptr.hbm [resolvable:$true] %s7782_s22 }
 0xf16   : > { %v5228_v13 = vsel %vm795_vm0, %v9866_v17, 0.0  ;;  %s7784_s25 = scalar_lea.hbm %s7783_s22, 8  ;;  %p7789_p0 = scmp.lt.s32.totalorder %s7783_s22, %s10538_s23 }
 0xf17   : > { %5229 = vadd.xlane.f32.xlu2 %v5228_v13  ;;  %5338 = vmatpush.msra.mxu1 %v7243_v16  ;;  %v7290_v13 = vld [vmem:[%s10465_s12 + $0x108] sm:$0xff]  ;;  %p7785_p11 = scmp.ne.s32.totalorder %s7783_s22, %s7784_s25  ;;  %p7790_p1 = scmp.lt.s32.totalorder %s7788_s0, %s7784_s25 }
 0xf18   : > { %v7342_v16 = vld [vmem:[%s10467_s14 + $0x128] sm:$0xff] }
 0xf19   : > { %5339 = vmatpush.msra.mxu1 %v7242_v12  ;;  %v7367_v12 = vld [vmem:[%s10467_s14 + $0x1f0] sm:$0xff]  ;;  %p7786_p12 = pnand %p7785_p11, %p7997_p5  ;;  %p7791_p2 = por %p7790_p1, %p7789_p0 }
 0xf1b   : > { %5340 = vmatpush.msra.mxu1 %v7241_v35  ;;  %v7354_v35 = vld [vmem:[%s10467_s14 + $0x188] sm:$0xff]  ;;  %p7787_p13 = pneg %p7786_p12 }
 0xf1d   : > { %5417 = vmatpush.msrb.mxu1 %v7260_v2  ;;  %v7360_v2 = vld [vmem:[%s10467_s14 + $0x1b8] sm:$0xff]  ;;  %p7792_p3 = pnand %p7791_p2, %p7787_p13 }
 0xf1f   : > { %5418 = vmatpush.msrb.mxu1 %v7259_v42  ;;  %v7365_v42 = vld [vmem:[%s10467_s14 + $0x1e0] sm:$0xff] }
 0xf21   : > { %5419 = vmatpush.msrb.mxu1 %v7258_v59  ;;  %v7358_v59 = vld [vmem:[%s10467_s14 + $0x1a8] sm:$0xff] }
 0xf23   : > { %5420 = vmatpush.msrb.mxu1 %v7257_v53  ;;  %v7361_v53 = vld [vmem:[%s10467_s14 + $0x1c0] sm:$0xff] }
 0xf8a   : > { %v5230_v37 = vpop.xlane.xlu2 %5229 }
 0xf8b   : > { %v5231_v55 = vmul.f32 %v5230_v37, %v8028_v11  ;;  %v7344_v37 = vld [vmem:[%s10467_s14 + $0x138] sm:$0xff] }
 0xf8d   : > { %v9872_v29 = vsub.f32 %v9866_v17, %v5231_v55  ;;  %v7337_v55 = vld [vmem:[%s10467_s14 + $0x100] sm:$0xff] }
 0xf8f   : > { %v5233_v30 = vmul.f32 %v9872_v29, %v9872_v29 }
 0xf91   : > { %v5234_v57 = vsel %vm795_vm0, %v5233_v30, 0.0  ;;  %v7349_v30 = vld [vmem:[%s10467_s14 + $0x160] sm:$0xff] }
 0xf92   : > { %5235 = vadd.xlane.f32.xlu0 %v5234_v57  ;;  %v7343_v57 = vld [vmem:[%s10467_s14 + $0x130] sm:$0xff] }
0x1005   : > { %v5236_v18 = vpop.xlane.xlu0 %5235 }
0x1006   : > { %v5237_v34 = vmul.f32 %v5236_v18, %v8028_v11  ;;  %v7363_v18 = vld [vmem:[%s10467_s14 + $0x1d0] sm:$0xff] }
0x1008   : > { %v5238_v5 = vadd.f32 1e-05, %v5237_v34  ;;  %v7362_v34 = vld [vmem:[%s10467_s14 + $0x1c8] sm:$0xff] }
0x100a   : > { %7728 = vrsqrt.f32 %v5238_v5  ;;  %vm5245_vm10 = vweird.f32 %v5238_v5 }
0x1010   : > { %v7729_v20 = vpop.eup %7728 }
0x1011   : > { %v5240_v21 = vmul.f32 %v7729_v20, %v5238_v5  ;;  %vm5246_vm9 = vweird.f32 %v7729_v20 }
0x1012   : > { %vm5247_vm13 = vmor %vm5245_vm10, %vm5246_vm9 }
0x1013   : > { %v5241_v1 = vmul.f32 %v7729_v20, %v5240_v21 }
0x1015   : > { %v5242_v23 = vmul.f32 0.5, %v5241_v1 }
0x1017   : > { %v5243_v50 = vsub.f32 1.5, %v5242_v23 }
0x1019   : > { %v5244_v14 = vmul.f32 %v7729_v20, %v5243_v50  ;;  %v7599_v50 = vld [vmem:[%s10466_s13 + $0x8] ss:$0 sm:$0xff] }
0x101b   : > { %v5248_v0 = vsel %vm5247_vm13, %v7729_v20, %v5244_v14 }
0x101c   : > { %v5249_v19 = vmul.f32 %v5248_v0, %v9872_v29  ;;  %v7348_v29 = vld [vmem:[%s10467_s14 + $0x158] sm:$0xff] }
0x101e   : > { %v5253_v6 = vmul.f32 %v7589_v7, %v5249_v19  ;;  %v7600_v7 = vld [vmem:[%s10466_s13 + $0xb] ss:$0 sm:$0xff] }
0x1020   : > { %v5257_v22 = vadd.f32 %v7590_v25, %v5253_v6  ;;  %v7591_v25 = vld [vmem:[%s10464_s11 + $0x8] ss:$0 sm:$0xff]  ;;  %v7592_v6 = vld [vmem:[%s10464_s11 + $0xb] ss:$0 sm:$0xff] }
0x1022   : > { %7281 = vmatmul.msk.f32.vlgmr.msra.gmra.mxu1 %vm795_vm0, %v5257_v22  ;;  %7282 = vmatmul.msk.f32.vlgmr.msrb.gmra.mxu2 %vm795_vm0, %v5257_v22 }
0x1023   : > { %7283 = vmatmul.msk.f32.vlgmr.msra.gmra.mxu3 %vm795_vm0, %v5257_v22  ;;  %7284 = vmatmul.msk.f32.vlgmr.msrb.gmra.mxu0 %vm795_vm0, %v5257_v22 }
0x1024   : > { %5561 = vmatpush.msra.mxu1 %v7292_v26  ;;  %5581 = vmatpush.msrb.mxu2 %v9446_v4  ;;  %v7289_v4 = vld [vmem:[%s10465_s12 + $0x100] sm:$0xff] }
0x1025   : > { %5601 = vmatpush.msra.mxu3 %v9451_v27  ;;  %5621 = vmatpush.msrb.mxu0 %v9458_v28  ;;  %v7308_v27 = vld [vmem:[%s10465_s12 + $0x198] sm:$0xff]  ;;  %v7307_v28 = vld [vmem:[%s10465_s12 + $0x190] sm:$0xff] }
0x1026   : > { %5562 = vmatpush.msra.mxu1 %v7291_v47  ;;  %5582 = vmatpush.msrb.mxu2 %v9463_v8  ;;  %v7306_v8 = vld [vmem:[%s10465_s12 + $0x188] sm:$0xff] }
0x1027   : > { %5602 = vmatpush.msra.mxu3 %v9468_v31  ;;  %5622 = vmatpush.msrb.mxu0 %v9475_v32  ;;  %v7310_v31 = vld [vmem:[%s10465_s12 + $0x1a8] sm:$0xff]  ;;  %v10000_v32 = vld [vmem:[%s8799_s1] sm:$0xff]  ;;  %s6912_s1 = sshll.u32 %s761_s27, 3 }
0x1028   : > { %5563 = vmatpush.msra.mxu1 %v7290_v13  ;;  %5583 = vmatpush.msrb.mxu2 %v9484_v36  ;;  %v7314_v36 = vld [vmem:[%s10465_s12 + $0x1c8] sm:$0xff] }
0x1029   : > { %5603 = vmatpush.msra.mxu3 %v9489_v38  ;;  %5623 = vmatpush.msrb.mxu0 %v9498_v40  ;;  %v7318_v38 = vld [vmem:[%s10465_s12 + $0x1e8] sm:$0xff]  ;;  %v7305_v40 = vld [vmem:[%s10465_s12 + $0x180] sm:$0xff] }
0x102a   : > { %7285 = vmatmul.msk.f32.vlgmr.msrb.gmra.mxu1 %vm795_vm0, %v5257_v22  ;;  %7286 = vmatmul.msk.f32.vlgmr.msra.gmra.mxu2 %vm795_vm0, %v5257_v22  ;;  %v7601_v13 = vld [vmem:[%s10466_s13 + $0x9] ss:$0 sm:$0xff] }
0x102b   : > { %7287 = vmatmul.msk.f32.vlgmr.msrb.gmra.mxu3 %vm795_vm0, %v5257_v22  ;;  %7288 = vmatmul.msk.f32.vlgmr.msra.gmra.mxu0 %vm795_vm0, %v5257_v22 }
0x102c   : > { %5564 = vmatpush.msra.mxu1 %v7289_v4  ;;  %5584 = vmatpush.msrb.mxu2 %v9507_v41  ;;  %v7309_v41 = vld [vmem:[%s10465_s12 + $0x1a0] sm:$0xff] }
0x102d   : > { %5604 = vmatpush.msra.mxu3 %v9512_v46  ;;  %5624 = vmatpush.msrb.mxu0 %v9519_v44  ;;  %v7313_v46 = vld [vmem:[%s10465_s12 + $0x1c0] sm:$0xff] }
0x102e   : > { %5641 = vmatpush.msrb.mxu1 %v7308_v27  ;;  %5661 = vmatpush.msra.mxu2 %v9524_v45  ;;  %v7317_v44 = vld [vmem:[%s10465_s12 + $0x1e0] sm:$0xff]  ;;  %v7340_v45 = vld [vmem:[%s10467_s14 + $0x118] sm:$0xff]  ;;  %v7602_v27 = vld [vmem:[%s10466_s13 + $0xa] ss:$0 sm:$0xff] }
0x102f   : > { %5681 = vmatpush.msrb.mxu3 %v9530_v49  ;;  %5701 = vmatpush.msra.mxu0 %v9535_v51  ;;  %v7352_v49 = vld [vmem:[%s10467_s14 + $0x178] sm:$0xff]  ;;  %v7339_v51 = vld [vmem:[%s10467_s14 + $0x110] sm:$0xff] }
0x1030   : > { %5642 = vmatpush.msrb.mxu1 %v7307_v28  ;;  %5662 = vmatpush.msra.mxu2 %v9542_v56  ;;  %v7351_v56 = vld [vmem:[%s10467_s14 + $0x170] sm:$0xff] }
0x1031   : > { %5682 = vmatpush.msrb.mxu3 %v9551_v60  ;;  %5702 = vmatpush.msra.mxu0 %v9557_v61  ;;  %v7338_v60 = vld [vmem:[%s10467_s14 + $0x108] sm:$0xff] }
0x1032   : > { %7329 = vmatmul.msk.f32.vlgmr.msra.gmra.mxu1 %vm795_vm0, %v10000_v32  ;;  %7330 = vmatmul.msk.f32.vlgmr.msrb.gmra.mxu2 %vm795_vm0, %v10000_v32  ;;  %v7350_v61 = vld [vmem:[%s10467_s14 + $0x168] sm:$0xff] }
0x1033   : > { %7331 = vmatmul.msk.f32.vlgmr.msra.gmra.mxu3 %vm795_vm0, %v10000_v32  ;;  %7332 = vmatmul.msk.f32.vlgmr.msrb.gmra.mxu0 %vm795_vm0, %v10000_v32 }
0x1034   : > { %5643 = vmatpush.msrb.mxu1 %v7306_v8  ;;  %5663 = vmatpush.msra.mxu2 %v7310_v31  ;;  %v7603_v8 = vld [vmem:[%s10466_s13 + $0xc] ss:$0 sm:$0xff]  ;;  %v7593_v31 = vld [vmem:[%s10464_s11 + $0x9] ss:$0 sm:$0xff] }
0x1035   : > { %5683 = vmatpush.msrb.mxu3 %v7314_v36  ;;  %5703 = vmatpush.msra.mxu0 %v7318_v38  ;;  %v7604_v36 = vld [vmem:[%s10466_s13 + $0xf] ss:$0 sm:$0xff]  ;;  %v7594_v38 = vld [vmem:[%s10464_s11 + $0xa] ss:$0 sm:$0xff] }
0x1036   : > { %5644 = vmatpush.msrb.mxu1 %v7305_v40  ;;  %5664 = vmatpush.msra.mxu2 %v7309_v41 }
0x1037   : > { %5684 = vmatpush.msrb.mxu3 %v7313_v46  ;;  %5704 = vmatpush.msra.mxu0 %v7317_v44  ;;  %v7595_v46 = vld [vmem:[%s10464_s11 + $0xc] ss:$0 sm:$0xff] }
0x1038   : > { %5785 = vmatpush.msra.mxu1 %v7340_v45  ;;  %5805 = vmatpush.msrb.mxu2 %v7344_v37 }
0x1039   : > { %5845 = vmatpush.msrb.mxu0 %v7352_v49  ;;  %5825 = vmatpush.msra.mxu3 %v7348_v29  ;;  %v7596_v49 = vld [vmem:[%s10464_s11 + $0xf] ss:$0 sm:$0xff] }
0x103a   : > { %7333 = vmatmul.msk.f32.vlgmr.msrb.gmra.mxu1 %vm795_vm0, %v10000_v32  ;;  %7334 = vmatmul.msk.f32.vlgmr.msra.gmra.mxu2 %vm795_vm0, %v10000_v32 }
0x103b   : > { %7335 = vmatmul.msk.f32.vlgmr.msrb.gmra.mxu3 %vm795_vm0, %v10000_v32  ;;  %7336 = vmatmul.msk.f32.vlgmr.msra.gmra.mxu0 %vm795_vm0, %v10000_v32 }
0x103c   : > { %5786 = vmatpush.msra.mxu1 %v7339_v51  ;;  %5846 = vmatpush.msrb.mxu0 %v7351_v56 }
0x103d   : > { %5806 = vmatpush.msrb.mxu2 %v7343_v57  ;;  %5826 = vmatpush.msra.mxu3 %v7347_v43  ;;  %v7597_v43 = vld [vmem:[%s10464_s11 + $0xd] ss:$0 sm:$0xff] }
0x103e   : > { %5787 = vmatpush.msra.mxu1 %v7338_v60  ;;  %5847 = vmatpush.msrb.mxu0 %v7350_v61 }
0x103f   : > { %5807 = vmatpush.msrb.mxu2 %v7342_v16  ;;  %5827 = vmatpush.msra.mxu3 %v7346_v24 }
0x1040   : > { %5788 = vmatpush.msra.mxu1 %v7337_v55  ;;  %5848 = vmatpush.msrb.mxu0 %v7349_v30  ;;  %v7605_v55 = vld [vmem:[%s10466_s13 + $0xd] ss:$0 sm:$0xff]  ;;  %v7606_v30 = vld [vmem:[%s10466_s13 + $0xe] ss:$0 sm:$0xff] }
0x1041   : > { %5808 = vmatpush.msrb.mxu2 %v7341_v9  ;;  %5828 = vmatpush.msra.mxu3 %v7345_v48  ;;  %v7607_v48 = vld [vmem:[%s10468_s15 + $0x8] ss:$0 sm:$0xff] }
0x1042   : > { %7377 = vmatmul.msk.f32.vlgmr.msra.gmra.mxu1 %vm795_vm0, %v10000_v32  ;;  %5925 = vmatpush.msra.mxu0 %v7368_v3  ;;  %v7598_v3 = vld [vmem:[%s10464_s11 + $0xe] ss:$0 sm:$0xff] }
0x1043   : > { %7380 = vmatmul.msk.f32.vlgmr.msrb.gmra.mxu0 %vm795_vm0, %v10000_v32  ;;  %5865 = vmatpush.msrb.mxu1 %v7356_v62 }
0x1044   : > { %5926 = vmatpush.msra.mxu0 %v7367_v12  ;;  %7378 = vmatmul.msk.f32.vlgmr.msrb.gmra.mxu2 %vm795_vm0, %v10000_v32 }
0x1045   : > { %5866 = vmatpush.msrb.mxu1 %v7355_v52  ;;  %7379 = vmatmul.msk.f32.vlgmr.msra.gmra.mxu3 %vm795_vm0, %v10000_v32 }
0x1046   : > { %5927 = vmatpush.msra.mxu0 %v7366_v54  ;;  %5885 = vmatpush.msra.mxu2 %v7360_v2 }
0x1047   : > { %5867 = vmatpush.msrb.mxu1 %v7354_v35  ;;  %5905 = vmatpush.msrb.mxu3 %v7364_v33  ;;  %v7608_v35 = vld [vmem:[%s10468_s15 + $0xb] ss:$0 sm:$0xff] }
0x1048   : > { %5928 = vmatpush.msra.mxu0 %v7365_v42  ;;  %5886 = vmatpush.msra.mxu2 %v7359_v63  ;;  %v7609_v42 = vld [vmem:[%s10468_s15 + $0xc] ss:$0 sm:$0xff]  ;;  %v7610_v63 = vld [vmem:[%s10468_s15 + $0xf] ss:$0 sm:$0xff] }
0x1049   : > { %5868 = vmatpush.msrb.mxu1 %v7353_v58  ;;  %5906 = vmatpush.msrb.mxu3 %v7363_v18 }
0x104a   : > { %7381 = vmatmul.msk.f32.vlgmr.msrb.gmra.mxu1 %vm795_vm0, %v10000_v32  ;;  %5887 = vmatpush.msra.mxu2 %v7358_v59 }
0x104b   : > { %7384 = vmatmul.msk.f32.vlgmr.msra.gmra.mxu0 %vm795_vm0, %v10000_v32  ;;  %5907 = vmatpush.msrb.mxu3 %v7362_v34  ;;  %v7611_v34 = vld [vmem:[%s10468_s15 + $0x9] ss:$0 sm:$0xff] }
0x104c   : > { %5888 = vmatpush.msra.mxu2 %v7357_v15  ;;  %v7612_v15 = vld [vmem:[%s10468_s15 + $0xa] ss:$0 sm:$0xff] }
0x104d   : > { %5908 = vmatpush.msrb.mxu3 %v7361_v53  ;;  %7382 = vmatmul.msk.f32.vlgmr.msra.gmra.mxu2 %vm795_vm0, %v10000_v32 }
0x104e   : > { %7383 = vmatmul.msk.f32.vlgmr.msrb.gmra.mxu3 %vm795_vm0, %v10000_v32 }
0x109f   : > { %v5342_v5 = vpop.f32.mrf.mxu1 }
0x10a0   : > { %v5402_v10 = vpop.f32.mrf.mxu0  ;;  %v5343_v4 = vadd.f32 %v7591_v25, %v5342_v5 }
0x10a1   : > { %v5403_v28 = vadd.f32 %v7592_v6, %v5402_v10 }
0x10a5   : > { %v5362_v20 = vpop.f32.mrf.mxu2 }
0x10a6   : > { %v5382_v21 = vpop.f32.mrf.mxu3  ;;  %v5363_v60 = vadd.f32 %v7593_v31, %v5362_v20 }
0x10a7   : > { %v5422_v1 = vpop.f32.mrf.mxu1  ;;  %v5383_v37 = vadd.f32 %v7594_v38, %v5382_v21 }
0x10a8   : > { %v5482_v23 = vpop.f32.mrf.mxu0  ;;  %v5423_v29 = vadd.f32 %v7595_v46, %v5422_v1 }
0x10a9   : > { %v5483_v57 = vadd.f32 %v7596_v49, %v5482_v23  ;;  %v7613_v23 = vld [vmem:[%s10468_s15 + $0xd] ss:$0 sm:$0xff] }
0x10ad   : > { %v5442_v14 = vpop.f32.mrf.mxu2 }
0x10ae   : > { %v5462_v0 = vpop.f32.mrf.mxu3  ;;  %v5443_v12 = vadd.f32 %v7597_v43, %v5442_v14 }
0x10af   : > { %v5566_v19 = vpop.f32.mrf.mxu1  ;;  %v5463_v9 = vadd.f32 %v7598_v3, %v5462_v0 }
0x10b0   : > { %v5567_v22 = vadd.f32 %v7599_v50, %v5566_v19  ;;  %v5626_v26 = vpop.f32.mrf.mxu0  ;;  %v7614_v50 = vld [vmem:[%s10468_s15 + $0xe] ss:$0 sm:$0xff] }
0x10b1   : > { %v5627_v47 = vadd.f32 %v7600_v7, %v5626_v26 }
0x10b2   : > { %7385 = vmatpush.xpose.msk.msra.mxu1 %vm1508_vm6, %v5567_v22 }
0x10b3   : > { %7391 = vmatpush.xpose.msk.msrb.mxu0 %vm1508_vm6, %v5627_v47 }
0x10b5   : > { %v5586_v32 = vpop.f32.mrf.mxu2  ;;  %7386 = vmatmul.msk.f32.vlgmr.msra.gmra.mxu1 %vm1508_vm6, %v5343_v4 }
0x10b6   : > { %v5587_v40 = vadd.f32 %v7601_v13, %v5586_v32  ;;  %v5606_v41 = vpop.f32.mrf.mxu3  ;;  %7392 = vmatmul.msk.f32.vlgmr.msrb.gmra.mxu0 %vm1508_vm6, %v5403_v28 }
0x10b7   : > { %v5607_v44 = vadd.f32 %v7602_v27, %v5606_v41  ;;  %v5646_v45 = vpop.f32.mrf.mxu1 }
0x10b8   : > { %v5647_v51 = vadd.f32 %v7603_v8, %v5646_v45  ;;  %v5706_v56 = vpop.f32.mrf.mxu0  ;;  %7387 = vmatpush.xpose.msk.msrb.mxu2 %vm1508_vm6, %v5587_v40 }
0x10b9   : > { %v5707_v61 = vadd.f32 %v7604_v36, %v5706_v56  ;;  %7389 = vmatpush.xpose.msk.msra.mxu3 %vm1508_vm6, %v5607_v44 }
0x10ba   : > { %7393 = vmatpush.xpose.msk.msrb.mxu1 %vm1508_vm6, %v5647_v51 }
0x10bb   : > { %7399 = vmatpush.xpose.msk.msra.mxu0 %vm1508_vm6, %v5707_v61  ;;  %7388 = vmatmul.msk.f32.vlgmr.msrb.gmra.mxu2 %vm1508_vm6, %v5363_v60 }
0x10bc   : > { %7390 = vmatmul.msk.f32.vlgmr.msra.gmra.mxu3 %vm1508_vm6, %v5383_v37 }
0x10bd   : > { %v5666_v62 = vpop.f32.mrf.mxu2  ;;  %7394 = vmatmul.msk.f32.vlgmr.msrb.gmra.mxu1 %vm1508_vm6, %v5423_v29 }
0x10be   : > { %v5667_v16 = vadd.f32 %v7605_v55, %v5666_v62  ;;  %v5686_v24 = vpop.f32.mrf.mxu3  ;;  %7400 = vmatmul.msk.f32.vlgmr.msra.gmra.mxu0 %vm1508_vm6, %v5483_v57 }
0x10bf   : > { %v5687_v52 = vadd.f32 %v7606_v30, %v5686_v24  ;;  %v5790_v54 = vpop.f32.mrf.mxu1 }
0x10c0   : > { %7395 = vmatpush.xpose.msk.msra.mxu2 %vm1508_vm6, %v5667_v16  ;;  %v5850_v58 = vpop.f32.mrf.mxu0  ;;  %v5791_v2 = vadd.f32 %v7607_v48, %v5790_v54 }
0x10c1   : > { %7397 = vmatpush.xpose.msk.msrb.mxu3 %vm1508_vm6, %v5687_v52  ;;  %v5851_v33 = vadd.f32 %v7608_v35, %v5850_v58 }
0x10c2   : > { %6255 = vmatpush.msra.mxu1 %v5791_v2 }
0x10c3   : > { %7396 = vmatmul.msk.f32.vlgmr.msra.gmra.mxu2 %vm1508_vm6, %v5443_v12  ;;  %6324 = vmatpush.msrb.mxu0 %v5851_v33 }
0x10c4   : > { %7398 = vmatmul.msk.f32.vlgmr.msrb.gmra.mxu3 %vm1508_vm6, %v5463_v9 }
0x10c7   : > { %v5870_v18 = vpop.f32.mrf.mxu1  ;;  %v5810_v10 = vpop.f32.mrf.mxu2 }
0x10c8   : > { %v5930_v59 = vpop.f32.mrf.mxu0  ;;  %v5871_v53 = vadd.f32 %v7609_v42, %v5870_v18  ;;  %v5830_v20 = vpop.f32.mrf.mxu3  ;;  %v5811_v21 = vadd.f32 %v7611_v34, %v5810_v10 }
0x10c9   : > { %v5931_v5 = vadd.f32 %v7610_v63, %v5930_v59  ;;  %v5831_v1 = vadd.f32 %v7612_v15, %v5830_v20 }
0x10ca   : > { %6347 = vmatpush.msrb.mxu1 %v5871_v53  ;;  %6278 = vmatpush.msrb.mxu2 %v5811_v21 }
0x10cb   : > { %6416 = vmatpush.msra.mxu0 %v5931_v5  ;;  %6301 = vmatpush.msra.mxu3 %v5831_v1 }
0x10d0   : > { %v5890_v14 = vpop.f32.mrf.mxu2 }
0x10d1   : > { %v5910_v7 = vpop.f32.mrf.mxu3  ;;  %v5891_v0 = vadd.f32 %v7613_v23, %v5890_v14 }
0x10d2   : > { %v5911_v25 = vadd.f32 %v7614_v50, %v5910_v7 }
0x10d3   : > { %6370 = vmatpush.msra.mxu2 %v5891_v0 }
0x10d4   : > { %6393 = vmatpush.msrb.mxu3 %v5911_v25 }
0x1132   : > { %v5956_v26 = vpop.f32.mrf.mxu1 }
0x1133   : > { %v6034_v4 = vpop.f32.mrf.mxu0  ;;  %v6141_v28 = vsel %vm9050_vm1, %v5956_v26, -1e+09 }
0x1134   : > { %v6149_v40 = vsel %vm1727_vm11, %v6141_v28, -inf  ;;  %v6144_v45 = vsel %vm9050_vm1, %v6034_v4, -1e+09 }
0x1135   : > { %v6158_v56 = vsel %vm1727_vm11, %v6144_v45, -inf }
0x113a   : > { %v6060_v46 = vpop.f32.mrf.mxu1 }
0x113b   : > { %v6138_v44 = vpop.f32.mrf.mxu0  ;;  %v6145_v49 = vsel %vm9050_vm1, %v6060_v46, -1e+09 }
0x113c   : > { %v6148_v51 = vsel %vm9050_vm1, %v6138_v44, -1e+09  ;;  %v6161_v60 = vsel %vm1727_vm11, %v6145_v49, -inf }
0x113d   : > { %v6170_v61 = vsel %vm1727_vm11, %v6148_v51, -inf }
0x113e   : > { %v5982_v19 = vpop.f32.mrf.mxu2 }
0x113f   : > { %v6142_v6 = vsel %vm9050_vm1, %v5982_v19, -1e+09  ;;  %v6008_v22 = vpop.f32.mrf.mxu3 }
0x1140   : > { %v6143_v47 = vsel %vm9050_vm1, %v6008_v22, -1e+09  ;;  %v6152_v13 = vsel %vm1727_vm11, %v6142_v6, -inf }
0x1141   : > { %v6155_v27 = vsel %vm1727_vm11, %v6143_v47, -inf  ;;  %6153 = vmax.xlane.f32.xlu1 %v6152_v13 }
0x1142   : > { %6156 = vmax.xlane.f32.xlu2 %v6155_v27 }
0x1146   : > { %v6086_v8 = vpop.f32.mrf.mxu2 }
0x1147   : > { %v6146_v31 = vsel %vm9050_vm1, %v6086_v8, -1e+09  ;;  %v6112_v32 = vpop.f32.mrf.mxu3 }
0x1148   : > { %v6147_v36 = vsel %vm9050_vm1, %v6112_v32, -1e+09  ;;  %v6164_v38 = vsel %vm1727_vm11, %v6146_v31, -inf }
0x1149   : > { %v6167_v41 = vsel %vm1727_vm11, %v6147_v36, -inf  ;;  %6165 = vmax.xlane.f32.xlu0 %v6164_v38  ;;  %6150 = vmax.xlane.f32.xlu1 %v6149_v40 }
0x114a   : > { %6168 = vmax.xlane.f32.xlu2 %v6167_v41 }
0x1151   : > { %6159 = vmax.xlane.f32.xlu0 %v6158_v56  ;;  %6162 = vmax.xlane.f32.xlu1 %v6161_v60 }
0x1152   : > { %6171 = vmax.xlane.f32.xlu2 %v6170_v61 }
0x11b4   : > { %v6154_v37 = vpop.xlane.xlu1 %6153 }
0x11b5   : > { %v6157_v55 = vpop.xlane.xlu2 %6156  ;;  %v6174_v29 = vsub.f32 %v6142_v6, %v6154_v37 }
0x11b6   : > { %v6175_v30 = vsub.f32 %v6143_v47, %v6157_v55 }
0x11b7   : > { %v6183_v57 = vmul.f32 1.442695, %v6174_v29 }
0x11b8   : > { %v6185_v43 = vmul.f32 1.442695, %v6175_v30  ;;  %v7411_v30 = vld [vmem:[%s10469_s16 + $0x28] sm:$0xf] }
0x11b9   : > { %7730 = vpow2.f32 %v6183_v57  ;;  %v7409_v57 = vld [vmem:[%s10469_s16 + $0x20] sm:$0xf] }
0x11ba   : > { %7732 = vpow2.f32 %v6185_v43  ;;  %v7414_v43 = vld [vmem:[%s10469_s16 + $0x34] sm:$0xf] }
0x11bc   : > { %v6166_v62 = vpop.xlane.xlu0 %6165  ;;  %v6151_v39 = vpop.xlane.xlu1 %6150 }
0x11bd   : > { %v6169_v3 = vpop.xlane.xlu2 %6168  ;;  %v6178_v16 = vsub.f32 %v6146_v31, %v6166_v62  ;;  %v6173_v24 = vsub.f32 %v6141_v28, %v6151_v39  ;;  %v7410_v28 = vld [vmem:[%s10469_s16 + $0x24] sm:$0xf]  ;;  %v7412_v62 = vld [vmem:[%s10469_s16 + $0x2c] sm:$0xf]  ;;  %v7415_v39 = vld [vmem:[%s10469_s16 + $0x38] sm:$0xf] }
0x11be   : > { %v6179_v52 = vsub.f32 %v6147_v36, %v6169_v3  ;;  %v7413_v3 = vld [vmem:[%s10469_s16 + $0x30] sm:$0xf] }
0x11bf   : > { %v7731_v12 = vpop.eup %7730  ;;  %v6191_v9 = vmul.f32 1.442695, %v6178_v16  ;;  %v6181_v48 = vmul.f32 1.442695, %v6173_v24  ;;  %v7416_v16 = vld [vmem:[%s10469_s16 + $0x3c] sm:$0xf] }
0x11c0   : > { %v7733_v35 = vpop.eup %7732  ;;  %v6193_v54 = vmul.f32 1.442695, %v6179_v52  ;;  %v6200_v58 = vsel %vm1727_vm11, %v7731_v12, 0.0 }
0x11c1   : > { %7734 = vpow2.f32 %v6191_v9  ;;  %6201 = vadd.xlane.f32.xlu0 %v6200_v58  ;;  %v6203_v2 = vsel %vm1727_vm11, %v7733_v35, 0.0 }
0x11c2   : > { %7736 = vpow2.f32 %v6193_v54  ;;  %6204 = vadd.xlane.f32.xlu1 %v6203_v2 }
0x11c3   : > { %7738 = vpow2.f32 %v6181_v48 }
0x11c4   : > { %v6160_v33 = vpop.xlane.xlu0 %6159  ;;  %v6163_v42 = vpop.xlane.xlu1 %6162 }
0x11c5   : > { %v6172_v63 = vpop.xlane.xlu2 %6171  ;;  %v6176_v18 = vsub.f32 %v6144_v45, %v6160_v33  ;;  %v6177_v59 = vsub.f32 %v6145_v49, %v6163_v42 }
0x11c6   : > { %v6180_v34 = vsub.f32 %v6148_v51, %v6172_v63 }
0x11c7   : > { %v7735_v15 = vpop.eup %7734  ;;  %v6187_v53 = vmul.f32 1.442695, %v6176_v18  ;;  %v6189_v5 = vmul.f32 1.442695, %v6177_v59 }
0x11c8   : > { %v7737_v10 = vpop.eup %7736  ;;  %v6195_v20 = vmul.f32 1.442695, %v6180_v34  ;;  %v6212_v21 = vsel %vm1727_vm11, %v7735_v15, 0.0 }
0x11c9   : > { %v7739_v1 = vpop.eup %7738  ;;  %7740 = vpow2.f32 %v6187_v53  ;;  %6213 = vadd.xlane.f32.xlu2 %v6212_v21  ;;  %v6215_v23 = vsel %vm1727_vm11, %v7737_v10, 0.0 }
0x11ca   : > { %7742 = vpow2.f32 %v6195_v20  ;;  %v6197_v50 = vsel %vm1727_vm11, %v7739_v1, 0.0  ;;  %6216 = vadd.xlane.f32.xlu1 %v6215_v23 }
0x11cb   : > { %7744 = vpow2.f32 %v6189_v5  ;;  %6198 = vadd.xlane.f32.xlu0 %v6197_v50 }
0x11cf   : > { %v7741_v14 = vpop.eup %7740 }
0x11d0   : > { %v7743_v7 = vpop.eup %7742  ;;  %v6206_v0 = vsel %vm1727_vm11, %v7741_v14, 0.0 }
0x11d1   : > { %v7745_v25 = vpop.eup %7744  ;;  %6207 = vadd.xlane.f32.xlu2 %v6206_v0  ;;  %v6218_v19 = vsel %vm1727_vm11, %v7743_v7, 0.0 }
0x11d2   : > { %6219 = vadd.xlane.f32.xlu1 %v6218_v19  ;;  %v6209_v6 = vsel %vm1727_vm11, %v7745_v25, 0.0 }
0x11d3   : > { %6210 = vadd.xlane.f32.xlu0 %v6209_v6  ;;  %v7615_v6 = vld [vmem:[%s10470_s17 + $0x1] ss:$0 sm:$0xff] }
0x1234   : > { %v6202_v22 = vpop.xlane.xlu0 %6201 }
0x1235   : > { %7746 = vrcp.f32 %v6202_v22  ;;  %v6205_v26 = vpop.xlane.xlu1 %6204 }
0x1236   : > { %7748 = vrcp.f32 %v6205_v26 }
0x123b   : > { %v7747_v47 = vpop.eup %7746 }
0x123c   : > { %v7749_v13 = vpop.eup %7748  ;;  %v6230_v4 = vmul.f32 %v7747_v47, %v7731_v12  ;;  %v6214_v27 = vpop.xlane.xlu2 %6213 }
0x123d   : > { %v6231_v8 = vmul.f32 %v7749_v13, %v7733_v35  ;;  %7750 = vrcp.f32 %v6214_v27  ;;  %v6217_v31 = vpop.xlane.xlu1 %6216 }
0x123e   : > { %v6199_v32 = vpop.xlane.xlu0 %6198  ;;  %7752 = vrcp.f32 %v6217_v31  ;;  %7402 = vmatmul.msk.f32.vlgmr.msrb.gmra.mxu2 %vm1727_vm11, %v6230_v4 }
0x123f   : > { %7754 = vrcp.f32 %v6199_v32  ;;  %7403 = vmatmul.msk.f32.vlgmr.msra.gmra.mxu3 %vm1727_vm11, %v6231_v8  ;;  %7419 = vmatpush.msk.msrb.mxu2 %vm2011_vm12, %v7410_v28 }
0x1240   : > { %7421 = vmatpush.msk.msra.mxu3 %vm2011_vm12, %v7411_v30  ;;  %v7449_v30 = vld [vmem:[%s10473_s20 + $0xb8] sm:$0xff] }
0x1243   : > { %v7751_v36 = vpop.eup %7750 }
0x1244   : > { %v7753_v38 = vpop.eup %7752  ;;  %v6234_v40 = vmul.f32 %v7751_v36, %v7735_v15  ;;  %v6208_v41 = vpop.xlane.xlu2 %6207  ;;  %v7439_v36 = vld [vmem:[%s10471_s18 + $0x38] sm:$0xff] }
0x1245   : > { %v7755_v46 = vpop.eup %7754  ;;  %v6235_v44 = vmul.f32 %v7753_v38, %v7737_v10  ;;  %7756 = vrcp.f32 %v6208_v41  ;;  %v6220_v51 = vpop.xlane.xlu1 %6219  ;;  %v7437_v38 = vld [vmem:[%s10471_s18 + $0x28] sm:$0xff]  ;;  %v7457_v41 = vld [vmem:[%s10473_s20 + $0xf8] sm:$0xff] }
0x1246   : > { %v6229_v45 = vmul.f32 %v7755_v46, %v7739_v1  ;;  %v6211_v49 = vpop.xlane.xlu0 %6210  ;;  %7406 = vmatmul.msk.f32.vlgmr.msra.gmra.mxu2 %vm1727_vm11, %v6234_v40  ;;  %v7436_v40 = vld [vmem:[%s10471_s18 + $0x20] sm:$0xff]  ;;  %v7456_v46 = vld [vmem:[%s10473_s20 + $0xf0] sm:$0xff] }
0x1247   : > { %7758 = vrcp.f32 %v6211_v49  ;;  %7407 = vmatmul.msk.f32.vlgmr.msrb.gmra.mxu3 %vm1727_vm11, %v6235_v44  ;;  %7427 = vmatpush.msk.msra.mxu2 %vm2011_vm12, %v7414_v43  ;;  %v7455_v44 = vld [vmem:[%s10473_s20 + $0xe8] sm:$0xff]  ;;  %v7448_v43 = vld [vmem:[%s10473_s20 + $0xb0] sm:$0xff] }
0x1248   : > { %7401 = vmatmul.msk.f32.vlgmr.msra.gmra.mxu1 %vm1727_vm11, %v6229_v45  ;;  %7760 = vrcp.f32 %v6220_v51  ;;  %7429 = vmatpush.msk.msrb.mxu3 %vm2011_vm12, %v7415_v39  ;;  %v7454_v51 = vld [vmem:[%s10473_s20 + $0xe0] sm:$0xff]  ;;  %v7447_v39 = vld [vmem:[%s10473_s20 + $0xa8] sm:$0xff] }
0x1249   : > { %7417 = vmatpush.msk.msra.mxu1 %vm2011_vm12, %v7409_v57 }
0x124b   : > { %v7757_v56 = vpop.eup %7756 }
0x124c   : > { %v6232_v60 = vmul.f32 %v7757_v56, %v7741_v14 }
0x124d   : > { %v7759_v61 = vpop.eup %7758 }
0x124e   : > { %v6233_v37 = vmul.f32 %v7759_v61, %v7745_v25  ;;  %7404 = vmatmul.msk.f32.vlgmr.msrb.gmra.mxu0 %vm1727_vm11, %v6232_v60  ;;  %v7761_v55 = vpop.eup %7760  ;;  %v7453_v60 = vld [vmem:[%s10473_s20 + $0xd8] sm:$0xff]  ;;  %v7452_v61 = vld [vmem:[%s10473_s20 + $0xd0] sm:$0xff] }
0x124f   : > { %v6236_v29 = vmul.f32 %v7761_v55, %v7743_v7  ;;  %7423 = vmatpush.msk.msrb.mxu0 %vm2011_vm12, %v7412_v62  ;;  %v7450_v55 = vld [vmem:[%s10473_s20 + $0xc0] sm:$0xff] }
0x1250   : > { %7405 = vmatmul.msk.f32.vlgmr.msrb.gmra.mxu1 %vm1727_vm11, %v6233_v37  ;;  %v7451_v37 = vld [vmem:[%s10473_s20 + $0xc8] sm:$0xff] }
0x1251   : > { %7425 = vmatpush.msk.msrb.mxu1 %vm2011_vm12, %v7413_v3 }
0x1256   : > { %7408 = vmatmul.msk.f32.vlgmr.msra.gmra.mxu0 %vm1727_vm11, %v6236_v29 }
0x1257   : > { %7431 = vmatpush.msk.msra.mxu0 %vm2011_vm12, %v7416_v16  ;;  %v7446_v16 = vld [vmem:[%s10473_s20 + $0xa0] sm:$0xff] }
0x12c1   : > { %v6280_v24 = vpop.f32.mrf.mxu2 }
0x12c2   : > { %v6303_v52 = vpop.f32.mrf.mxu3  ;;  %7420 = vmatmul.msk.f32.vlgmr.msrb.gmra.mxu2 %vm1508_vm6, %v6280_v24 }
0x12c3   : > { %7422 = vmatmul.msk.f32.vlgmr.msra.gmra.mxu3 %vm1508_vm6, %v6303_v52  ;;  %6743 = vmatpush.msrb.mxu2 %v7457_v41  ;;  %v7445_v52 = vld [vmem:[%s10473_s20 + $0x98] sm:$0xff] }
0x12c5   : > { %v6257_v12 = vpop.f32.mrf.mxu1  ;;  %6744 = vmatpush.msrb.mxu2 %v7456_v46 }
0x12c6   : > { %7418 = vmatmul.msk.f32.vlgmr.msra.gmra.mxu1 %vm1508_vm6, %v6257_v12 }
0x12c7   : > { %6717 = vmatpush.msra.mxu1 %v7439_v36  ;;  %6745 = vmatpush.msrb.mxu2 %v7455_v44 }
0x12c9   : > { %v6372_v9 = vpop.f32.mrf.mxu2  ;;  %6746 = vmatpush.msrb.mxu2 %v7454_v51 }
0x12ca   : > { %v6395_v48 = vpop.f32.mrf.mxu3  ;;  %7428 = vmatmul.msk.f32.vlgmr.msra.gmra.mxu2 %vm1508_vm6, %v6372_v9  ;;  %v7616_v9 = vld [vmem:[%s10535_s30 + $0x1] ss:$0 sm:$0xff] }
0x12cb   : > { %7430 = vmatmul.msk.f32.vlgmr.msrb.gmra.mxu3 %vm1508_vm6, %v6395_v48  ;;  %v6326_v35 = vpop.f32.mrf.mxu0  ;;  %6747 = vmatpush.msrb.mxu2 %v7453_v60 }
0x12cc   : > { %7424 = vmatmul.msk.f32.vlgmr.msrb.gmra.mxu0 %vm1508_vm6, %v6326_v35  ;;  %v7617_v35 = vld [vmem:[%s10536_s9 + $0x1] ss:$0 sm:$0xff]  ;;  %s763_s9 = scalar_lea.vmem [#allocation2], %s6912_s1 }
0x12cd   : > { %v6349_v54 = vpop.f32.mrf.mxu1  ;;  %6748 = vmatpush.msrb.mxu2 %v7452_v61  ;;  %s6816_s6 = sshll.u32 %s763_s9, 4  ;;  %s6817_s6 = int_to_ptr.vmem [resolvable:$true] %s6816_s6 }
0x12ce   : > { %7426 = vmatmul.msk.f32.vlgmr.msrb.gmra.mxu1 %vm1508_vm6, %v6349_v54 }
0x12cf   : > { %6749 = vmatpush.msrb.mxu2 %v7451_v37 }
0x12d1   : > { %6750 = vmatpush.msrb.mxu2 %v7450_v55 }
0x12d3   : > { %v6418_v58 = vpop.f32.mrf.mxu0  ;;  %6751 = vmatpush.msrb.mxu2 %v7449_v30 }
0x12d4   : > { %7432 = vmatmul.msk.f32.vlgmr.msra.gmra.mxu0 %vm1508_vm6, %v6418_v58 }
0x12d5   : > { %6752 = vmatpush.msrb.mxu2 %v7448_v43 }
0x12d7   : > { %6753 = vmatpush.msrb.mxu2 %v7447_v39 }
0x12d9   : > { %6754 = vmatpush.msrb.mxu2 %v7446_v16 }
0x12db   : > { %6755 = vmatpush.msrb.mxu2 %v7445_v52 }
0x1343   : > { %v6452_v2 = vpop.f32.mrf.mxu1 }
0x1344   : > { %v6637_v42 = vsel %vm795_vm0, %v6452_v2, 0.0 }
0x1345   : > { %v6478_v33 = vpop.f32.mrf.mxu2 }
0x1346   : > { %v6638_v63 = vsel %vm795_vm0, %v6478_v33, 0.0  ;;  %v6504_v18 = vpop.f32.mrf.mxu3  ;;  %v7444_v33 = vld [vmem:[%s10473_s20 + $0x90] sm:$0xff] }
0x1347   : > { %v6639_v59 = vadd.f32 %v6638_v63, %v6637_v42  ;;  %v6640_v34 = vsel %vm795_vm0, %v6504_v18, 0.0  ;;  %6756 = vmatpush.msrb.mxu2 %v7444_v33  ;;  %v7443_v42 = vld [vmem:[%s10473_s20 + $0x88] sm:$0xff]  ;;  %v7442_v63 = vld [vmem:[%s10473_s20 + $0x80] sm:$0xff] }
0x1348   : > { %v7618_v18 = vld [vmem:[%s10472_s19 + $0x1] ss:$0 sm:$0xff] }
0x1349   : > { %v6641_v15 = vadd.f32 %v6640_v34, %v6639_v59  ;;  %v6530_v53 = vpop.f32.mrf.mxu0  ;;  %6757 = vmatpush.msrb.mxu2 %v7443_v42 }
0x134a   : > { %v6642_v5 = vsel %vm795_vm0, %v6530_v53, 0.0  ;;  %v7619_v53 = vld [vmem:[%s10474_s21 + $0x1] ss:$0 sm:$0xff] }
0x134b   : > { %v6643_v10 = vadd.f32 %v6642_v5, %v6641_v15  ;;  %v6556_v20 = vpop.f32.mrf.mxu1  ;;  %6758 = vmatpush.msrb.mxu2 %v7442_v63 }
0x134c   : > { %v6644_v21 = vsel %vm795_vm0, %v6556_v20, 0.0 }
0x134d   : > { %v6645_v1 = vadd.f32 %v6644_v21, %v6643_v10  ;;  %v6582_v23 = vpop.f32.mrf.mxu2 }
0x134e   : > { %v6646_v50 = vsel %vm795_vm0, %v6582_v23, 0.0  ;;  %v6608_v14 = vpop.f32.mrf.mxu3 }
0x134f   : > { %v6647_v7 = vadd.f32 %v6646_v50, %v6645_v1  ;;  %v6648_v0 = vsel %vm795_vm0, %v6608_v14, 0.0 }
0x1351   : > { %v6649_v25 = vadd.f32 %v6648_v0, %v6647_v7  ;;  %v6634_v19 = vpop.f32.mrf.mxu0 }
0x1352   : > { %v6650_v22 = vsel %vm795_vm0, %v6634_v19, 0.0 }
0x1353   : > { %v6651_v26 = vadd.f32 %v6650_v22, %v6649_v25 }
0x1355   : > { %v6656_v47 = vadd.f32 %v7615_v6, %v6651_v26 }
0x1357   : > { %v10328_v13 = vadd.f32 %v6656_v47, %v9866_v17  ;;  %v7438_v17 = vld [vmem:[%s10471_s18 + $0x30] sm:$0xff] }
0x1358   : > { %6718 = vmatpush.msra.mxu1 %v7438_v17 }
0x1359   : > { %v6662_v4 = vsel %vm795_vm0, %v10328_v13, 0.0 }
0x135a   : > { %6663 = vadd.xlane.f32.xlu2 %v6662_v4  ;;  %6719 = vmatpush.msra.mxu1 %v7437_v38 }
0x135c   : > { %6720 = vmatpush.msra.mxu1 %v7436_v40 }
0x13cd   : > { %v6664_v27 = vpop.xlane.xlu2 %6663 }
0x13ce   : > { %v6665_v28 = vmul.f32 %v6664_v27, %v8028_v11  ;;  %v7620_v27 = vld [vmem:[%s10537_s2] ss:$0 sm:$0xff] }
0x13d0   : > { %v6666_v8 = vsub.f32 %v10328_v13, %v6665_v28 }
0x13d2   : > { %v6667_v31 = vmul.f32 %v6666_v8, %v6666_v8 }
0x13d4   : > { %v6668_v32 = vsel %vm795_vm0, %v6667_v31, 0.0 }
0x13d5   : > { %6669 = vadd.xlane.f32.xlu0 %v6668_v32 }
0x1448   : > { %v6670_v45 = vpop.xlane.xlu0 %6669 }
0x1449   : > { %v6671_v49 = vmul.f32 %v6670_v45, %v8028_v11 }
0x144b   : > { %v6672_v56 = vadd.f32 1e-05, %v6671_v49 }
0x144d   : > { %7762 = vrsqrt.f32 %v6672_v56  ;;  %vm6679_vm11 = vweird.f32 %v6672_v56 }
0x1453   : > { %v7763_v29 = vpop.eup %7762 }
0x1454   : > { %v6674_v57 = vmul.f32 %v7763_v29, %v6672_v56  ;;  %vm6680_vm6 = vweird.f32 %v7763_v29 }
0x1455   : > { %vm6681_vm12 = vmor %vm6679_vm11, %vm6680_vm6 }
0x1456   : > { %v6675_v62 = vmul.f32 %v7763_v29, %v6674_v57 }
0x1458   : > { %v6676_v3 = vmul.f32 0.5, %v6675_v62 }
0x145a   : > { %v6677_v24 = vsub.f32 1.5, %v6676_v3 }
0x145c   : > { %v6678_v12 = vmul.f32 %v7763_v29, %v6677_v24 }
0x145e   : > { %v6682_v48 = vsel %vm6681_vm12, %v7763_v29, %v6678_v12 }
0x145f   : > { %v6683_v54 = vmul.f32 %v6682_v48, %v6666_v8  ;;  %v7621_v8 = vld [vmem:[%s10540_s7] ss:$0 sm:$0xff] }
0x1461   : > { %v6687_v58 = vmul.f32 %v7616_v9, %v6683_v54 }
0x1463   : > { %v6691_v2 = vadd.f32 %v7617_v35, %v6687_v58 }
0x1465   : > { %7441 = vmatmul.msk.f32.vlgmr.msra.gmra.mxu1 %vm795_vm0, %v6691_v2 }
0x14e2   : > { %v6722_v59 = vpop.f32.mrf.mxu1 }
0x14e3   : > { %v6723_v34 = vadd.f32 %v7618_v18, %v6722_v59 }
0x14e5   : > { %v6725_v15 = vmax.f32 %v6723_v34, 0.0 }
0x14e7   : > { %6759 = vmatmul.f32.vlgmr.msrb.gmra.mxu2 %v6725_v15 }
0x156a   : > { %v6760_v5 = vpop.f32.mrf.mxu2 }
0x156b   : > { %v6763_v10 = vadd.f32 %v6760_v5, %v10328_v13 }
0x156d   : > { %v6769_v20 = vadd.f32 %v7619_v53, %v6763_v10 }
0x156f   : > { %v6772_v21 = vsel %vm795_vm0, %v6769_v20, 0.0 }
0x1570   : > { %6773 = vadd.xlane.f32.xlu1 %v6772_v21 }
0x15e3   : > { %v6774_v1 = vpop.xlane.xlu1 %6773 }
0x15e4   : > { %v6775_v23 = vmul.f32 %v6774_v1, %v8028_v11 }
0x15e6   : > { %v6776_v50 = vsub.f32 %v6769_v20, %v6775_v23 }
0x15e8   : > { %v6777_v14 = vmul.f32 %v6776_v50, %v6776_v50 }
0x15ea   : > { %v6778_v7 = vsel %vm795_vm0, %v6777_v14, 0.0 }
0x15eb   : > { %6779 = vadd.xlane.f32.xlu2 %v6778_v7 }
0x165e   : > { %v6780_v0 = vpop.xlane.xlu2 %6779 }
0x165f   : > { %v6781_v25 = vmul.f32 %v6780_v0, %v8028_v11 }
0x1661   : > { %v6782_v19 = vadd.f32 1e-05, %v6781_v25 }
0x1663   : > { %7764 = vrsqrt.f32 %v6782_v19  ;;  %vm6789_vm15 = vweird.f32 %v6782_v19 }
0x1669   : > { %v7765_v6 = vpop.eup %7764 }
0x166a   : > { %v6784_v22 = vmul.f32 %v7765_v6, %v6782_v19  ;;  %vm6790_vm14 = vweird.f32 %v7765_v6 }
0x166b   : > { %vm6791_vm1 = vmor %vm6789_vm15, %vm6790_vm14 }
0x166c   : > { %v6785_v26 = vmul.f32 %v7765_v6, %v6784_v22 }
0x166e   : > { %v6786_v47 = vmul.f32 0.5, %v6785_v26 }
0x1670   : > { %v6787_v13 = vsub.f32 1.5, %v6786_v47 }
0x1672   : > { %v6788_v4 = vmul.f32 %v7765_v6, %v6787_v13 }
0x1674   : > { %v6792_v11 = vsel %vm6791_vm1, %v7765_v6, %v6788_v4 }
0x1675   : > { %v6793_v28 = vmul.f32 %v6792_v11, %v6776_v50 }
0x1677   : > { %v6797_v31 = vmul.f32 %v7620_v27, %v6793_v28 }
0x1679   : > { %v6801_v32 = vadd.f32 %v7621_v8, %v6797_v31 }
0x167b   : > { %6802 = vst.msk [vmem:[%s763_s9] sm:$0xff] %vm795_vm0, %v6801_v32 }
0x167c   : > { %7795 = shalt.err (!%p7792_p3)
}
0x167d   : > { %7463 = dma.vmem_to_hbm [thread:$0]  (%p7997_p5), %s6817_s6, 128, %s6819_s10, %s6804_s3  }
0x167e PF: > { %s10541_s9 = sld [smem:[#allocation7_spill]] }
0x167f   : > { %s10542_s27 = sld [smem:[#allocation5_spill]] }
0x1684   : > { %p7469_p4 = scmp.ge.s32.totalorder %s10541_s9, 2 }
0x1685   : > { %s6830_s8 = sand.u32 1, %s10542_s27  }
0x1686   : > { %p7466_p7 = pnand %p7469_p4, %p8001_p6  ;;  %s6831_s24 = scalar_lea.sflag [#allocation3], %s6830_s8 }
0x1688   : > { %p7467_p8 = pneg %p7466_p7 }
0x168a   : > { %7813 = dma.done.wait (%p7467_p8), %s6831_s24, 128  }
0x168b   : > { %7815 = vsyncadd (%p7467_p8), %s6831_s24, 4294967168  ;;  %s10544_s28 = sld [smem:[#allocation8_spill]]  ;;  %s10547_s5 = smov %s7822_s26 }
0x168c   : > { %s10545_s22 = sld [smem:[#allocation6_spill]] }
0x168d   : > { %s10546_s27 = sld [smem:[#allocation9_spill]] }
0x1691   : > { %p34_p9 = scmp.ge.s32.totalorder %s10544_s28, 4  }
0x1692   : > { %s10548_s26 = smov %s10545_s22 }
0x1693   :  { %36 = sbr.rel (!%p34_p9) target bundleno = 18 (0x12), region = 178 }
0x1698   :  { %6837 = vsyncpa [#allocation3], 1 }
0x1699   :  { %6839 = vsyncpa [#allocation3 + $0x1], 1 }

</bundles_post_ra>
